<compile_context>
chip_gen: v7x
topology: tpu7x:2x2x1
jax: 0.10.0
libtpu: 0.0.40
codegen_flags: <defaults>
</compile_context>

<pallas_src>
import functools

import jax
import jax.numpy as jnp
from jax import lax
from jax.experimental import pallas as pl
from jax.experimental.pallas import tpu as pltpu

EPS = 1e-5


# ----------------------------------------------------------------------------
# Fused Conv2d(+BN folded)+ReLU Pallas kernel
# ----------------------------------------------------------------------------
def _eeg_conv_kernel(x_ref, w_ref, b_ref, o_ref, xpad_ref, col_ref, *,
                     cin, cout, kh, kw, ph, pw, h_in, w_in, ho, wo):
    """One sample per grid step.

    x_ref   : (1, cin, h_in, w_in)          input block (VMEM)
    w_ref   : (cout, cin*kh*kw)             BN-folded weights (VMEM)
    b_ref   : (cout, 1)                     BN-folded bias (VMEM)
    o_ref   : (1, cout, ho, wo)             output block (VMEM)
    xpad_ref: (cin, h_in+2*ph, w_in+2*pw)   zero-padded input scratch (VMEM)
    col_ref : (cin*kh*kw, ho, wo)           im2col slab scratch (VMEM)
    """
    # Zero-pad this sample in VMEM (Conv2d default padding_mode='zeros').
    # Zeroed every step: scratch is per-core, so a "zero once at program 0"
    # trick would be wrong when the parallel grid is sharded across cores.
    xpad_ref[...] = jnp.zeros_like(xpad_ref)
    xpad_ref[:, ph:ph + h_in, pw:pw + w_in] = x_ref[0]

    # im2col slab: col[(dh*kw + dw)*cin + ci, h, w] = xpad[ci, h + dh, w + dw]
    for dh in range(kh):
        for dw in range(kw):
            t = dh * kw + dw
            col_ref[t * cin:(t + 1) * cin, :, :] = \
                xpad_ref[:, dh:dh + ho, dw:dw + wo]

    w_mat = w_ref[...]            # (cout, K)  -- hoisted out of the row loop
    bias = b_ref[...]             # (cout, 1)

    # One MXU matmul per output row: (cout, K) @ (K, wo) -> (cout, wo).
    for h in range(ho):
        patches = col_ref[:, h, :]                                    # (K, wo)
        acc = jnp.dot(w_mat, patches, preferred_element_type=jnp.float32)
        o_ref[0, :, h, :] = jnp.maximum(acc + bias, 0.0).astype(o_ref.dtype)


def eeg_conv_forward(x, conv_w, conv_b, bn_gamma, bn_beta, bn_mean, bn_var,
                     *, padding=(1, 1)):
    """Eeg_Conv.forward (eval): relu(BN2d(conv2d(x))).

    x: (N, Cin, H, W) f32.  conv_w: (Cout, Cin, Kh, Kw).  stride = (1, 1).
    """
    n, cin, h_in, w_in = x.shape
    cout, cin_w, kh, kw = conv_w.shape
    assert cin == cin_w
    ph, pw = padding
    ho = h_in + 2 * ph - kh + 1
    wo = w_in + 2 * pw - kw + 1

    # Fold eval-mode BatchNorm2d into the conv weight/bias (exact):
    #   BN(conv(x) + b) = conv(x) * s + (b - mean) * s + beta,  s = g/sqrt(v+eps)
    scale = (bn_gamma.astype(jnp.float32)
             / jnp.sqrt(bn_var.astype(jnp.float32) + EPS))
    w_f = conv_w.astype(jnp.float32) * scale[:, None, None, None]
    b_f = (conv_b.astype(jnp.float32) - bn_mean.astype(jnp.float32)) * scale \
        + bn_beta.astype(jnp.float32)

    k_taps = cin * kh * kw
    # (Cout, Kh, Kw, Cin) -> (Cout, K): index (dh*kw + dw)*cin + ci, matching
    # the im2col ordering built inside the kernel.
    w_mat = jnp.transpose(w_f, (0, 2, 3, 1)).reshape(cout, k_taps)

    kern = functools.partial(
        _eeg_conv_kernel, cin=cin, cout=cout, kh=kh, kw=kw, ph=ph, pw=pw,
        h_in=h_in, w_in=w_in, ho=ho, wo=wo)

    return pl.pallas_call(
        kern,
        out_shape=jax.ShapeDtypeStruct((n, cout, ho, wo), jnp.float32),
        grid=(n,),
        in_specs=[
            pl.BlockSpec((1, cin, h_in, w_in), lambda i: (i, 0, 0, 0)),
            pl.BlockSpec((cout, k_taps), lambda i: (0, 0)),
            pl.BlockSpec((cout, 1), lambda i: (0, 0)),
        ],
        out_specs=pl.BlockSpec((1, cout, ho, wo), lambda i: (i, 0, 0, 0)),
        scratch_shapes=[
            pltpu.VMEM((cin, h_in + 2 * ph, w_in + 2 * pw), jnp.float32),
            pltpu.VMEM((k_taps, ho, wo), jnp.float32),
        ],
        compiler_params=pltpu.CompilerParams(
            dimension_semantics=("parallel",),
            vmem_limit_bytes=32 * 1024 * 1024),
    )(x, w_mat, b_f.reshape(cout, 1))


# ----------------------------------------------------------------------------
if __name__ == "__main__":
    key = jax.random.PRNGKey(0)
    kx, kw_, kb, kg, kbe, km, kv = jax.random.split(key, 7)

    # Small shapes consistent with the module: batch=2, in=4, out=8 channels,
    # 16 electrodes (H), 128 time steps (W, lane-dense).
    N, CIN, COUT, H, W = 2, 4, 8, 16, 128
    x = jax.random.normal(kx, (N, CIN, H, W), jnp.float32)
    conv_w = 0.1 * jax.random.normal(kw_, (COUT, CIN, 3, 3), jnp.float32)
    conv_b = 0.1 * jax.random.normal(kb, (COUT,), jnp.float32)
    # Non-trivial deterministic eval-mode BN statistics / affine params.
    bn_gamma = 1.0 + 0.1 * jax.random.normal(kg, (COUT,), jnp.float32)
    bn_beta = 0.1 * jax.random.normal(kbe, (COUT,), jnp.float32)
    bn_mean = 0.1 * jax.random.normal(km, (COUT,), jnp.float32)
    bn_var = jnp.abs(jax.random.normal(kv, (COUT,), jnp.float32)) + 0.5

    fwd = jax.jit(eeg_conv_forward)
    out = jax.block_until_ready(
        fwd(x, conv_w, conv_b, bn_gamma, bn_beta, bn_mean, bn_var))

    # Pure-JAX reference: conv -> BN(eval) -> relu.
    ref = lax.conv_general_dilated(
        x, conv_w, window_strides=(1, 1), padding=[(1, 1), (1, 1)],
        dimension_numbers=("NCHW", "OIHW", "NCHW"))
    ref = ref + conv_b[None, :, None, None]
    s = bn_gamma / jnp.sqrt(bn_var + EPS)
    ref = (ref - bn_mean[None, :, None, None]) * s[None, :, None, None] \
        + bn_beta[None, :, None, None]
    ref = jnp.maximum(ref, 0.0)

    assert out.shape == (N, COUT, H, W), out.shape
    assert bool(jnp.all(jnp.isfinite(out)))
    max_err = float(jnp.max(jnp.abs(out - ref)))
    assert bool(jnp.allclose(out, ref, atol=1e-2, rtol=1e-2)), max_err
    print("KERNEL_OK")
</pallas_src>

<mosaic_0001>
module attributes {stable_mosaic.version = 11 : i64} {
  func.func @_eeg_conv_kernel(%arg0: i32, %arg1: memref<1x4x16x128xf32, #tpu.memory_space<vmem>>, %arg2: memref<8x36xf32, #tpu.memory_space<vmem>>, %arg3: memref<8x1xf32, #tpu.memory_space<vmem>>, %arg4: memref<1x8x16x128xf32, #tpu.memory_space<vmem>>, %arg5: memref<4x18x130xf32, #tpu.memory_space<vmem>>, %arg6: memref<36x16x128xf32, #tpu.memory_space<vmem>>) attributes {dimension_semantics = [#tpu.dimension_semantics<parallel>], iteration_bounds = array<i64: 2>, scalar_prefetch = 0 : i64, scratch_operands = 2 : i64, tpu.core_type = #tpu.core_type<tc>, window_params = [{transform_indices = @transform_0, window_bounds = array<i64: 1, 4, 16, 128>}, {pipeline_mode = #tpu.pipeline_mode<synchronous>, transform_indices = @transform_1, window_bounds = array<i64: 8, 36>}, {pipeline_mode = #tpu.pipeline_mode<synchronous>, transform_indices = @transform_2, window_bounds = array<i64: 8, 1>}, {transform_indices = @transform_3, window_bounds = array<i64: 1, 8, 16, 128>}]} {
    %cst = arith.constant 0.000000e+00 : f32
    %0 = vector.broadcast %cst : f32 to vector<4x18x130xf32>
    %c0 = arith.constant 0 : index
    %c0_0 = arith.constant 0 : index
    %c0_1 = arith.constant 0 : index
    %1 = vector.load %arg5[%c0, %c0_0, %c0_1] : memref<4x18x130xf32, #tpu.memory_space<vmem>>, vector<4x18x130xf32>
    tpu.vector_store %arg5[%c0, %c0_0, %c0_1], %0 {strides = array<i32>} : memref<4x18x130xf32, #tpu.memory_space<vmem>>, vector<4x18x130xf32>,
    %c0_2 = arith.constant 0 : index
    %c0_3 = arith.constant 0 : index
    %c0_4 = arith.constant 0 : index
    %c0_5 = arith.constant 0 : index
    %2 = vector.load %arg1[%c0_2, %c0_3, %c0_4, %c0_5] : memref<1x4x16x128xf32, #tpu.memory_space<vmem>>, vector<1x4x16x128xf32>
    %3 = vector.shape_cast %2 : vector<1x4x16x128xf32> to vector<4x16x128xf32>
    %c0_6 = arith.constant 0 : index
    %c1 = arith.constant 1 : index
    %c1_7 = arith.constant 1 : index
    %4 = vector.load %arg5[%c0_6, %c1, %c1_7] : memref<4x18x130xf32, #tpu.memory_space<vmem>>, vector<4x16x128xf32>
    tpu.vector_store %arg5[%c0_6, %c1, %c1_7], %3 {strides = array<i32>} : memref<4x18x130xf32, #tpu.memory_space<vmem>>, vector<4x16x128xf32>,
    %c0_8 = arith.constant 0 : index
    %c0_9 = arith.constant 0 : index
    %c0_10 = arith.constant 0 : index
    %5 = vector.load %arg5[%c0_8, %c0_9, %c0_10] : memref<4x18x130xf32, #tpu.memory_space<vmem>>, vector<4x16x128xf32>
    %c0_11 = arith.constant 0 : index
    %c0_12 = arith.constant 0 : index
    %c0_13 = arith.constant 0 : index
    %6 = vector.load %arg6[%c0_11, %c0_12, %c0_13] : memref<36x16x128xf32, #tpu.memory_space<vmem>>, vector<4x16x128xf32>
    tpu.vector_store %arg6[%c0_11, %c0_12, %c0_13], %5 {strides = array<i32>} : memref<36x16x128xf32, #tpu.memory_space<vmem>>, vector<4x16x128xf32>,
    %c0_14 = arith.constant 0 : index
    %c0_15 = arith.constant 0 : index
    %c1_16 = arith.constant 1 : index
    %7 = vector.load %arg5[%c0_14, %c0_15, %c1_16] : memref<4x18x130xf32, #tpu.memory_space<vmem>>, vector<4x16x128xf32>
    %c4 = arith.constant 4 : index
    %c0_17 = arith.constant 0 : index
    %c0_18 = arith.constant 0 : index
    %8 = vector.load %arg6[%c4, %c0_17, %c0_18] : memref<36x16x128xf32, #tpu.memory_space<vmem>>, vector<4x16x128xf32>
    tpu.vector_store %arg6[%c4, %c0_17, %c0_18], %7 {strides = array<i32>} : memref<36x16x128xf32, #tpu.memory_space<vmem>>, vector<4x16x128xf32>,
    %c0_19 = arith.constant 0 : index
    %c0_20 = arith.constant 0 : index
    %c2 = arith.constant 2 : index
    %9 = vector.load %arg5[%c0_19, %c0_20, %c2] : memref<4x18x130xf32, #tpu.memory_space<vmem>>, vector<4x16x128xf32>
    %c8 = arith.constant 8 : index
    %c0_21 = arith.constant 0 : index
    %c0_22 = arith.constant 0 : index
    %10 = vector.load %arg6[%c8, %c0_21, %c0_22] : memref<36x16x128xf32, #tpu.memory_space<vmem>>, vector<4x16x128xf32>
    tpu.vector_store %arg6[%c8, %c0_21, %c0_22], %9 {strides = array<i32>} : memref<36x16x128xf32, #tpu.memory_space<vmem>>, vector<4x16x128xf32>,
    %c0_23 = arith.constant 0 : index
    %c1_24 = arith.constant 1 : index
    %c0_25 = arith.constant 0 : index
    %11 = vector.load %arg5[%c0_23, %c1_24, %c0_25] : memref<4x18x130xf32, #tpu.memory_space<vmem>>, vector<4x16x128xf32>
    %c12 = arith.constant 12 : index
    %c0_26 = arith.constant 0 : index
    %c0_27 = arith.constant 0 : index
    %12 = vector.load %arg6[%c12, %c0_26, %c0_27] : memref<36x16x128xf32, #tpu.memory_space<vmem>>, vector<4x16x128xf32>
    tpu.vector_store %arg6[%c12, %c0_26, %c0_27], %11 {strides = array<i32>} : memref<36x16x128xf32, #tpu.memory_space<vmem>>, vector<4x16x128xf32>,
    %c0_28 = arith.constant 0 : index
    %c1_29 = arith.constant 1 : index
    %c1_30 = arith.constant 1 : index
    %13 = vector.load %arg5[%c0_28, %c1_29, %c1_30] : memref<4x18x130xf32, #tpu.memory_space<vmem>>, vector<4x16x128xf32>
    %c16 = arith.constant 16 : index
    %c0_31 = arith.constant 0 : index
    %c0_32 = arith.constant 0 : index
    %14 = vector.load %arg6[%c16, %c0_31, %c0_32] : memref<36x16x128xf32, #tpu.memory_space<vmem>>, vector<4x16x128xf32>
    tpu.vector_store %arg6[%c16, %c0_31, %c0_32], %13 {strides = array<i32>} : memref<36x16x128xf32, #tpu.memory_space<vmem>>, vector<4x16x128xf32>,
    %c0_33 = arith.constant 0 : index
    %c1_34 = arith.constant 1 : index
    %c2_35 = arith.constant 2 : index
    %15 = vector.load %arg5[%c0_33, %c1_34, %c2_35] : memref<4x18x130xf32, #tpu.memory_space<vmem>>, vector<4x16x128xf32>
    %c20 = arith.constant 20 : index
    %c0_36 = arith.constant 0 : index
    %c0_37 = arith.constant 0 : index
    %16 = vector.load %arg6[%c20, %c0_36, %c0_37] : memref<36x16x128xf32, #tpu.memory_space<vmem>>, vector<4x16x128xf32>
    tpu.vector_store %arg6[%c20, %c0_36, %c0_37], %15 {strides = array<i32>} : memref<36x16x128xf32, #tpu.memory_space<vmem>>, vector<4x16x128xf32>,
    %c0_38 = arith.constant 0 : index
    %c2_39 = arith.constant 2 : index
    %c0_40 = arith.constant 0 : index
    %17 = vector.load %arg5[%c0_38, %c2_39, %c0_40] : memref<4x18x130xf32, #tpu.memory_space<vmem>>, vector<4x16x128xf32>
    %c24 = arith.constant 24 : index
    %c0_41 = arith.constant 0 : index
    %c0_42 = arith.constant 0 : index
    %18 = vector.load %arg6[%c24, %c0_41, %c0_42] : memref<36x16x128xf32, #tpu.memory_space<vmem>>, vector<4x16x128xf32>
    tpu.vector_store %arg6[%c24, %c0_41, %c0_42], %17 {strides = array<i32>} : memref<36x16x128xf32, #tpu.memory_space<vmem>>, vector<4x16x128xf32>,
    %c0_43 = arith.constant 0 : index
    %c2_44 = arith.constant 2 : index
    %c1_45 = arith.constant 1 : index
    %19 = vector.load %arg5[%c0_43, %c2_44, %c1_45] : memref<4x18x130xf32, #tpu.memory_space<vmem>>, vector<4x16x128xf32>
    %c28 = arith.constant 28 : index
    %c0_46 = arith.constant 0 : index
    %c0_47 = arith.constant 0 : index
    %20 = vector.load %arg6[%c28, %c0_46, %c0_47] : memref<36x16x128xf32, #tpu.memory_space<vmem>>, vector<4x16x128xf32>
    tpu.vector_store %arg6[%c28, %c0_46, %c0_47], %19 {strides = array<i32>} : memref<36x16x128xf32, #tpu.memory_space<vmem>>, vector<4x16x128xf32>,
    %c0_48 = arith.constant 0 : index
    %c2_49 = arith.constant 2 : index
    %c2_50 = arith.constant 2 : index
    %21 = vector.load %arg5[%c0_48, %c2_49, %c2_50] : memref<4x18x130xf32, #tpu.memory_space<vmem>>, vector<4x16x128xf32>
    %c32 = arith.constant 32 : index
    %c0_51 = arith.constant 0 : index
    %c0_52 = arith.constant 0 : index
    %22 = vector.load %arg6[%c32, %c0_51, %c0_52] : memref<36x16x128xf32, #tpu.memory_space<vmem>>, vector<4x16x128xf32>
    tpu.vector_store %arg6[%c32, %c0_51, %c0_52], %21 {strides = array<i32>} : memref<36x16x128xf32, #tpu.memory_space<vmem>>, vector<4x16x128xf32>,
    %c0_53 = arith.constant 0 : index
    %c0_54 = arith.constant 0 : index
    %23 = vector.load %arg2[%c0_53, %c0_54] : memref<8x36xf32, #tpu.memory_space<vmem>>, vector<8x36xf32>
    %c0_55 = arith.constant 0 : index
    %c0_56 = arith.constant 0 : index
    %24 = vector.load %arg3[%c0_55, %c0_56] : memref<8x1xf32, #tpu.memory_space<vmem>>, vector<8x1xf32>
    %c0_57 = arith.constant 0 : index
    %c0_58 = arith.constant 0 : index
    %c0_59 = arith.constant 0 : index
    %25 = vector.load %arg6[%c0_57, %c0_58, %c0_59] : memref<36x16x128xf32, #tpu.memory_space<vmem>>, vector<36x1x128xf32>
    %26 = vector.shape_cast %25 : vector<36x1x128xf32> to vector<36x128xf32>
    %cst_60 = arith.constant dense<0.000000e+00> : vector<8x128xf32>
    %27 = tpu.matmul %23, %26, %cst_60 {dimension_numbers = #tpu.dot_dimension_numbers<[1], [0], [0], [1], [0, 0, 1, 1], [], []>} : vector<8x36xf32>, vector<36x128xf32>, vector<8x128xf32> -> vector<8x128xf32>
    %28 = vector.broadcast %24 : vector<8x1xf32> to vector<8x128xf32>
    %29 = arith.addf %27, %28 : vector<8x128xf32>
    %cst_61 = arith.constant 0.000000e+00 : f32
    %30 = vector.broadcast %cst_61 : f32 to vector<8x128xf32>
    %31 = arith.maximumf %29, %30 : vector<8x128xf32>
    %c0_62 = arith.constant 0 : index
    %c0_63 = arith.constant 0 : index
    %c0_64 = arith.constant 0 : index
    %c0_65 = arith.constant 0 : index
    %32 = vector.load %arg4[%c0_62, %c0_63, %c0_64, %c0_65] : memref<1x8x16x128xf32, #tpu.memory_space<vmem>>, vector<1x8x1x128xf32>
    %33 = vector.shape_cast %32 : vector<1x8x1x128xf32> to vector<8x128xf32>
    %34 = vector.shape_cast %31 : vector<8x128xf32> to vector<1x8x1x128xf32>
    tpu.vector_store %arg4[%c0_62, %c0_63, %c0_64, %c0_65], %34 {strides = array<i32>} : memref<1x8x16x128xf32, #tpu.memory_space<vmem>>, vector<1x8x1x128xf32>,
    %c0_66 = arith.constant 0 : index
    %c1_67 = arith.constant 1 : index
    %c0_68 = arith.constant 0 : index
    %35 = vector.load %arg6[%c0_66, %c1_67, %c0_68] : memref<36x16x128xf32, #tpu.memory_space<vmem>>, vector<36x1x128xf32>
    %36 = vector.shape_cast %35 : vector<36x1x128xf32> to vector<36x128xf32>
    %cst_69 = arith.constant dense<0.000000e+00> : vector<8x128xf32>
    %37 = tpu.matmul %23, %36, %cst_69 {dimension_numbers = #tpu.dot_dimension_numbers<[1], [0], [0], [1], [0, 0, 1, 1], [], []>} : vector<8x36xf32>, vector<36x128xf32>, vector<8x128xf32> -> vector<8x128xf32>
    %38 = vector.broadcast %24 : vector<8x1xf32> to vector<8x128xf32>
    %39 = arith.addf %37, %38 : vector<8x128xf32>
    %cst_70 = arith.constant 0.000000e+00 : f32
    %40 = vector.broadcast %cst_70 : f32 to vector<8x128xf32>
    %41 = arith.maximumf %39, %40 : vector<8x128xf32>
    %c0_71 = arith.constant 0 : index
    %c0_72 = arith.constant 0 : index
    %c1_73 = arith.constant 1 : index
    %c0_74 = arith.constant 0 : index
    %42 = vector.load %arg4[%c0_71, %c0_72, %c1_73, %c0_74] : memref<1x8x16x128xf32, #tpu.memory_space<vmem>>, vector<1x8x1x128xf32>
    %43 = vector.shape_cast %42 : vector<1x8x1x128xf32> to vector<8x128xf32>
    %44 = vector.shape_cast %41 : vector<8x128xf32> to vector<1x8x1x128xf32>
    tpu.vector_store %arg4[%c0_71, %c0_72, %c1_73, %c0_74], %44 {strides = array<i32>} : memref<1x8x16x128xf32, #tpu.memory_space<vmem>>, vector<1x8x1x128xf32>,
    %c0_75 = arith.constant 0 : index
    %c2_76 = arith.constant 2 : index
    %c0_77 = arith.constant 0 : index
    %45 = vector.load %arg6[%c0_75, %c2_76, %c0_77] : memref<36x16x128xf32, #tpu.memory_space<vmem>>, vector<36x1x128xf32>
    %46 = vector.shape_cast %45 : vector<36x1x128xf32> to vector<36x128xf32>
    %cst_78 = arith.constant dense<0.000000e+00> : vector<8x128xf32>
    %47 = tpu.matmul %23, %46, %cst_78 {dimension_numbers = #tpu.dot_dimension_numbers<[1], [0], [0], [1], [0, 0, 1, 1], [], []>} : vector<8x36xf32>, vector<36x128xf32>, vector<8x128xf32> -> vector<8x128xf32>
    %48 = vector.broadcast %24 : vector<8x1xf32> to vector<8x128xf32>
    %49 = arith.addf %47, %48 : vector<8x128xf32>
    %cst_79 = arith.constant 0.000000e+00 : f32
    %50 = vector.broadcast %cst_79 : f32 to vector<8x128xf32>
    %51 = arith.maximumf %49, %50 : vector<8x128xf32>
    %c0_80 = arith.constant 0 : index
    %c0_81 = arith.constant 0 : index
    %c2_82 = arith.constant 2 : index
    %c0_83 = arith.constant 0 : index
    %52 = vector.load %arg4[%c0_80, %c0_81, %c2_82, %c0_83] : memref<1x8x16x128xf32, #tpu.memory_space<vmem>>, vector<1x8x1x128xf32>
    %53 = vector.shape_cast %52 : vector<1x8x1x128xf32> to vector<8x128xf32>
    %54 = vector.shape_cast %51 : vector<8x128xf32> to vector<1x8x1x128xf32>
    tpu.vector_store %arg4[%c0_80, %c0_81, %c2_82, %c0_83], %54 {strides = array<i32>} : memref<1x8x16x128xf32, #tpu.memory_space<vmem>>, vector<1x8x1x128xf32>,
    %c0_84 = arith.constant 0 : index
    %c3 = arith.constant 3 : index
    %c0_85 = arith.constant 0 : index
    %55 = vector.load %arg6[%c0_84, %c3, %c0_85] : memref<36x16x128xf32, #tpu.memory_space<vmem>>, vector<36x1x128xf32>
    %56 = vector.shape_cast %55 : vector<36x1x128xf32> to vector<36x128xf32>
    %cst_86 = arith.constant dense<0.000000e+00> : vector<8x128xf32>
    %57 = tpu.matmul %23, %56, %cst_86 {dimension_numbers = #tpu.dot_dimension_numbers<[1], [0], [0], [1], [0, 0, 1, 1], [], []>} : vector<8x36xf32>, vector<36x128xf32>, vector<8x128xf32> -> vector<8x128xf32>
    %58 = vector.broadcast %24 : vector<8x1xf32> to vector<8x128xf32>
    %59 = arith.addf %57, %58 : vector<8x128xf32>
    %cst_87 = arith.constant 0.000000e+00 : f32
    %60 = vector.broadcast %cst_87 : f32 to vector<8x128xf32>
    %61 = arith.maximumf %59, %60 : vector<8x128xf32>
    %c0_88 = arith.constant 0 : index
    %c0_89 = arith.constant 0 : index
    %c3_90 = arith.constant 3 : index
    %c0_91 = arith.constant 0 : index
    %62 = vector.load %arg4[%c0_88, %c0_89, %c3_90, %c0_91] : memref<1x8x16x128xf32, #tpu.memory_space<vmem>>, vector<1x8x1x128xf32>
    %63 = vector.shape_cast %62 : vector<1x8x1x128xf32> to vector<8x128xf32>
    %64 = vector.shape_cast %61 : vector<8x128xf32> to vector<1x8x1x128xf32>
    tpu.vector_store %arg4[%c0_88, %c0_89, %c3_90, %c0_91], %64 {strides = array<i32>} : memref<1x8x16x128xf32, #tpu.memory_space<vmem>>, vector<1x8x1x128xf32>,
    %c0_92 = arith.constant 0 : index
    %c4_93 = arith.constant 4 : index
    %c0_94 = arith.constant 0 : index
    %65 = vector.load %arg6[%c0_92, %c4_93, %c0_94] : memref<36x16x128xf32, #tpu.memory_space<vmem>>, vector<36x1x128xf32>
    %66 = vector.shape_cast %65 : vector<36x1x128xf32> to vector<36x128xf32>
    %cst_95 = arith.constant dense<0.000000e+00> : vector<8x128xf32>
    %67 = tpu.matmul %23, %66, %cst_95 {dimension_numbers = #tpu.dot_dimension_numbers<[1], [0], [0], [1], [0, 0, 1, 1], [], []>} : vector<8x36xf32>, vector<36x128xf32>, vector<8x128xf32> -> vector<8x128xf32>
    %68 = vector.broadcast %24 : vector<8x1xf32> to vector<8x128xf32>
    %69 = arith.addf %67, %68 : vector<8x128xf32>
    %cst_96 = arith.constant 0.000000e+00 : f32
    %70 = vector.broadcast %cst_96 : f32 to vector<8x128xf32>
    %71 = arith.maximumf %69, %70 : vector<8x128xf32>
    %c0_97 = arith.constant 0 : index
    %c0_98 = arith.constant 0 : index
    %c4_99 = arith.constant 4 : index
    %c0_100 = arith.constant 0 : index
    %72 = vector.load %arg4[%c0_97, %c0_98, %c4_99, %c0_100] : memref<1x8x16x128xf32, #tpu.memory_space<vmem>>, vector<1x8x1x128xf32>
    %73 = vector.shape_cast %72 : vector<1x8x1x128xf32> to vector<8x128xf32>
    %74 = vector.shape_cast %71 : vector<8x128xf32> to vector<1x8x1x128xf32>
    tpu.vector_store %arg4[%c0_97, %c0_98, %c4_99, %c0_100], %74 {strides = array<i32>} : memref<1x8x16x128xf32, #tpu.memory_space<vmem>>, vector<1x8x1x128xf32>,
    %c0_101 = arith.constant 0 : index
    %c5 = arith.constant 5 : index
    %c0_102 = arith.constant 0 : index
    %75 = vector.load %arg6[%c0_101, %c5, %c0_102] : memref<36x16x128xf32, #tpu.memory_space<vmem>>, vector<36x1x128xf32>
    %76 = vector.shape_cast %75 : vector<36x1x128xf32> to vector<36x128xf32>
    %cst_103 = arith.constant dense<0.000000e+00> : vector<8x128xf32>
    %77 = tpu.matmul %23, %76, %cst_103 {dimension_numbers = #tpu.dot_dimension_numbers<[1], [0], [0], [1], [0, 0, 1, 1], [], []>} : vector<8x36xf32>, vector<36x128xf32>, vector<8x128xf32> -> vector<8x128xf32>
    %78 = vector.broadcast %24 : vector<8x1xf32> to vector<8x128xf32>
    %79 = arith.addf %77, %78 : vector<8x128xf32>
    %cst_104 = arith.constant 0.000000e+00 : f32
    %80 = vector.broadcast %cst_104 : f32 to vector<8x128xf32>
    %81 = arith.maximumf %79, %80 : vector<8x128xf32>
    %c0_105 = arith.constant 0 : index
    %c0_106 = arith.constant 0 : index
    %c5_107 = arith.constant 5 : index
    %c0_108 = arith.constant 0 : index
    %82 = vector.load %arg4[%c0_105, %c0_106, %c5_107, %c0_108] : memref<1x8x16x128xf32, #tpu.memory_space<vmem>>, vector<1x8x1x128xf32>
    %83 = vector.shape_cast %82 : vector<1x8x1x128xf32> to vector<8x128xf32>
    %84 = vector.shape_cast %81 : vector<8x128xf32> to vector<1x8x1x128xf32>
    tpu.vector_store %arg4[%c0_105, %c0_106, %c5_107, %c0_108], %84 {strides = array<i32>} : memref<1x8x16x128xf32, #tpu.memory_space<vmem>>, vector<1x8x1x128xf32>,
    %c0_109 = arith.constant 0 : index
    %c6 = arith.constant 6 : index
    %c0_110 = arith.constant 0 : index
    %85 = vector.load %arg6[%c0_109, %c6, %c0_110] : memref<36x16x128xf32, #tpu.memory_space<vmem>>, vector<36x1x128xf32>
    %86 = vector.shape_cast %85 : vector<36x1x128xf32> to vector<36x128xf32>
    %cst_111 = arith.constant dense<0.000000e+00> : vector<8x128xf32>
    %87 = tpu.matmul %23, %86, %cst_111 {dimension_numbers = #tpu.dot_dimension_numbers<[1], [0], [0], [1], [0, 0, 1, 1], [], []>} : vector<8x36xf32>, vector<36x128xf32>, vector<8x128xf32> -> vector<8x128xf32>
    %88 = vector.broadcast %24 : vector<8x1xf32> to vector<8x128xf32>
    %89 = arith.addf %87, %88 : vector<8x128xf32>
    %cst_112 = arith.constant 0.000000e+00 : f32
    %90 = vector.broadcast %cst_112 : f32 to vector<8x128xf32>
    %91 = arith.maximumf %89, %90 : vector<8x128xf32>
    %c0_113 = arith.constant 0 : index
    %c0_114 = arith.constant 0 : index
    %c6_115 = arith.constant 6 : index
    %c0_116 = arith.constant 0 : index
    %92 = vector.load %arg4[%c0_113, %c0_114, %c6_115, %c0_116] : memref<1x8x16x128xf32, #tpu.memory_space<vmem>>, vector<1x8x1x128xf32>
    %93 = vector.shape_cast %92 : vector<1x8x1x128xf32> to vector<8x128xf32>
    %94 = vector.shape_cast %91 : vector<8x128xf32> to vector<1x8x1x128xf32>
    tpu.vector_store %arg4[%c0_113, %c0_114, %c6_115, %c0_116], %94 {strides = array<i32>} : memref<1x8x16x128xf32, #tpu.memory_space<vmem>>, vector<1x8x1x128xf32>,
    %c0_117 = arith.constant 0 : index
    %c7 = arith.constant 7 : index
    %c0_118 = arith.constant 0 : index
    %95 = vector.load %arg6[%c0_117, %c7, %c0_118] : memref<36x16x128xf32, #tpu.memory_space<vmem>>, vector<36x1x128xf32>
    %96 = vector.shape_cast %95 : vector<36x1x128xf32> to vector<36x128xf32>
    %cst_119 = arith.constant dense<0.000000e+00> : vector<8x128xf32>
    %97 = tpu.matmul %23, %96, %cst_119 {dimension_numbers = #tpu.dot_dimension_numbers<[1], [0], [0], [1], [0, 0, 1, 1], [], []>} : vector<8x36xf32>, vector<36x128xf32>, vector<8x128xf32> -> vector<8x128xf32>
    %98 = vector.broadcast %24 : vector<8x1xf32> to vector<8x128xf32>
    %99 = arith.addf %97, %98 : vector<8x128xf32>
    %cst_120 = arith.constant 0.000000e+00 : f32
    %100 = vector.broadcast %cst_120 : f32 to vector<8x128xf32>
    %101 = arith.maximumf %99, %100 : vector<8x128xf32>
    %c0_121 = arith.constant 0 : index
    %c0_122 = arith.constant 0 : index
    %c7_123 = arith.constant 7 : index
    %c0_124 = arith.constant 0 : index
    %102 = vector.load %arg4[%c0_121, %c0_122, %c7_123, %c0_124] : memref<1x8x16x128xf32, #tpu.memory_space<vmem>>, vector<1x8x1x128xf32>
    %103 = vector.shape_cast %102 : vector<1x8x1x128xf32> to vector<8x128xf32>
    %104 = vector.shape_cast %101 : vector<8x128xf32> to vector<1x8x1x128xf32>
    tpu.vector_store %arg4[%c0_121, %c0_122, %c7_123, %c0_124], %104 {strides = array<i32>} : memref<1x8x16x128xf32, #tpu.memory_space<vmem>>, vector<1x8x1x128xf32>,
    %c0_125 = arith.constant 0 : index
    %c8_126 = arith.constant 8 : index
    %c0_127 = arith.constant 0 : index
    %105 = vector.load %arg6[%c0_125, %c8_126, %c0_127] : memref<36x16x128xf32, #tpu.memory_space<vmem>>, vector<36x1x128xf32>
    %106 = vector.shape_cast %105 : vector<36x1x128xf32> to vector<36x128xf32>
    %cst_128 = arith.constant dense<0.000000e+00> : vector<8x128xf32>
    %107 = tpu.matmul %23, %106, %cst_128 {dimension_numbers = #tpu.dot_dimension_numbers<[1], [0], [0], [1], [0, 0, 1, 1], [], []>} : vector<8x36xf32>, vector<36x128xf32>, vector<8x128xf32> -> vector<8x128xf32>
    %108 = vector.broadcast %24 : vector<8x1xf32> to vector<8x128xf32>
    %109 = arith.addf %107, %108 : vector<8x128xf32>
    %cst_129 = arith.constant 0.000000e+00 : f32
    %110 = vector.broadcast %cst_129 : f32 to vector<8x128xf32>
    %111 = arith.maximumf %109, %110 : vector<8x128xf32>
    %c0_130 = arith.constant 0 : index
    %c0_131 = arith.constant 0 : index
    %c8_132 = arith.constant 8 : index
    %c0_133 = arith.constant 0 : index
    %112 = vector.load %arg4[%c0_130, %c0_131, %c8_132, %c0_133] : memref<1x8x16x128xf32, #tpu.memory_space<vmem>>, vector<1x8x1x128xf32>
    %113 = vector.shape_cast %112 : vector<1x8x1x128xf32> to vector<8x128xf32>
    %114 = vector.shape_cast %111 : vector<8x128xf32> to vector<1x8x1x128xf32>
    tpu.vector_store %arg4[%c0_130, %c0_131, %c8_132, %c0_133], %114 {strides = array<i32>} : memref<1x8x16x128xf32, #tpu.memory_space<vmem>>, vector<1x8x1x128xf32>,
    %c0_134 = arith.constant 0 : index
    %c9 = arith.constant 9 : index
    %c0_135 = arith.constant 0 : index
    %115 = vector.load %arg6[%c0_134, %c9, %c0_135] : memref<36x16x128xf32, #tpu.memory_space<vmem>>, vector<36x1x128xf32>
    %116 = vector.shape_cast %115 : vector<36x1x128xf32> to vector<36x128xf32>
    %cst_136 = arith.constant dense<0.000000e+00> : vector<8x128xf32>
    %117 = tpu.matmul %23, %116, %cst_136 {dimension_numbers = #tpu.dot_dimension_numbers<[1], [0], [0], [1], [0, 0, 1, 1], [], []>} : vector<8x36xf32>, vector<36x128xf32>, vector<8x128xf32> -> vector<8x128xf32>
    %118 = vector.broadcast %24 : vector<8x1xf32> to vector<8x128xf32>
    %119 = arith.addf %117, %118 : vector<8x128xf32>
    %cst_137 = arith.constant 0.000000e+00 : f32
    %120 = vector.broadcast %cst_137 : f32 to vector<8x128xf32>
    %121 = arith.maximumf %119, %120 : vector<8x128xf32>
    %c0_138 = arith.constant 0 : index
    %c0_139 = arith.constant 0 : index
    %c9_140 = arith.constant 9 : index
    %c0_141 = arith.constant 0 : index
    %122 = vector.load %arg4[%c0_138, %c0_139, %c9_140, %c0_141] : memref<1x8x16x128xf32, #tpu.memory_space<vmem>>, vector<1x8x1x128xf32>
    %123 = vector.shape_cast %122 : vector<1x8x1x128xf32> to vector<8x128xf32>
    %124 = vector.shape_cast %121 : vector<8x128xf32> to vector<1x8x1x128xf32>
    tpu.vector_store %arg4[%c0_138, %c0_139, %c9_140, %c0_141], %124 {strides = array<i32>} : memref<1x8x16x128xf32, #tpu.memory_space<vmem>>, vector<1x8x1x128xf32>,
    %c0_142 = arith.constant 0 : index
    %c10 = arith.constant 10 : index
    %c0_143 = arith.constant 0 : index
    %125 = vector.load %arg6[%c0_142, %c10, %c0_143] : memref<36x16x128xf32, #tpu.memory_space<vmem>>, vector<36x1x128xf32>
    %126 = vector.shape_cast %125 : vector<36x1x128xf32> to vector<36x128xf32>
    %cst_144 = arith.constant dense<0.000000e+00> : vector<8x128xf32>
    %127 = tpu.matmul %23, %126, %cst_144 {dimension_numbers = #tpu.dot_dimension_numbers<[1], [0], [0], [1], [0, 0, 1, 1], [], []>} : vector<8x36xf32>, vector<36x128xf32>, vector<8x128xf32> -> vector<8x128xf32>
    %128 = vector.broadcast %24 : vector<8x1xf32> to vector<8x128xf32>
    %129 = arith.addf %127, %128 : vector<8x128xf32>
    %cst_145 = arith.constant 0.000000e+00 : f32
    %130 = vector.broadcast %cst_145 : f32 to vector<8x128xf32>
    %131 = arith.maximumf %129, %130 : vector<8x128xf32>
    %c0_146 = arith.constant 0 : index
    %c0_147 = arith.constant 0 : index
    %c10_148 = arith.constant 10 : index
    %c0_149 = arith.constant 0 : index
    %132 = vector.load %arg4[%c0_146, %c0_147, %c10_148, %c0_149] : memref<1x8x16x128xf32, #tpu.memory_space<vmem>>, vector<1x8x1x128xf32>
    %133 = vector.shape_cast %132 : vector<1x8x1x128xf32> to vector<8x128xf32>
    %134 = vector.shape_cast %131 : vector<8x128xf32> to vector<1x8x1x128xf32>
    tpu.vector_store %arg4[%c0_146, %c0_147, %c10_148, %c0_149], %134 {strides = array<i32>} : memref<1x8x16x128xf32, #tpu.memory_space<vmem>>, vector<1x8x1x128xf32>,
    %c0_150 = arith.constant 0 : index
    %c11 = arith.constant 11 : index
    %c0_151 = arith.constant 0 : index
    %135 = vector.load %arg6[%c0_150, %c11, %c0_151] : memref<36x16x128xf32, #tpu.memory_space<vmem>>, vector<36x1x128xf32>
    %136 = vector.shape_cast %135 : vector<36x1x128xf32> to vector<36x128xf32>
    %cst_152 = arith.constant dense<0.000000e+00> : vector<8x128xf32>
    %137 = tpu.matmul %23, %136, %cst_152 {dimension_numbers = #tpu.dot_dimension_numbers<[1], [0], [0], [1], [0, 0, 1, 1], [], []>} : vector<8x36xf32>, vector<36x128xf32>, vector<8x128xf32> -> vector<8x128xf32>
    %138 = vector.broadcast %24 : vector<8x1xf32> to vector<8x128xf32>
    %139 = arith.addf %137, %138 : vector<8x128xf32>
    %cst_153 = arith.constant 0.000000e+00 : f32
    %140 = vector.broadcast %cst_153 : f32 to vector<8x128xf32>
    %141 = arith.maximumf %139, %140 : vector<8x128xf32>
    %c0_154 = arith.constant 0 : index
    %c0_155 = arith.constant 0 : index
    %c11_156 = arith.constant 11 : index
    %c0_157 = arith.constant 0 : index
    %142 = vector.load %arg4[%c0_154, %c0_155, %c11_156, %c0_157] : memref<1x8x16x128xf32, #tpu.memory_space<vmem>>, vector<1x8x1x128xf32>
    %143 = vector.shape_cast %142 : vector<1x8x1x128xf32> to vector<8x128xf32>
    %144 = vector.shape_cast %141 : vector<8x128xf32> to vector<1x8x1x128xf32>
    tpu.vector_store %arg4[%c0_154, %c0_155, %c11_156, %c0_157], %144 {strides = array<i32>} : memref<1x8x16x128xf32, #tpu.memory_space<vmem>>, vector<1x8x1x128xf32>,
    %c0_158 = arith.constant 0 : index
    %c12_159 = arith.constant 12 : index
    %c0_160 = arith.constant 0 : index
    %145 = vector.load %arg6[%c0_158, %c12_159, %c0_160] : memref<36x16x128xf32, #tpu.memory_space<vmem>>, vector<36x1x128xf32>
    %146 = vector.shape_cast %145 : vector<36x1x128xf32> to vector<36x128xf32>
    %cst_161 = arith.constant dense<0.000000e+00> : vector<8x128xf32>
    %147 = tpu.matmul %23, %146, %cst_161 {dimension_numbers = #tpu.dot_dimension_numbers<[1], [0], [0], [1], [0, 0, 1, 1], [], []>} : vector<8x36xf32>, vector<36x128xf32>, vector<8x128xf32> -> vector<8x128xf32>
    %148 = vector.broadcast %24 : vector<8x1xf32> to vector<8x128xf32>
    %149 = arith.addf %147, %148 : vector<8x128xf32>
    %cst_162 = arith.constant 0.000000e+00 : f32
    %150 = vector.broadcast %cst_162 : f32 to vector<8x128xf32>
    %151 = arith.maximumf %149, %150 : vector<8x128xf32>
    %c0_163 = arith.constant 0 : index
    %c0_164 = arith.constant 0 : index
    %c12_165 = arith.constant 12 : index
    %c0_166 = arith.constant 0 : index
    %152 = vector.load %arg4[%c0_163, %c0_164, %c12_165, %c0_166] : memref<1x8x16x128xf32, #tpu.memory_space<vmem>>, vector<1x8x1x128xf32>
    %153 = vector.shape_cast %152 : vector<1x8x1x128xf32> to vector<8x128xf32>
    %154 = vector.shape_cast %151 : vector<8x128xf32> to vector<1x8x1x128xf32>
    tpu.vector_store %arg4[%c0_163, %c0_164, %c12_165, %c0_166], %154 {strides = array<i32>} : memref<1x8x16x128xf32, #tpu.memory_space<vmem>>, vector<1x8x1x128xf32>,
    %c0_167 = arith.constant 0 : index
    %c13 = arith.constant 13 : index
    %c0_168 = arith.constant 0 : index
    %155 = vector.load %arg6[%c0_167, %c13, %c0_168] : memref<36x16x128xf32, #tpu.memory_space<vmem>>, vector<36x1x128xf32>
    %156 = vector.shape_cast %155 : vector<36x1x128xf32> to vector<36x128xf32>
    %cst_169 = arith.constant dense<0.000000e+00> : vector<8x128xf32>
    %157 = tpu.matmul %23, %156, %cst_169 {dimension_numbers = #tpu.dot_dimension_numbers<[1], [0], [0], [1], [0, 0, 1, 1], [], []>} : vector<8x36xf32>, vector<36x128xf32>, vector<8x128xf32> -> vector<8x128xf32>
    %158 = vector.broadcast %24 : vector<8x1xf32> to vector<8x128xf32>
    %159 = arith.addf %157, %158 : vector<8x128xf32>
    %cst_170 = arith.constant 0.000000e+00 : f32
    %160 = vector.broadcast %cst_170 : f32 to vector<8x128xf32>
    %161 = arith.maximumf %159, %160 : vector<8x128xf32>
    %c0_171 = arith.constant 0 : index
    %c0_172 = arith.constant 0 : index
    %c13_173 = arith.constant 13 : index
    %c0_174 = arith.constant 0 : index
    %162 = vector.load %arg4[%c0_171, %c0_172, %c13_173, %c0_174] : memref<1x8x16x128xf32, #tpu.memory_space<vmem>>, vector<1x8x1x128xf32>
    %163 = vector.shape_cast %162 : vector<1x8x1x128xf32> to vector<8x128xf32>
    %164 = vector.shape_cast %161 : vector<8x128xf32> to vector<1x8x1x128xf32>
    tpu.vector_store %arg4[%c0_171, %c0_172, %c13_173, %c0_174], %164 {strides = array<i32>} : memref<1x8x16x128xf32, #tpu.memory_space<vmem>>, vector<1x8x1x128xf32>,
    %c0_175 = arith.constant 0 : index
    %c14 = arith.constant 14 : index
    %c0_176 = arith.constant 0 : index
    %165 = vector.load %arg6[%c0_175, %c14, %c0_176] : memref<36x16x128xf32, #tpu.memory_space<vmem>>, vector<36x1x128xf32>
    %166 = vector.shape_cast %165 : vector<36x1x128xf32> to vector<36x128xf32>
    %cst_177 = arith.constant dense<0.000000e+00> : vector<8x128xf32>
    %167 = tpu.matmul %23, %166, %cst_177 {dimension_numbers = #tpu.dot_dimension_numbers<[1], [0], [0], [1], [0, 0, 1, 1], [], []>} : vector<8x36xf32>, vector<36x128xf32>, vector<8x128xf32> -> vector<8x128xf32>
    %168 = vector.broadcast %24 : vector<8x1xf32> to vector<8x128xf32>
    %169 = arith.addf %167, %168 : vector<8x128xf32>
    %cst_178 = arith.constant 0.000000e+00 : f32
    %170 = vector.broadcast %cst_178 : f32 to vector<8x128xf32>
    %171 = arith.maximumf %169, %170 : vector<8x128xf32>
    %c0_179 = arith.constant 0 : index
    %c0_180 = arith.constant 0 : index
    %c14_181 = arith.constant 14 : index
    %c0_182 = arith.constant 0 : index
    %172 = vector.load %arg4[%c0_179, %c0_180, %c14_181, %c0_182] : memref<1x8x16x128xf32, #tpu.memory_space<vmem>>, vector<1x8x1x128xf32>
    %173 = vector.shape_cast %172 : vector<1x8x1x128xf32> to vector<8x128xf32>
    %174 = vector.shape_cast %171 : vector<8x128xf32> to vector<1x8x1x128xf32>
    tpu.vector_store %arg4[%c0_179, %c0_180, %c14_181, %c0_182], %174 {strides = array<i32>} : memref<1x8x16x128xf32, #tpu.memory_space<vmem>>, vector<1x8x1x128xf32>,
    %c0_183 = arith.constant 0 : index
    %c15 = arith.constant 15 : index
    %c0_184 = arith.constant 0 : index
    %175 = vector.load %arg6[%c0_183, %c15, %c0_184] : memref<36x16x128xf32, #tpu.memory_space<vmem>>, vector<36x1x128xf32>
    %176 = vector.shape_cast %175 : vector<36x1x128xf32> to vector<36x128xf32>
    %cst_185 = arith.constant dense<0.000000e+00> : vector<8x128xf32>
    %177 = tpu.matmul %23, %176, %cst_185 {dimension_numbers = #tpu.dot_dimension_numbers<[1], [0], [0], [1], [0, 0, 1, 1], [], []>} : vector<8x36xf32>, vector<36x128xf32>, vector<8x128xf32> -> vector<8x128xf32>
    %178 = vector.broadcast %24 : vector<8x1xf32> to vector<8x128xf32>
    %179 = arith.addf %177, %178 : vector<8x128xf32>
    %cst_186 = arith.constant 0.000000e+00 : f32
    %180 = vector.broadcast %cst_186 : f32 to vector<8x128xf32>
    %181 = arith.maximumf %179, %180 : vector<8x128xf32>
    %c0_187 = arith.constant 0 : index
    %c0_188 = arith.constant 0 : index
    %c15_189 = arith.constant 15 : index
    %c0_190 = arith.constant 0 : index
    %182 = vector.load %arg4[%c0_187, %c0_188, %c15_189, %c0_190] : memref<1x8x16x128xf32, #tpu.memory_space<vmem>>, vector<1x8x1x128xf32>
    %183 = vector.shape_cast %182 : vector<1x8x1x128xf32> to vector<8x128xf32>
    %184 = vector.shape_cast %181 : vector<8x128xf32> to vector<1x8x1x128xf32>
    tpu.vector_store %arg4[%c0_187, %c0_188, %c15_189, %c0_190], %184 {strides = array<i32>} : memref<1x8x16x128xf32, #tpu.memory_space<vmem>>, vector<1x8x1x128xf32>,
    return
  }
  func.func @transform_0(%arg0: i32) -> (i32, i32, i32, i32) {
    %c0_i32 = arith.constant 0 : i32
    %c0_i32_0 = arith.constant 0 : i32
    %c0_i32_1 = arith.constant 0 : i32
    %c0_i32_2 = arith.constant 0 : i32
    return %arg0, %c0_i32, %c0_i32_0, %c0_i32_1 : i32, i32, i32, i32
  }
  func.func @transform_1(%arg0: i32) -> (i32, i32) {
    %c0_i32 = arith.constant 0 : i32
    %c0_i32_0 = arith.constant 0 : i32
    %c0_i32_1 = arith.constant 0 : i32
    return %c0_i32, %c0_i32_0 : i32, i32
  }
  func.func @transform_2(%arg0: i32) -> (i32, i32) {
    %c0_i32 = arith.constant 0 : i32
    %c0_i32_0 = arith.constant 0 : i32
    %c0_i32_1 = arith.constant 0 : i32
    return %c0_i32, %c0_i32_0 : i32, i32
  }
  func.func @transform_3(%arg0: i32) -> (i32, i32, i32, i32) {
    %c0_i32 = arith.constant 0 : i32
    %c0_i32_0 = arith.constant 0 : i32
    %c0_i32_1 = arith.constant 0 : i32
    %c0_i32_2 = arith.constant 0 : i32
    return %arg0, %c0_i32, %c0_i32_0, %c0_i32_1 : i32, i32, i32, i32
  }
}

</mosaic_0001>

<bundles_post_ra>
// kernel: eeg_conv_forward.1
= control target key start
LH: loop header
LB: loop body
LE: loop exit
PB: predicated region body
PF: predicated region fallthrough
CT: control target
= control target key end

     0   :  { %8 = vsyncpa [#allocation5], 0  ;;  %s9238_s0 = inlined_call_operand.vmem [shape: f32[2,4,16,128], index: 0, kind: input, shape index: {}]   ;;  %s9239_s1 = inlined_call_operand.vmem [shape: f32[8,36], index: 1, kind: input, shape index: {}]   ;;  %s9240_s2 = inlined_call_operand.vmem [shape: f32[8,1], index: 2, kind: input, shape index: {}]   ;;  %s9241_s3 = inlined_call_operand.hbm [shape: f32[2,8,16,128], index: 3, kind: output, shape index: {}]  }
   0x1   :  { %10 = vsyncpa [#allocation5 + $0x1], 0  ;;  %s6259_s12 = smov 0   ;;  %s6261_s13 = smov 0  }
   0x2   :  { %s6263_s14 = smov 0   ;;  %s6265_s15 = smov 0  }
   0x3 LB: > { %s6280_s16 = sadd.s32 4294967295, %s6226_s15   ;;  %s5595_s17 = sadd.s32 4294967294, %s6226_s15   ;;  %s6226_s15 = sphi %s6265_s15, %s9733_s15   ;;  %s6222_s14 = sphi %s6263_s14, %s9732_s14   ;;  %s6218_s13 = sphi %s6261_s13, %s9731_s13   ;;  %s6214_s12 = sphi %s6259_s12, %s9730_s12  }
   0x4   : > { %s6284_s18 = sadd.s32 1, %s6226_s15   ;;  %s91_s19 = sadd.s32 1, %s6222_s14 }
   0x5   : > { %s88_s20 = ssub.s32 %s6226_s15, %s6284_s18  ;;  %p101_p0 = scmp.ne.s32.totalorder %s6222_s14, %s6218_s13 }
   0x6   : > { %p89_p1 = scmp.eq.s32.totalorder %s88_s20, 0  ;;  %p102_p2 = scmp.eq.s32.totalorder %s6280_s16, 1 }
   0x7   : > { %p107_p3 = scmp.ne.s32.totalorder %s6218_s13, %s6214_s12  ;;  %p108_p4 = scmp.eq.s32.totalorder %s5595_s17, 1 }
   0x8   : > { %s6295_s21 = scalar_select %p89_p1, %s6222_s14, %s91_s19  }
   0x9   : > { %p6297_p5 = por %p102_p2, %p101_p0  ;;  %p6301_p6 = por %p108_p4, %p107_p3 }
   0xa   : > { %p5598_p7 = scmp.ge.s32.totalorder %s6226_s15, 1  ;;  %p140_p8 = scmp.lt.s32.totalorder %s6226_s15, 3 }
   0xc   : > { %p141_p9 = pnand %p5598_p7, %p140_p8 }
   0xe   : > { %144 = sbr.rel (%p141_p9) target bundleno = 828 (0x33c), region = 32 }
  0x15   : > { %p164_p10 = scmp.lt.s32.totalorder %s6280_s16, 1  ;;  %vm170_vm0 = vcmask 15360   ;;  %v9245_v0 = vmov 0.0   ;;  %s6229_s29 = smov 1   ;;  %vm211_vm1 = vcmask 1040384   ;;  %vm175_vm2 = vcmask 9216  }
  0x16   : > { %177 = vst [vmem:[#allocation2 + $0x30] sm:$0xff] %v9245_v0  ;;  %178 = vst.msk [vmem:[#allocation2 + $0x38] sm:$0xff] %vm170_vm0, %v9245_v0  ;;  %vm260_vm3 = vcmask 1047561   ;;  %vm262_vm4 = vcmask 7169   ;;  %vm264_vm5 = vcmask 1047560   ;;  %vm266_vm6 = vcmask 7168  }
  0x17   : > { %169 = vst [vmem:[#allocation2] sm:$0xff] %v9245_v0  ;;  %171 = vst.msk [vmem:[#allocation2 + $0x8] sm:$0xff] %vm170_vm0, %v9245_v0  ;;  %s165_s24 = scalar_select %p164_p10, %s6280_s16, 1  ;;  %vm268_vm7 = vcmask 1040392   ;;  %vm270_vm8 = vcmask 0   ;;  %vm6233_vm9 = vmmov 0  }
  0x18   : > { %172 = vst [vmem:[#allocation2 + $0x10] sm:$0xff] %v9245_v0  ;;  %173 = vst.msk [vmem:[#allocation2 + $0x18] sm:$0xff] %vm170_vm0, %v9245_v0  ;;  %s6230_s30 = smov 126   ;;  %s6231_s4 = smov 127   ;;  %5811 = vmatprep.mubr.msk.f32.mxu0 %vm6233_vm9, %v9245_v0  ;;  %5824 = vmatprep.mubr.msk.f32.mxu1 %vm6233_vm9, %v9245_v0  ;;  %vm1148_vm10 = vcmask 1041409   ;;  %vm1151_vm11 = vcmask 1042434  }
  0x19   : > { %174 = vst [vmem:[#allocation2 + $0x20] sm:$0x3] %v9245_v0  ;;  %179 = vst [vmem:[#allocation2 + $0x40] sm:$0xff] %v9245_v0  ;;  %s5703_s25 = sshll.u32 %s165_s24, 6  ;;  %vm460_vm12 = vcmask 1031168   ;;  %vm1154_vm13 = vcmask 1043459  }
  0x1a   : > { %180 = vst.msk [vmem:[#allocation2 + $0x48] sm:$0xff] %vm170_vm0, %v9245_v0  ;;  %181 = vst [vmem:[#allocation2 + $0x50] sm:$0x3] %v9245_v0  ;;  %s168_s28 = scalar_lea.vmem %s9238_s0, %s5703_s25  ;;  %vm370_vm14 = vcmask 1039360   ;;  %vm1157_vm15 = vcmask 1044484   ;;  %s161_s11 = sand.u32 1, %s6218_s13  }
  0x1b   : > { %183 = vst [vmem:[#allocation2 + $0x60] sm:$0xff] %v9245_v0  ;;  %184 = vst.msk [vmem:[#allocation2 + $0x68] sm:$0xff] %vm170_vm0, %v9245_v0  ;;  %v197_v1 = vld [vmem:[%s168_s28 + $0x10] sm:$0xff]  ;;  %v195_v2 = vld [vmem:[%s168_s28] sm:$0xff]  ;;  %s5599_s17 = sshll.u32 %s161_s11, 7  ;;  %s5704_s20 = sshll.u32 %s6280_s16, 11 }
  0x1c   : > { %185 = vst [vmem:[#allocation2 + $0x70] sm:$0xff] %v9245_v0  ;;  %186 = vst.msk [vmem:[#allocation2 + $0x78] sm:$0xff] %vm170_vm0, %v9245_v0  ;;  %v199_v3 = vld [vmem:[%s168_s28 + $0x20] sm:$0xff]  ;;  %v215_v4 = vrot.slane %v197_v1, 7  ;;  %v212_v5 = vrot.slane %v195_v2, 7  ;;  %v201_v6 = vld [vmem:[%s168_s28 + $0x30] sm:$0xff]  ;;  %s9187_s26 = scalar_lea.hbm %s9241_s3, %s5704_s20 }
  0x1d   : > { %187 = vst [vmem:[#allocation2 + $0x80] sm:$0x3] %v9245_v0  ;;  %189 = vst [vmem:[#allocation2 + $0x90] sm:$0xff] %v9245_v0  ;;  %v198_v7 = vld [vmem:[%s168_s28 + $0x18] sm:$0xff]  ;;  %v200_v8 = vld [vmem:[%s168_s28 + $0x28] sm:$0xff]  ;;  %v218_v9 = vrot.slane %v199_v3, 7 }
  0x1e   : > { %190 = vst.msk [vmem:[#allocation2 + $0x98] sm:$0xff] %vm170_vm0, %v9245_v0  ;;  %191 = vst [vmem:[#allocation2 + $0xa0] sm:$0xff] %v9245_v0  ;;  %230 = vrot.lane.b32.xlu0 %v215_v4, %s6229_s29  ;;  %224 = vrot.lane.b32.xlu1 %v212_v5, %s6229_s29  ;;  %v221_v10 = vrot.slane %v201_v6, 7  ;;  %v216_v11 = vrot.slane %v198_v7, 7  ;;  %v219_v12 = vrot.slane %v200_v8, 7  ;;  %v202_v13 = vld [vmem:[%s168_s28 + $0x38] sm:$0xff] }
  0x1f   : > { %192 = vst.msk [vmem:[#allocation2 + $0xa8] sm:$0xff] %vm170_vm0, %v9245_v0  ;;  %193 = vst [vmem:[#allocation2 + $0xb0] sm:$0x3] %v9245_v0  ;;  %v196_v14 = vld [vmem:[%s168_s28 + $0x8] sm:$0xff]  ;;  %v222_v17 = vrot.slane %v202_v13, 7  ;;  %v9242_v3 = vmov 0.0|0.0  }
  0x20   : > { %v217_v15 = vsel %vm211_vm1, %v215_v4, %v216_v11  ;;  %v220_v16 = vsel %vm211_vm1, %v218_v9, %v219_v12  ;;  %v213_v18 = vrot.slane %v196_v14, 7  ;;  %188 = vst.msk [vmem:[#allocation2 + $0x88] sm:$0x3] %vm175_vm2, %v9245_v0  ;;  %176 = vst.msk [vmem:[#allocation2 + $0x28] sm:$0x3] %vm175_vm2, %v9245_v0  ;;  %6009 = vmatprep.subr.bf16.mxu0 %v9242_v3  ;;  %6015 = vmatprep.subr.bf16.mxu1 %v9242_v3  ;;  %vm1160_vm0 = vcmask 1045509  }
  0x21   : > { %v223_v19 = vsel %vm211_vm1, %v221_v10, %v222_v17  ;;  %182 = vst.msk [vmem:[#allocation2 + $0x58] sm:$0x3] %vm175_vm2, %v9245_v0  ;;  %194 = vst.msk [vmem:[#allocation2 + $0xb8] sm:$0x3] %vm175_vm2, %v9245_v0  ;;  %vm1166_vm2 = vcmask 1047559   ;;  %s8950_s19 = scalar_lea.vmem [#allocation4], %s5599_s17 }
  0x22   : > { %236 = vrot.lane.b32.xlu0 %v218_v9, %s6229_s29  ;;  %242 = vrot.lane.b32.xlu1 %v221_v10, %s6229_s29  ;;  %v214_v20 = vsel %vm211_vm1, %v212_v5, %v213_v18  ;;  %vm1163_vm1 = vcmask 1046534   ;;  %s5533_s24 = sshll.u32 %s8950_s19, 4  ;;  %s9197_s27 = scalar_lea.sflag [#allocation5], %s161_s11  ;;  %s9189_s24 = int_to_ptr.vmem [resolvable:$true] %s5533_s24 }
  0x23   : > { %s6164_s28 = scalar_lea.vmem %s9189_s24, 2048 }
  0x24   : > { %p6165_p11 = scmp.ne.s32.totalorder %s9189_s24, %s6164_s28 }
  0x26   : > { %232 = vrot.lane.b32.xlu0 %v217_v15, %s6229_s29  ;;  %238 = vrot.lane.b32.xlu1 %v220_v16, %s6229_s29  ;;  %p6166_p12 = pnand %p6165_p11, %p6297_p5 }
  0x28   : > { %p6167_p13 = pneg %p6166_p12 }
  0x2a   : > { %244 = vrot.lane.b32.xlu1 %v223_v19, %s6229_s29  ;;  %226 = vrot.lane.b32.xlu0 %v214_v20, %s6229_s29 }
  0x2e   : > { %240 = vrot.lane.b32.xlu1 %v219_v12, %s6229_s29  ;;  %234 = vrot.lane.b32.xlu0 %v216_v11, %s6229_s29 }
  0x32   : > { %246 = vrot.lane.b32.xlu1 %v222_v17, %s6229_s29  ;;  %228 = vrot.lane.b32.xlu0 %v213_v18, %s6229_s29  ;;  %s6236_s29 = smov [#allocation4]  }
  0x90   : > { %v231_v21 = vpop.permute.xlu0 %230  ;;  %v225_v22 = vpop.permute.xlu1 %224 }
  0x91   : > { %272 = vst.msk [vmem:[#allocation2 + $0x30] sm:$0xfe] %vm260_vm3, %v231_v21  ;;  %261 = vst.msk [vmem:[#allocation2] sm:$0xfe] %vm260_vm3, %v225_v22 }
  0x92   : > { %273 = vst.msk [vmem:[#allocation2 + $0x38] sm:$0xfe] %vm262_vm4, %v231_v21  ;;  %263 = vst.msk [vmem:[#allocation2 + $0x8] sm:$0xfe] %vm262_vm4, %v225_v22 }
  0x94   : > { %v237_v23 = vpop.permute.xlu0 %236  ;;  %v243_v24 = vpop.permute.xlu1 %242 }
  0x95   : > { %278 = vst.msk [vmem:[#allocation2 + $0x60] sm:$0xfe] %vm260_vm3, %v237_v23  ;;  %284 = vst.msk [vmem:[#allocation2 + $0x90] sm:$0xfe] %vm260_vm3, %v243_v24  ;;  %vm1224_vm3 = vcmask 1043456  }
  0x96   : > { %279 = vst.msk [vmem:[#allocation2 + $0x68] sm:$0xfe] %vm262_vm4, %v237_v23  ;;  %285 = vst.msk [vmem:[#allocation2 + $0x98] sm:$0xfe] %vm262_vm4, %v243_v24  ;;  %vm1220_vm4 = vcmask 293888  }
  0x98   : > { %v6346_v25 = vld [vmem:[#allocation2 + $0x30] sm:$0xff]  ;;  %v233_v28 = vpop.permute.xlu0 %232  ;;  %v239_v29 = vpop.permute.xlu1 %238  ;;  %v6349_v30 = vld [vmem:[#allocation2] sm:$0xff] }
  0x99   : > { %v489_v26 = vld [vmem:[#allocation2 + $0x30] sm:$0xfe]  ;;  %300 = vst [vmem:[#allocation3 + $0x10] sm:$0xff] %v6346_v25  ;;  %v486_v31 = vld [vmem:[#allocation2] sm:$0xfe]  ;;  %436 = vrot.lane.b32.xlu0 %v6346_v25, %s6230_s30  ;;  %274 = vst.msk [vmem:[#allocation2 + $0x40] sm:$0xff] %vm264_vm5, %v233_v28 }
  0x9a   : > { %v780_v27 = vld [vmem:[#allocation2 + $0x30] sm:$0xfc]  ;;  %502 = vst [vmem:[#allocation3 + $0xcf] sm:$0xfe] %v489_v26  ;;  %v777_v32 = vld [vmem:[#allocation2] sm:$0xfc] }
  0x9b   : > { %793 = vst [vmem:[#allocation3 + $0x18e] sm:$0xfc] %v780_v27  ;;  %275 = vst.msk [vmem:[#allocation2 + $0x48] sm:$0xff] %vm266_vm6, %v233_v28  ;;  %v6358_v33 = vld [vmem:[#allocation2 + $0x38] sm:$0xff]  ;;  %v397_v43 = vld [vmem:[#allocation2 + $0x8] sm:$0xff] }
  0x9c   : > { %280 = vst.msk [vmem:[#allocation2 + $0x70] sm:$0xff] %vm264_vm5, %v239_v29  ;;  %298 = vst [vmem:[#allocation3] sm:$0xff] %v6349_v30  ;;  %438 = vrot.lane.b32.xlu1 %v6358_v33, %s6230_s30  ;;  %v6362_v34 = vld [vmem:[#allocation2 + $0x60] sm:$0xff]  ;;  %v245_v37 = vpop.permute.xlu1 %244  ;;  %v227_v38 = vpop.permute.xlu0 %226  ;;  %v6365_v39 = vld [vmem:[#allocation2 + $0x90] sm:$0xff] }
  0x9d   : > { %281 = vst.msk [vmem:[#allocation2 + $0x78] sm:$0xff] %vm266_vm6, %v239_v29  ;;  %499 = vst [vmem:[#allocation3 + $0xbf] sm:$0xfe] %v486_v31  ;;  %v492_v35 = vld [vmem:[#allocation2 + $0x60] sm:$0xfe]  ;;  %444 = vrot.lane.b32.xlu0 %v6362_v34, %s6230_s30  ;;  %v6374_v42 = vld [vmem:[#allocation2 + $0x68] sm:$0xff] }
  0x9e   : > { %790 = vst [vmem:[#allocation3 + $0x17e] sm:$0xfc] %v777_v32  ;;  %v783_v36 = vld [vmem:[#allocation2 + $0x60] sm:$0xfc]  ;;  %302 = vst [vmem:[#allocation3 + $0x20] sm:$0xff] %v6362_v34  ;;  %v409_v46 = vld [vmem:[#allocation2 + $0x98] sm:$0xff] }
  0x9f   : > { %505 = vst [vmem:[#allocation3 + $0xdf] sm:$0xfe] %v492_v35  ;;  %796 = vst [vmem:[#allocation3 + $0x19e] sm:$0xfc] %v783_v36  ;;  %v495_v40 = vld [vmem:[#allocation2 + $0x90] sm:$0xfe] }
  0xa0   : > { %v786_v41 = vld [vmem:[#allocation2 + $0x90] sm:$0xfc]  ;;  %286 = vst.msk [vmem:[#allocation2 + $0xa0] sm:$0xff] %vm264_vm5, %v245_v37  ;;  %265 = vst.msk [vmem:[#allocation2 + $0x10] sm:$0xff] %vm264_vm5, %v227_v38  ;;  %446 = vrot.lane.b32.xlu1 %v6374_v42, %s6230_s30  ;;  %v241_v44 = vpop.permute.xlu1 %240  ;;  %v235_v45 = vpop.permute.xlu0 %234  ;;  %v6391_v49 = vld [vmem:[#allocation2 + $0x40] sm:$0xff] }
  0xa1   : > { %287 = vst.msk [vmem:[#allocation2 + $0xa8] sm:$0xff] %vm266_vm6, %v245_v37  ;;  %267 = vst.msk [vmem:[#allocation2 + $0x18] sm:$0xff] %vm266_vm6, %v227_v38  ;;  %428 = vrot.lane.b32.xlu0 %v6349_v30, %s6230_s30  ;;  %v517_v61 = vld [vmem:[#allocation2 + $0x30] sm:$0xfe]  ;;  %v518_v62 = vld [vmem:[#allocation2 + $0x38] sm:$0xfe] }
  0xa2   : > { %304 = vst [vmem:[#allocation3 + $0x30] sm:$0xff] %v6365_v39  ;;  %508 = vst [vmem:[#allocation3 + $0xef] sm:$0xfe] %v495_v40  ;;  %v523_v63 = vld [vmem:[#allocation2 + $0x60] sm:$0xfe] }
  0xa3   : > { %799 = vst [vmem:[#allocation3 + $0x1ae] sm:$0xfc] %v786_v41  ;;  %282 = vst.msk [vmem:[#allocation2 + $0x80] sm:$0x1] %vm268_vm7, %v241_v44  ;;  %v6397_v50 = vld [vmem:[#allocation2 + $0x70] sm:$0xff] }
  0xa4   : > { %283 = vst.msk [vmem:[#allocation2 + $0x88] sm:$0x1] %vm270_vm8, %v241_v44  ;;  %277 = vst.msk [vmem:[#allocation2 + $0x58] sm:$0x1] %vm270_vm8, %v235_v45  ;;  %430 = vrot.lane.b32.xlu1 %v397_v43, %s6230_s30  ;;  %v247_v47 = vpop.permute.xlu1 %246  ;;  %v229_v48 = vpop.permute.xlu0 %228  ;;  %v524_v1 = vld [vmem:[#allocation2 + $0x68] sm:$0xfe] }
  0xa5   : > { %276 = vst.msk [vmem:[#allocation2 + $0x50] sm:$0x1] %vm268_vm7, %v235_v45  ;;  %452 = vrot.lane.b32.xlu0 %v6365_v39, %s6230_s30  ;;  %288 = vst.msk [vmem:[#allocation2 + $0xb0] sm:$0x1] %vm268_vm7, %v247_v47  ;;  %v511_v2 = vld [vmem:[#allocation2] sm:$0xfe] }
  0xa6   : > { %289 = vst.msk [vmem:[#allocation2 + $0xb8] sm:$0x1] %vm270_vm8, %v247_v47  ;;  %271 = vst.msk [vmem:[#allocation2 + $0x28] sm:$0x1] %vm270_vm8, %v229_v48  ;;  %v512_v4 = vld [vmem:[#allocation2 + $0x8] sm:$0xfe] }
  0xa7   : > { %269 = vst.msk [vmem:[#allocation2 + $0x20] sm:$0x1] %vm268_vm7, %v229_v48  ;;  %301 = vst [vmem:[#allocation3 + $0x18] sm:$0xff] %v6391_v49  ;;  %v6402_v51 = vld [vmem:[#allocation2 + $0xa0] sm:$0xff]  ;;  %v6404_v52 = vld [vmem:[#allocation2 + $0x10] sm:$0xff] }
  0xa8   : > { %454 = vrot.lane.b32.xlu1 %v409_v46, %s6230_s30  ;;  %503 = vst [vmem:[#allocation3 + $0xd7] sm:$0xff] %v6391_v49  ;;  %794 = vst [vmem:[#allocation3 + $0x196] sm:$0xff] %v6391_v49  ;;  %v529_v5 = vld [vmem:[#allocation2 + $0x90] sm:$0xfe]  ;;  %v530_v6 = vld [vmem:[#allocation2 + $0x98] sm:$0xfe] }
  0xa9   : > { %303 = vst [vmem:[#allocation3 + $0x28] sm:$0xff] %v6397_v50  ;;  %506 = vst [vmem:[#allocation3 + $0xe7] sm:$0xff] %v6397_v50  ;;  %338 = vrot.lane.b32.xlu0 %v6349_v30, %s6231_s4  ;;  %v644_v7 = vld [vmem:[#allocation2] sm:$0xfe]  ;;  %v645_v8 = vld [vmem:[#allocation2 + $0x8] sm:$0xfe] }
  0xaa   : > { %797 = vst [vmem:[#allocation3 + $0x1a6] sm:$0xff] %v6397_v50  ;;  %9334 = vst [vmem:[#allocation7_spill] sm:$0xff] %v6402_v51  ;;  %v494_v53 = vld [vmem:[#allocation2 + $0x80] sm:$0x1]  ;;  %v802_v9 = vld [vmem:[#allocation2] sm:$0xfc] }
  0xab   : > { %305 = vst [vmem:[#allocation3 + $0x38] sm:$0xff] %v6402_v51  ;;  %509 = vst [vmem:[#allocation3 + $0xf7] sm:$0xff] %v6402_v51  ;;  %v785_v54 = vld [vmem:[#allocation2 + $0x80] sm:$0x3]  ;;  %v803_v10 = vld [vmem:[#allocation2 + $0x8] sm:$0xfc] }
  0xac   : > { %800 = vst [vmem:[#allocation3 + $0x1b6] sm:$0xff] %v6402_v51  ;;  %299 = vst [vmem:[#allocation3 + $0x8] sm:$0xff] %v6404_v52  ;;  %v491_v55 = vld [vmem:[#allocation2 + $0x50] sm:$0x1]  ;;  %340 = vrot.lane.b32.xlu1 %v397_v43, %s6231_s4  ;;  %v651_v11 = vld [vmem:[#allocation2 + $0x38] sm:$0xfe] }
  0xad   : > { %500 = vst [vmem:[#allocation3 + $0xc7] sm:$0xff] %v6404_v52  ;;  %791 = vst [vmem:[#allocation3 + $0x186] sm:$0xff] %v6404_v52  ;;  %v782_v56 = vld [vmem:[#allocation2 + $0x50] sm:$0x3]  ;;  %346 = vrot.lane.b32.xlu0 %v6346_v25, %s6231_s4  ;;  %v809_v13 = vld [vmem:[#allocation2 + $0x38] sm:$0xfc] }
  0xae   : > { %507 = vst [vmem:[#allocation3 + $0xef] sm:$0x1] %v494_v53  ;;  %798 = vst [vmem:[#allocation3 + $0x1ae] sm:$0x3] %v785_v54  ;;  %v497_v57 = vld [vmem:[#allocation2 + $0xb0] sm:$0x1] }
  0xaf   : > { %504 = vst [vmem:[#allocation3 + $0xdf] sm:$0x1] %v491_v55  ;;  %795 = vst [vmem:[#allocation3 + $0x19e] sm:$0x3] %v782_v56  ;;  %v788_v58 = vld [vmem:[#allocation2 + $0xb0] sm:$0x3] }
  0xb0   : > { %v488_v59 = vld [vmem:[#allocation2 + $0x20] sm:$0x1]  ;;  %510 = vst [vmem:[#allocation3 + $0xff] sm:$0x1] %v497_v57  ;;  %801 = vst [vmem:[#allocation3 + $0x1be] sm:$0x3] %v788_v58  ;;  %348 = vrot.lane.b32.xlu1 %v6358_v33, %s6231_s4 }
  0xb1   : > { %501 = vst [vmem:[#allocation3 + $0xcf] sm:$0x1] %v488_v59  ;;  %v779_v60 = vld [vmem:[#allocation2 + $0x20] sm:$0x3]  ;;  %571 = vrot.lane.b32.xlu0 %v517_v61, %s6231_s4  ;;  %v650_v12 = vld [vmem:[#allocation2 + $0x30] sm:$0xfe] }
  0xb2   : > { %792 = vst [vmem:[#allocation3 + $0x18e] sm:$0x3] %v779_v60  ;;  %v808_v14 = vld [vmem:[#allocation2 + $0x30] sm:$0xfc]  ;;  %v656_v15 = vld [vmem:[#allocation2 + $0x60] sm:$0xfe] }
  0xb3   : > { %v657_v16 = vld [vmem:[#allocation2 + $0x68] sm:$0xfe]  ;;  %v814_v17 = vld [vmem:[#allocation2 + $0x60] sm:$0xfc]  ;;  %v6447_v18 = vld [vmem:[#allocation3 + $0x10] sm:$0x1] }
  0xb4   : > { %573 = vrot.lane.b32.xlu1 %v518_v62, %s6231_s4  ;;  %v6449_v19 = vld [vmem:[#allocation3 + $0x20] sm:$0x1]  ;;  %v815_v20 = vld [vmem:[#allocation2 + $0x68] sm:$0xfc]  ;;  %v662_v21 = vld [vmem:[#allocation2 + $0x90] sm:$0xfe] }
  0xb5   : > { %354 = vrot.lane.b32.xlu0 %v6362_v34, %s6231_s4  ;;  %v6451_v22 = vld [vmem:[#allocation3 + $0x30] sm:$0x1]  ;;  %v6454_v23 = vld [vmem:[#allocation3 + $0xc0] sm:$0x1]  ;;  %v663_v26 = vld [vmem:[#allocation2 + $0x98] sm:$0xfe] }
  0xb6   : > { %9335 = vst [vmem:[#allocation8_spill] sm:$0xff] %v6454_v23  ;;  %v6456_v24 = vld [vmem:[#allocation3 + $0xd0] sm:$0x1]  ;;  %v6458_v25 = vld [vmem:[#allocation3 + $0xe0] sm:$0x1]  ;;  %v6593_v45 = vld [vmem:[#allocation2 + $0x48] sm:$0xff] }
  0xb7   : > { %9336 = vst [vmem:[#allocation9_spill] sm:$0xff] %v6456_v24  ;;  %9337 = vst [vmem:[#allocation10_spill] sm:$0xff] %v6458_v25  ;;  %v6460_v27 = vld [vmem:[#allocation3 + $0xf0] sm:$0x1]  ;;  %v6464_v30 = vld [vmem:[#allocation3 + $0x11] sm:$0x1] }
  0xb8   : > { %356 = vrot.lane.b32.xlu1 %v6374_v42, %s6231_s4  ;;  %9338 = vst [vmem:[#allocation11_spill] sm:$0xff] %v6460_v27  ;;  %v6467_v31 = vld [vmem:[#allocation3 + $0x21] sm:$0x1]  ;;  %v6469_v32 = vld [vmem:[#allocation3 + $0x31] sm:$0x1]  ;;  %v6625_v0 = vld [vmem:[#allocation2 + $0x78] sm:$0xff] }
  0xb9   : > { %583 = vrot.lane.b32.xlu0 %v523_v63, %s6231_s4  ;;  %v6471_v33 = vld [vmem:[#allocation3 + $0xc1] sm:$0x1]  ;;  %v6473_v34 = vld [vmem:[#allocation3 + $0xd1] sm:$0x1]  ;;  %v820_v41 = vld [vmem:[#allocation2 + $0x90] sm:$0xfc] }
  0xba   : > { %9339 = vst [vmem:[#allocation12_spill] sm:$0xff] %v6471_v33  ;;  %9340 = vst [vmem:[#allocation13_spill] sm:$0xff] %v6473_v34  ;;  %v6475_v35 = vld [vmem:[#allocation3 + $0xe1] sm:$0x1]  ;;  %v6477_v36 = vld [vmem:[#allocation3 + $0xf1] sm:$0x1] }
  0xbb   : > { %9341 = vst [vmem:[#allocation14_spill] sm:$0xff] %v6475_v35  ;;  %9342 = vst [vmem:[#allocation15_spill] sm:$0xff] %v6477_v36  ;;  %v941_v55 = vld [vmem:[#allocation2 + $0x30] sm:$0xfc]  ;;  %v6493_v56 = vld [vmem:[#allocation3 + $0x190] sm:$0x1] }
  0xbc   : > { %585 = vrot.lane.b32.xlu1 %v524_v1, %s6231_s4  ;;  %v6495_v57 = vld [vmem:[#allocation3 + $0x1a0] sm:$0x1]  ;;  %v6497_v58 = vld [vmem:[#allocation3 + $0x1b0] sm:$0x1]  ;;  %v6500_v59 = vld [vmem:[#allocation3 + $0x191] sm:$0x1] }
  0xbd   : > { %362 = vrot.lane.b32.xlu0 %v6365_v39, %s6231_s4  ;;  %v6502_v60 = vld [vmem:[#allocation3 + $0x1a1] sm:$0x1]  ;;  %v6504_v61 = vld [vmem:[#allocation3 + $0x1b1] sm:$0x1]  ;;  %v942_v62 = vld [vmem:[#allocation2 + $0x38] sm:$0xfc] }
  0xbe   : > { %v6506_v63 = vld [vmem:[#allocation3 + $0x12] sm:$0x1]  ;;  %v6508_v1 = vld [vmem:[#allocation3 + $0x22] sm:$0x1]  ;;  %v6541_v3 = vld [vmem:[#allocation3 + $0xc3] sm:$0x1] }
  0xbf   : > { %9347 = vst [vmem:[#allocation20_spill] sm:$0xff] %v6541_v3  ;;  %v935_v54 = vld [vmem:[#allocation2] sm:$0xfc]  ;;  %v6543_v42 = vld [vmem:[#allocation3 + $0xd3] sm:$0x1]  ;;  %v6685_v35 = vld [vmem:[#allocation2 + $0xa8] sm:$0xff] }
  0xc0   : > { %364 = vrot.lane.b32.xlu1 %v409_v46, %s6231_s4  ;;  %v821_v46 = vld [vmem:[#allocation2 + $0x98] sm:$0xfc]  ;;  %9348 = vst [vmem:[#allocation21_spill] sm:$0xff] %v6543_v42  ;;  %v6545_v53 = vld [vmem:[#allocation3 + $0xe3] sm:$0x1]  ;;  %9371 = vst [vmem:[#allocation44_spill] sm:$0xff] %v6685_v35 }
  0xc1   : > { %559 = vrot.lane.b32.xlu0 %v511_v2, %s6231_s4  ;;  %v6510_v2 = vld [vmem:[#allocation3 + $0x32] sm:$0x1]  ;;  %9349 = vst [vmem:[#allocation22_spill] sm:$0xff] %v6545_v53  ;;  %v6554_v40 = vld [vmem:[#allocation3 + $0x1a2] sm:$0x1] }
  0xc2   : > { %v936_v48 = vld [vmem:[#allocation2 + $0x8] sm:$0xfc]  ;;  %v6558_v38 = vld [vmem:[#allocation3 + $0x1b2] sm:$0x1]  ;;  %v6578_v37 = vld [vmem:[#allocation3 + $0x24] sm:$0x1] }
  0xc3   : > { %v6582_v39 = vld [vmem:[#allocation3 + $0x34] sm:$0x1]  ;;  %v6584_v47 = vld [vmem:[#allocation3 + $0xc4] sm:$0x1]  ;;  %v6605_v44 = vld [vmem:[#allocation3 + $0xc5] sm:$0x1] }
  0xc4   : > { %561 = vrot.lane.b32.xlu1 %v512_v4, %s6231_s4  ;;  %v6513_v4 = vld [vmem:[#allocation3 + $0xc2] sm:$0x1]  ;;  %9351 = vst [vmem:[#allocation24_spill] sm:$0xff] %v6584_v47  ;;  %9356 = vst [vmem:[#allocation29_spill] sm:$0xff] %v6605_v44  ;;  %v6619_v43 = vld [vmem:[#allocation3 + $0xe5] sm:$0x1] }
  0xc5   : > { %595 = vrot.lane.b32.xlu0 %v529_v5, %s6231_s4  ;;  %9343 = vst [vmem:[#allocation16_spill] sm:$0xff] %v6513_v4  ;;  %v6515_v5 = vld [vmem:[#allocation3 + $0xd2] sm:$0x1]  ;;  %9358 = vst [vmem:[#allocation31_spill] sm:$0xff] %v6619_v43  ;;  %v6621_v28 = vld [vmem:[#allocation3 + $0xf5] sm:$0x1] }
  0xc6   : > { %9344 = vst [vmem:[#allocation17_spill] sm:$0xff] %v6515_v5  ;;  %9359 = vst [vmem:[#allocation32_spill] sm:$0xff] %v6621_v28  ;;  %v6637_v53 = vld [vmem:[#allocation3 + $0x195] sm:$0x1]  ;;  %v6649_v44 = vld [vmem:[#allocation3 + $0x16] sm:$0x1] }
  0xc7   : > { %v6651_v42 = vld [vmem:[#allocation3 + $0x26] sm:$0x1]  ;;  %v6653_v47 = vld [vmem:[#allocation3 + $0x36] sm:$0x1]  ;;  %v6675_v5 = vld [vmem:[#allocation3 + $0x17] sm:$0x1] }
  0xc8   : > { %597 = vrot.lane.b32.xlu1 %v530_v6, %s6231_s4  ;;  %v6517_v6 = vld [vmem:[#allocation3 + $0xe2] sm:$0x1]  ;;  %9362 = vst [vmem:[#allocation35_spill] sm:$0xff] %v6653_v47  ;;  %v6661_v28 = vld [vmem:[#allocation3 + $0xc6] sm:$0x1]  ;;  %9367 = vst [vmem:[#allocation40_spill] sm:$0xff] %v6675_v5 }
  0xc9   : > { %692 = vrot.lane.b32.xlu0 %v644_v7, %s6230_s30  ;;  %9345 = vst [vmem:[#allocation18_spill] sm:$0xff] %v6517_v6  ;;  %v947_v7 = vld [vmem:[#allocation2 + $0x60] sm:$0xfc]  ;;  %v6655_v6 = vld [vmem:[#allocation2 + $0x18] sm:$0xff]  ;;  %9363 = vst [vmem:[#allocation36_spill] sm:$0xff] %v6661_v28  ;;  %v9395_v5 = vrot.slane %v6493_v56, 7 }
  0xca   : > { %v6665_v43 = vld [vmem:[#allocation3 + $0xd6] sm:$0x1]  ;;  %v6679_v4 = vld [vmem:[#allocation3 + $0x27] sm:$0x1]  ;;  %v6681_v36 = vld [vmem:[#allocation3 + $0x37] sm:$0x1] }
  0xcb   : > { %9364 = vst [vmem:[#allocation37_spill] sm:$0xff] %v6665_v43  ;;  %v6669_v3 = vld [vmem:[#allocation3 + $0xf6] sm:$0x1]  ;;  %9368 = vst [vmem:[#allocation41_spill] sm:$0xff] %v6679_v4  ;;  %v6683_v27 = vld [vmem:[#allocation3 + $0xc7] sm:$0x1] }
  0xcc   : > { %694 = vrot.lane.b32.xlu1 %v645_v8, %s6230_s30  ;;  %v6603_v8 = vld [vmem:[#allocation3 + $0x35] sm:$0x1]  ;;  %9366 = vst [vmem:[#allocation39_spill] sm:$0xff] %v6669_v3  ;;  %9369 = vst [vmem:[#allocation42_spill] sm:$0xff] %v6681_v36  ;;  %v6691_v25 = vld [vmem:[#allocation3 + $0xd7] sm:$0x1] }
  0xcd   : > { %850 = vrot.lane.b32.xlu0 %v802_v9, %s6231_s4  ;;  %9355 = vst [vmem:[#allocation28_spill] sm:$0xff] %v6603_v8  ;;  %9370 = vst [vmem:[#allocation43_spill] sm:$0xff] %v6683_v27  ;;  %v6695_v34 = vld [vmem:[#allocation3 + $0xe7] sm:$0x1]  ;;  %v6697_v24 = vld [vmem:[#allocation3 + $0xf7] sm:$0x1] }
  0xce   : > { %9372 = vst [vmem:[#allocation45_spill] sm:$0xff] %v6691_v25  ;;  %9373 = vst [vmem:[#allocation46_spill] sm:$0xff] %v6695_v34  ;;  %v6699_v33 = vld [vmem:[#allocation3 + $0x196] sm:$0x1]  ;;  %v6705_v3 = vld [vmem:[#allocation3 + $0x1a6] sm:$0x1] }
  0xcf   : > { %9374 = vst [vmem:[#allocation47_spill] sm:$0xff] %v6697_v24  ;;  %9375 = vst [vmem:[#allocation48_spill] sm:$0xff] %v6705_v3  ;;  %v6711_v43 = vld [vmem:[#allocation3 + $0x197] sm:$0x1]  ;;  %v6713_v28 = vld [vmem:[#allocation3 + $0x1a7] sm:$0x1] }
  0xd0   : > { %852 = vrot.lane.b32.xlu1 %v803_v10, %s6231_s4  ;;  %v953_v10 = vld [vmem:[#allocation2 + $0x90] sm:$0xfc]  ;;  %9377 = vst [vmem:[#allocation50_spill] sm:$0xff] %v6711_v43  ;;  %9378 = vst [vmem:[#allocation51_spill] sm:$0xff] %v6713_v28  ;;  %v1070_v23 = vld [vmem:[#allocation3] sm:$0x1] }
  0xd1   : > { %706 = vrot.lane.b32.xlu0 %v651_v11, %s6230_s30  ;;  %v6597_v11 = vld [vmem:[#allocation3 + $0x15] sm:$0x1]  ;;  %v1364_v47 = vld [vmem:[#allocation3 + $0x1] sm:$0x1]  ;;  %v6719_v27 = vld [vmem:[#allocation3 + $0x1b7] sm:$0x1] }
  0xd2   : > { %9379 = vst [vmem:[#allocation52_spill] sm:$0xff] %v6719_v27  ;;  %v6723_v36 = vld [vmem:[#allocation3 + $0x18] sm:$0x1]  ;;  %v6733_v24 = vld [vmem:[#allocation3 + $0xc8] sm:$0x1]  ;;  %v9388_v3 = vrot.slane %v6464_v30, 7 }
  0xd3   : > { %9380 = vst [vmem:[#allocation53_spill] sm:$0xff] %v6723_v36  ;;  %v6727_v4 = vld [vmem:[#allocation3 + $0x38] sm:$0x1]  ;;  %9383 = vst [vmem:[#allocation56_spill] sm:$0xff] %v6733_v24  ;;  %v6739_v25 = vld [vmem:[#allocation3 + $0xe8] sm:$0x1] }
  0xd4   : > { %704 = vrot.lane.b32.xlu1 %v650_v12, %s6230_s30  ;;  %9382 = vst [vmem:[#allocation55_spill] sm:$0xff] %v6727_v4  ;;  %v6737_v34 = vld [vmem:[#allocation3 + $0xd8] sm:$0x1]  ;;  %9385 = vst [vmem:[#allocation58_spill] sm:$0xff] %v6739_v25  ;;  %v6747_v12 = vld [vmem:[#allocation3 + $0x19] sm:$0x1] }
  0xd5   : > { %864 = vrot.lane.b32.xlu0 %v809_v13, %s6231_s4  ;;  %v6567_v13 = vld [vmem:[#allocation3 + $0x1b3] sm:$0x1]  ;;  %9384 = vst [vmem:[#allocation57_spill] sm:$0xff] %v6737_v34  ;;  %v1094_v27 = vld [vmem:[#allocation3 + $0x180] sm:$0x1]  ;;  %v9390_v4 = vrot.slane %v6449_v19, 6 }
  0xd6   : > { %v6759_v9 = vld [vmem:[#allocation3 + $0x39] sm:$0x1]  ;;  %v6761_v29 = vld [vmem:[#allocation3 + $0xc9] sm:$0x1]  ;;  %v9391_v36 = vrot.slane %v6467_v31, 6 }
  0xd7   : > { %9389 = vst [vmem:[#allocation60_spill] sm:$0xff] %v6761_v29  ;;  %v6771_v30 = vld [vmem:[#allocation3 + $0xe9] sm:$0x1]  ;;  %v6803_v19 = vld [vmem:[#allocation3 + $0x199] sm:$0x1] }
  0xd8   : > { %862 = vrot.lane.b32.xlu1 %v808_v14, %s6231_s4  ;;  %v6526_v14 = vld [vmem:[#allocation3 + $0xf2] sm:$0x1]  ;;  %9393 = vst [vmem:[#allocation62_spill] sm:$0xff] %v6771_v30  ;;  %v1665_v31 = vld [vmem:[#allocation3 + $0x182] sm:$0x1] }
  0xd9   : > { %716 = vrot.lane.b32.xlu0 %v656_v15, %s6230_s30  ;;  %9346 = vst [vmem:[#allocation19_spill] sm:$0xff] %v6526_v14  ;;  %v954_v15 = vld [vmem:[#allocation2 + $0x98] sm:$0xfc]  ;;  %v6757_v14 = vld [vmem:[#allocation3 + $0x29] sm:$0x1] }
  0xda   : > { %v6818_v30 = vld [vmem:[#allocation3 + $0x1b9] sm:$0x1]  ;;  %v6820_v25 = vld [vmem:[#allocation3 + $0x1a] sm:$0x1] }
  0xdb   : > { %v6860_v34 = vld [vmem:[#allocation3 + $0xda] sm:$0x1] }
  0xdc   : > { %718 = vrot.lane.b32.xlu1 %v657_v16, %s6230_s30  ;;  %v6599_v16 = vld [vmem:[#allocation3 + $0x25] sm:$0x1]  ;;  %9408 = vst [vmem:[#allocation67_spill] sm:$0xff] %v6860_v34  ;;  %v6932_v34 = vld [vmem:[#allocation3 + $0x1aa] sm:$0x1] }
  0xdd   : > { %874 = vrot.lane.b32.xlu0 %v814_v17, %s6231_s4  ;;  %v948_v17 = vld [vmem:[#allocation2 + $0x68] sm:$0xfc] }
  0xe0   : > { %876 = vrot.lane.b32.xlu1 %v815_v20, %s6231_s4  ;;  %v6560_v20 = vld [vmem:[#allocation3 + $0x193] sm:$0x1] }
  0xe1   : > { %728 = vrot.lane.b32.xlu0 %v662_v21, %s6230_s30  ;;  %v6547_v21 = vld [vmem:[#allocation3 + $0xf3] sm:$0x1] }
  0xe2   : > { %9350 = vst [vmem:[#allocation23_spill] sm:$0xff] %v6547_v21  ;;  %v6623_v21 = vld [vmem:[#allocation3 + $0x194] sm:$0x1] }
  0xe4   : > { %730 = vrot.lane.b32.xlu1 %v663_v26, %s6230_s30  ;;  %v6565_v26 = vld [vmem:[#allocation3 + $0x1a3] sm:$0x1] }
  0xe5   : > { %886 = vrot.lane.b32.xlu0 %v820_v41, %s6231_s4  ;;  %v6576_v41 = vld [vmem:[#allocation3 + $0x14] sm:$0x1] }
  0xe8   : > { %888 = vrot.lane.b32.xlu1 %v821_v46, %s6231_s4  ;;  %v6534_v46 = vld [vmem:[#allocation3 + $0x13] sm:$0x1] }
  0xe9   : > { %995 = vrot.lane.b32.xlu0 %v941_v55, %s6230_s30  ;;  %v6537_v55 = vld [vmem:[#allocation3 + $0x23] sm:$0x1] }
  0xec   : > { %997 = vrot.lane.b32.xlu1 %v942_v62, %s6230_s30  ;;  %v6539_v62 = vld [vmem:[#allocation3 + $0x33] sm:$0x1] }
  0xed   : > { %1007 = vrot.lane.b32.xlu0 %v947_v7, %s6230_s30  ;;  %v6552_v7 = vld [vmem:[#allocation3 + $0x192] sm:$0x1] }
  0xee   : > { %v9413_v24 = vrot.slane %v6552_v7, 7 }
  0xf0   : > { %1009 = vrot.lane.b32.xlu1 %v948_v17, %s6230_s30  ;;  %v6591_v17 = vld [vmem:[#allocation3 + $0xf4] sm:$0x1] }
  0xf1   : > { %983 = vrot.lane.b32.xlu0 %v935_v54, %s6230_s30  ;;  %v6589_v54 = vld [vmem:[#allocation3 + $0xe4] sm:$0x1]  ;;  %9354 = vst [vmem:[#allocation27_spill] sm:$0xff] %v6591_v17 }
  0xf2   : > { %9353 = vst [vmem:[#allocation26_spill] sm:$0xff] %v6589_v54  ;;  %v6631_v17 = vld [vmem:[#allocation3 + $0x1a4] sm:$0x1]  ;;  %v6635_v54 = vld [vmem:[#allocation3 + $0x1b4] sm:$0x1] }
  0xf3   : > { %9360 = vst [vmem:[#allocation33_spill] sm:$0xff] %v6635_v54  ;;  %v1197_v54 = vsel %vm1148_vm10, %v9395_v5, %v1094_v27  ;;  %v9398_v27 = vrot.slane %v6502_v60, 6  ;;  %v9399_v5 = vrot.slane %v6506_v63, 7 }
  0xf4   : > { %985 = vrot.lane.b32.xlu1 %v936_v48, %s6230_s30  ;;  %v6587_v48 = vld [vmem:[#allocation3 + $0xd4] sm:$0x1] }
  0xf5   : > { %1019 = vrot.lane.b32.xlu0 %v953_v10, %s6230_s30  ;;  %9352 = vst [vmem:[#allocation25_spill] sm:$0xff] %v6587_v48  ;;  %v6615_v10 = vld [vmem:[#allocation3 + $0xd5] sm:$0x1]  ;;  %v6639_v48 = vld [vmem:[#allocation3 + $0x1a5] sm:$0x1] }
  0xf6   : > { %9357 = vst [vmem:[#allocation30_spill] sm:$0xff] %v6615_v10  ;;  %v6667_v10 = vld [vmem:[#allocation3 + $0xe6] sm:$0x1] }
  0xf7   : > { %9365 = vst [vmem:[#allocation38_spill] sm:$0xff] %v6667_v10  ;;  %v6709_v10 = vld [vmem:[#allocation3 + $0x1b6] sm:$0x1] }
  0xf8   : > { %1021 = vrot.lane.b32.xlu1 %v954_v15, %s6230_s30  ;;  %v6645_v15 = vld [vmem:[#allocation3 + $0x1b5] sm:$0x1]  ;;  %9376 = vst [vmem:[#allocation49_spill] sm:$0xff] %v6709_v10  ;;  %v9387_v10 = vrot.slane %v6447_v18, 7 }
  0xf9   : > { %575 = vrot.lane.b32.xlu0 %v6391_v49, %s6231_s4  ;;  %9361 = vst [vmem:[#allocation34_spill] sm:$0xff] %v6645_v15  ;;  %v1437_v15 = vsel %vm1148_vm10, %v9388_v3, %v1364_v47  ;;  %v6773_v3 = vld [vmem:[#allocation3 + $0xf9] sm:$0x1] }
  0xfa   : > { %v1149_v43 = vsel %vm1148_vm10, %v9387_v10, %v1070_v23  ;;  %v1439_v18 = vsel %vm1151_vm11, %v9391_v36, %v1437_v15  ;;  %v6769_v23 = vld [vmem:[#allocation3 + $0xd9] sm:$0x1]  ;;  %9394 = vst [vmem:[#allocation63_spill] sm:$0xff] %v6773_v3  ;;  %v1388_v10 = vld [vmem:[#allocation3 + $0x181] sm:$0x1] }
  0xfb   : > { %9392 = vst [vmem:[#allocation61_spill] sm:$0xff] %v6769_v23  ;;  %v6799_v15 = vld [vmem:[#allocation3 + $0x1a8] sm:$0x1]  ;;  %v6816_v3 = vld [vmem:[#allocation3 + $0x1a9] sm:$0x1] }
  0xfc   : > { %577 = vrot.lane.b32.xlu1 %v6593_v45, %s6231_s4  ;;  %v6838_v23 = vld [vmem:[#allocation3 + $0x3a] sm:$0x1] }
  0xfd   : > { %587 = vrot.lane.b32.xlu0 %v6397_v50, %s6231_s4 }
 0x100   : > { %589 = vrot.lane.b32.xlu1 %v6625_v0, %s6231_s4 }
 0x101   : > { %563 = vrot.lane.b32.xlu0 %v6404_v52, %s6231_s4 }
 0x104   : > { %565 = vrot.lane.b32.xlu1 %v6655_v6, %s6231_s4 }
 0x105   : > { %599 = vrot.lane.b32.xlu0 %v6402_v51, %s6231_s4  ;;  %v6725_v51 = vld [vmem:[#allocation3 + $0x28] sm:$0x1] }
 0x106   : > { %9381 = vst [vmem:[#allocation54_spill] sm:$0xff] %v6725_v51  ;;  %v1152_v51 = vsel %vm1151_vm11, %v9390_v4, %v1149_v43  ;;  %v1641_v4 = vld [vmem:[#allocation3 + $0x2] sm:$0x1] }
 0x108   : > { %601 = vrot.lane.b32.xlu1 %v6685_v35, %s6231_s4  ;;  %v6741_v35 = vld [vmem:[#allocation3 + $0xf8] sm:$0x1] }
 0x109   : > { %696 = vrot.lane.b32.xlu0 %v6404_v52, %s6230_s30  ;;  %9386 = vst [vmem:[#allocation59_spill] sm:$0xff] %v6741_v35  ;;  %v6801_v35 = vld [vmem:[#allocation3 + $0x1b8] sm:$0x1] }
 0x10b   : > { %v437_v28 = vpop.permute.xlu0 %436 }
 0x10c   : > { %698 = vrot.lane.b32.xlu1 %v6655_v6, %s6230_s30 }
 0x10d   : > { %854 = vrot.lane.b32.xlu0 %v6404_v52, %s6231_s4 }
 0x10e   : > { %v439_v47 = vpop.permute.xlu1 %438 }
 0x10f   : > { %v463_v36 = vsel %vm460_vm12, %v437_v28, %v439_v47  ;;  %v445_v52 = vpop.permute.xlu0 %444  ;;  %v6791_v47 = vld [vmem:[#allocation3 + $0x198] sm:$0x1]  ;;  %v9397_v28 = vrot.slane %v6495_v57, 6 }
 0x110   : > { %480 = vst [vmem:[#allocation3 + $0x90] sm:$0xff] %v463_v36  ;;  %856 = vrot.lane.b32.xlu1 %v6655_v6, %s6231_s4  ;;  %v9396_v36 = vrot.slane %v6500_v59, 7 }
 0x111   : > { %708 = vrot.lane.b32.xlu0 %v6391_v49, %s6230_s30  ;;  %v1199_v56 = vsel %vm1151_vm11, %v9397_v28, %v1197_v54  ;;  %v9400_v54 = vrot.slane %v6451_v22, 5  ;;  %v2195_v22 = vld [vmem:[#allocation3 + $0x4] sm:$0x1] }
 0x112   : > { %v1479_v8 = vsel %vm1148_vm10, %v9396_v36, %v1388_v10  ;;  %v447_v43 = vpop.permute.xlu1 %446  ;;  %v1714_v10 = vsel %vm1148_vm10, %v9399_v5, %v1641_v4  ;;  %v1918_v36 = vld [vmem:[#allocation3 + $0x3] sm:$0x1]  ;;  %v9402_v4 = vrot.slane %v6508_v1, 6  ;;  %v6836_v5 = vld [vmem:[#allocation3 + $0x2a] sm:$0x1] }
 0x113   : > { %v1481_v59 = vsel %vm1151_vm11, %v9398_v27, %v1479_v8  ;;  %v465_v57 = vsel %vm460_vm12, %v445_v52, %v447_v43  ;;  %v6826_v60 = vsel %vm1154_vm13, %v9400_v54, %v1152_v51  ;;  %v9401_v8 = vrot.slane %v6469_v32, 5  ;;  %v1942_v27 = vld [vmem:[#allocation3 + $0x183] sm:$0x1]  ;;  %v6840_v43 = vld [vmem:[#allocation3 + $0xca] sm:$0x1]  ;;  %v429_v51 = vpop.permute.xlu0 %428 }
 0x114   : > { %v1716_v28 = vsel %vm1151_vm11, %v9402_v4, %v1714_v10  ;;  %9403 = vst [vmem:[#allocation64_spill] sm:$0xff] %v6840_v43  ;;  %482 = vst [vmem:[#allocation3 + $0xa0] sm:$0xff] %v465_v57  ;;  %710 = vrot.lane.b32.xlu1 %v6593_v45, %s6230_s30  ;;  %v9404_v10 = vrot.slane %v6497_v58, 5  ;;  %v9406_v57 = vrot.slane %v6504_v61, 5  ;;  %v6862_v1 = vld [vmem:[#allocation3 + $0xea] sm:$0x1] }
 0x115   : > { %v6831_v63 = vsel %vm1154_vm13, %v9401_v8, %v1439_v18  ;;  %9409 = vst [vmem:[#allocation68_spill] sm:$0xff] %v6862_v1  ;;  %866 = vrot.lane.b32.xlu0 %v6391_v49, %s6231_s4  ;;  %v6866_v58 = vld [vmem:[#allocation3 + $0xfa] sm:$0x1]  ;;  %v9411_v32 = vrot.slane %v6510_v2, 5  ;;  %v9412_v52 = vrot.slane %v6534_v46, 7 }
 0x116   : > { %v6851_v54 = vsel %vm1154_vm13, %v9404_v10, %v1199_v56  ;;  %v6856_v8 = vsel %vm1154_vm13, %v9406_v57, %v1481_v59  ;;  %v431_v18 = vpop.permute.xlu1 %430  ;;  %9410 = vst [vmem:[#allocation69_spill] sm:$0xff] %v6866_v58  ;;  %v1756_v56 = vsel %vm1148_vm10, %v9413_v24, %v1665_v31  ;;  %v6884_v61 = vld [vmem:[#allocation3 + $0x1b] sm:$0x1]  ;;  %v6886_v59 = vld [vmem:[#allocation3 + $0x2b] sm:$0x1]  ;;  %v9416_v24 = vrot.slane %v6560_v20, 7 }
 0x117   : > { %9405 = vst [vmem:[#allocation65_spill] sm:$0xff] %v6851_v54  ;;  %9407 = vst [vmem:[#allocation66_spill] sm:$0xff] %v6856_v8  ;;  %v461_v57 = vsel %vm460_vm12, %v429_v51, %v431_v18  ;;  %v6876_v4 = vsel %vm1154_vm13, %v9411_v32, %v1716_v28  ;;  %v1991_v29 = vsel %vm1148_vm10, %v9412_v52, %v1918_v36  ;;  %v6888_v10 = vld [vmem:[#allocation3 + $0x3b] sm:$0x1]  ;;  %v453_v2 = vpop.permute.xlu0 %452  ;;  %v9414_v28 = vrot.slane %v6537_v55, 6 }
 0x118   : > { %478 = vst [vmem:[#allocation3 + $0x80] sm:$0xff] %v461_v57  ;;  %868 = vrot.lane.b32.xlu1 %v6593_v45, %s6231_s4  ;;  %v9415_v36 = vrot.slane %v6554_v40, 6  ;;  %v2033_v31 = vsel %vm1148_vm10, %v9416_v24, %v1942_v27  ;;  %v9417_v51 = vrot.slane %v6576_v41, 7  ;;  %v2472_v18 = vld [vmem:[#allocation3 + $0x5] sm:$0x1]  ;;  %v9422_v20 = vrot.slane %v6578_v37, 6 }
 0x119   : > { %v1993_v46 = vsel %vm1151_vm11, %v9414_v28, %v1991_v29  ;;  %v2219_v52 = vld [vmem:[#allocation3 + $0x184] sm:$0x1]  ;;  %v6904_v57 = vld [vmem:[#allocation3 + $0xcb] sm:$0x1]  ;;  %v6906_v43 = vld [vmem:[#allocation3 + $0xdb] sm:$0x1]  ;;  %720 = vrot.lane.b32.xlu0 %v6397_v50, %s6230_s30 }
 0x11a   : > { %v1758_v7 = vsel %vm1151_vm11, %v9415_v36, %v1756_v56  ;;  %v2268_v32 = vsel %vm1148_vm10, %v9417_v51, %v2195_v22  ;;  %9418 = vst [vmem:[#allocation70_spill] sm:$0xff] %v6904_v57  ;;  %9419 = vst [vmem:[#allocation71_spill] sm:$0xff] %v6906_v43  ;;  %v6908_v55 = vld [vmem:[#allocation3 + $0xeb] sm:$0x1]  ;;  %v9421_v29 = vrot.slane %v6565_v26, 6  ;;  %v455_v51 = vpop.permute.xlu1 %454  ;;  %v9424_v37 = vrot.slane %v6539_v62, 5 }
 0x11b   : > { %9420 = vst [vmem:[#allocation72_spill] sm:$0xff] %v6908_v55  ;;  %v2270_v27 = vsel %vm1151_vm11, %v9422_v20, %v2268_v32  ;;  %v2496_v56 = vld [vmem:[#allocation3 + $0x185] sm:$0x1]  ;;  %v2749_v41 = vld [vmem:[#allocation3 + $0x6] sm:$0x1]  ;;  %v467_v20 = vsel %vm460_vm12, %v453_v2, %v455_v51  ;;  %v9425_v2 = vrot.slane %v6558_v38, 5 }
 0x11c   : > { %v2035_v40 = vsel %vm1151_vm11, %v9421_v29, %v2033_v31  ;;  %v6918_v36 = vld [vmem:[#allocation3 + $0xfb] sm:$0x1]  ;;  %v6920_v24 = vld [vmem:[#allocation3 + $0x19a] sm:$0x1]  ;;  %v2773_v26 = vld [vmem:[#allocation3 + $0x186] sm:$0x1]  ;;  %722 = vrot.lane.b32.xlu1 %v6625_v0, %s6230_s30  ;;  %v339_v31 = vpop.permute.xlu0 %338  ;;  %v6939_v32 = vsel %vm1154_vm13, %v9424_v37, %v1993_v46 }
 0x11d   : > { %9423 = vst [vmem:[#allocation73_spill] sm:$0xff] %v6918_v36  ;;  %484 = vst [vmem:[#allocation3 + $0xb0] sm:$0xff] %v467_v20  ;;  %v6944_v51 = vsel %vm1154_vm13, %v9425_v2, %v1758_v7  ;;  %v6947_v1 = vld [vmem:[#allocation3 + $0x1ba] sm:$0x1]  ;;  %v6950_v28 = vld [vmem:[#allocation3 + $0x19b] sm:$0x1]  ;;  %878 = vrot.lane.b32.xlu0 %v6397_v50, %s6231_s4 }
 0x11e   : > { %9426 = vst [vmem:[#allocation74_spill] sm:$0xff] %v6944_v51  ;;  %v9427_v29 = vrot.slane %v6567_v13, 5  ;;  %v9429_v46 = vrot.slane %v6582_v39, 5  ;;  %v9430_v7 = vrot.slane %v6597_v11, 7  ;;  %v9431_v2 = vrot.slane %v6623_v21, 7  ;;  %v9446_v57 = vld [vmem:[#allocation33_spill] sm:$0xff] }
 0x11f   : > { %v6968_v20 = vld [vmem:[#allocation3 + $0x1ab] sm:$0x1]  ;;  %v6970_v36 = vld [vmem:[#allocation3 + $0x1bb] sm:$0x1]  ;;  %v6972_v13 = vld [vmem:[#allocation3 + $0x1c] sm:$0x1] }
 0x120   : > { %v6955_v62 = vsel %vm1154_vm13, %v9427_v29, %v2035_v40  ;;  %v6960_v38 = vsel %vm1154_vm13, %v9429_v46, %v2270_v27  ;;  %v2545_v37 = vsel %vm1148_vm10, %v9430_v7, %v2472_v18  ;;  %v2310_v22 = vsel %vm1148_vm10, %v9431_v2, %v2219_v52  ;;  %v341_v40 = vpop.permute.xlu1 %340  ;;  %v3026_v7 = vld [vmem:[#allocation3 + $0x7] sm:$0x1]  ;;  %v6988_v2 = vld [vmem:[#allocation3 + $0x2c] sm:$0x1]  ;;  %v6990_v50 = vld [vmem:[#allocation3 + $0x3c] sm:$0x1]  ;;  %880 = vrot.lane.b32.xlu1 %v6625_v0, %s6231_s4 }
 0x121   : > { %9428 = vst [vmem:[#allocation75_spill] sm:$0xff] %v6955_v62  ;;  %v9432_v39 = vrot.slane %v6599_v16, 6  ;;  %v9433_v18 = vrot.slane %v6631_v17, 6  ;;  %v9434_v52 = vrot.slane %v6637_v53, 7  ;;  %v9435_v29 = vrot.slane %v6649_v44, 7  ;;  %440 = vrot.lane.b32.xlu0 %v6391_v49, %s6230_s30  ;;  %v9476_v54 = vld [vmem:[#allocation42_spill] sm:$0xff] }
 0x122   : > { %v6992_v16 = vld [vmem:[#allocation3 + $0xcc] sm:$0x1]  ;;  %v9437_v17 = vrot.slane %v6639_v48, 6  ;;  %v9438_v53 = vrot.slane %v6651_v42, 6  ;;  %v9439_v44 = vrot.slane %v6699_v33, 7  ;;  %v347_v48 = vpop.permute.xlu0 %346  ;;  %v9447_v49 = vrot.slane %v9446_v57, 5 }
 0x123   : > { %v2547_v11 = vsel %vm1151_vm11, %v9432_v39, %v2545_v37  ;;  %v2312_v21 = vsel %vm1151_vm11, %v9433_v18, %v2310_v22  ;;  %v2587_v27 = vsel %vm1148_vm10, %v9434_v52, %v2496_v56  ;;  %v2822_v46 = vsel %vm1148_vm10, %v9435_v29, %v2749_v41  ;;  %9436 = vst [vmem:[#allocation76_spill] sm:$0xff] %v6992_v16  ;;  %v7004_v39 = vld [vmem:[#allocation3 + $0xdc] sm:$0x1]  ;;  %v7006_v18 = vld [vmem:[#allocation3 + $0xec] sm:$0x1] }
 0x124   : > { %v371_v37 = vsel %vm370_vm14, %v339_v31, %v341_v40  ;;  %v2589_v22 = vsel %vm1151_vm11, %v9437_v17, %v2587_v27  ;;  %v2824_v56 = vsel %vm1151_vm11, %v9438_v53, %v2822_v46  ;;  %v2864_v41 = vsel %vm1148_vm10, %v9439_v44, %v2773_v26  ;;  %9440 = vst [vmem:[#allocation77_spill] sm:$0xff] %v7004_v39  ;;  %v7008_v52 = vld [vmem:[#allocation3 + $0xfc] sm:$0x1]  ;;  %v3050_v31 = vld [vmem:[#allocation3 + $0x187] sm:$0x1]  ;;  %v349_v55 = vpop.permute.xlu1 %348  ;;  %v9443_v53 = vld [vmem:[#allocation28_spill] sm:$0xff] }
 0x125   : > { %9441 = vst [vmem:[#allocation78_spill] sm:$0xff] %v7006_v18  ;;  %9442 = vst [vmem:[#allocation79_spill] sm:$0xff] %v7008_v52  ;;  %v3303_v40 = vld [vmem:[#allocation3 + $0x8] sm:$0x1]  ;;  %v3580_v42 = vld [vmem:[#allocation3 + $0x9] sm:$0x1]  ;;  %v7037_v62 = vsel %vm1154_vm13, %v9447_v49, %v2312_v21  ;;  %442 = vrot.lane.b32.xlu1 %v6593_v45, %s6230_s30 }
 0x126   : > { %388 = vst [vmem:[#allocation3 + $0x40] sm:$0xff] %v371_v37  ;;  %v3327_v46 = vld [vmem:[#allocation3 + $0x188] sm:$0x1]  ;;  %v3604_v27 = vld [vmem:[#allocation3 + $0x189] sm:$0x1]  ;;  %v373_v37 = vsel %vm370_vm14, %v347_v48, %v349_v55  ;;  %v9444_v58 = vrot.slane %v9443_v53, 5 }
 0x127   : > { %v7026_v17 = vld [vmem:[#allocation3 + $0x1d] sm:$0x1]  ;;  %9448 = vst [vmem:[#allocation33_spill] sm:$0xff] %v7037_v62  ;;  %v9449_v33 = vld [vmem:[#allocation40_spill] sm:$0xff]  ;;  %390 = vst [vmem:[#allocation3 + $0x50] sm:$0xff] %v373_v37 }
 0x128   : > { %v7032_v44 = vsel %vm1154_vm13, %v9444_v58, %v2547_v11  ;;  %v9450_v26 = vrot.slane %v9449_v33, 7  ;;  %v7042_v18 = vld [vmem:[#allocation3 + $0x2d] sm:$0x1]  ;;  %v7044_v43 = vld [vmem:[#allocation3 + $0x3d] sm:$0x1]  ;;  %v572_v58 = vpop.permute.xlu0 %571  ;;  %v9456_v21 = vld [vmem:[#allocation35_spill] sm:$0xff] }
 0x129   : > { %9445 = vst [vmem:[#allocation28_spill] sm:$0xff] %v7032_v44  ;;  %9451 = vst [vmem:[#allocation40_spill] sm:$0xff] %v7044_v43  ;;  %v7046_v52 = vld [vmem:[#allocation3 + $0xcd] sm:$0x1]  ;;  %v9453_v55 = vld [vmem:[#allocation34_spill] sm:$0xff]  ;;  %v9457_v48 = vrot.slane %v9456_v21, 5 }
 0x12a   : > { %v3099_v29 = vsel %vm1148_vm10, %v9450_v26, %v3026_v7  ;;  %9452 = vst [vmem:[#allocation80_spill] sm:$0xff] %v7046_v52  ;;  %v9454_v57 = vrot.slane %v9453_v55, 5  ;;  %v9459_v33 = vld [vmem:[#allocation41_spill] sm:$0xff]  ;;  %v9461_v49 = vld [vmem:[#allocation48_spill] sm:$0xff]  ;;  %v7066_v62 = vld [vmem:[#allocation3 + $0xdd] sm:$0x1] }
 0x12b   : > { %v7058_v7 = vsel %vm1154_vm13, %v9457_v48, %v2824_v56  ;;  %v9460_v26 = vrot.slane %v9459_v33, 6  ;;  %v9462_v37 = vrot.slane %v9461_v49, 6  ;;  %v3857_v16 = vld [vmem:[#allocation3 + $0xa] sm:$0x1]  ;;  %9463 = vst [vmem:[#allocation41_spill] sm:$0xff] %v7066_v62  ;;  %v9468_v48 = vld [vmem:[#allocation53_spill] sm:$0xff] }
 0x12c   : > { %v7053_v11 = vsel %vm1154_vm13, %v9454_v57, %v2589_v22  ;;  %9458 = vst [vmem:[#allocation35_spill] sm:$0xff] %v7058_v7  ;;  %v7068_v55 = vld [vmem:[#allocation3 + $0xed] sm:$0x1]  ;;  %v7070_v22 = vld [vmem:[#allocation3 + $0xfd] sm:$0x1]  ;;  %v9482_v52 = vld [vmem:[#allocation51_spill] sm:$0xff] }
 0x12d   : > { %9455 = vst [vmem:[#allocation34_spill] sm:$0xff] %v7053_v11  ;;  %v3101_v53 = vsel %vm1151_vm11, %v9460_v26, %v3099_v29  ;;  %v2866_v39 = vsel %vm1151_vm11, %v9462_v37, %v2864_v41  ;;  %9464 = vst [vmem:[#allocation48_spill] sm:$0xff] %v7068_v55  ;;  %v9466_v57 = vld [vmem:[#allocation50_spill] sm:$0xff]  ;;  %v9469_v11 = vrot.slane %v9468_v48, 7  ;;  %v9470_v29 = vrot.slane %v6747_v12, 7  ;;  %v9475_v12 = vld [vmem:[#allocation44_spill] sm:$0xff] }
 0x12e   : > { %9465 = vst [vmem:[#allocation81_spill] sm:$0xff] %v7070_v22  ;;  %v9467_v21 = vrot.slane %v9466_v57, 7  ;;  %v9471_v41 = vrot.slane %v6791_v47, 7  ;;  %v7084_v37 = vld [vmem:[#allocation3 + $0x19c] sm:$0x1]  ;;  %v574_v57 = vpop.permute.xlu1 %573  ;;  %v9474_v48 = vrot.slane %v6803_v19, 7  ;;  %734 = vrot.lane.b32.xlu1 %v9475_v12, %s6230_s30 }
 0x12f   : > { %v3376_v33 = vsel %vm1148_vm10, %v9469_v11, %v3303_v40  ;;  %v3653_v26 = vsel %vm1148_vm10, %v9470_v29, %v3580_v42  ;;  %v7086_v51 = vld [vmem:[#allocation3 + $0x1ac] sm:$0x1]  ;;  %v7088_v8 = vld [vmem:[#allocation3 + $0x1bc] sm:$0x1]  ;;  %v1079_v11 = vld [vmem:[#allocation3 + $0x90] sm:$0x1]  ;;  %v355_v42 = vpop.permute.xlu0 %354 }
 0x130   : > { %v3141_v56 = vsel %vm1148_vm10, %v9467_v21, %v3050_v31  ;;  %v3418_v49 = vsel %vm1148_vm10, %v9471_v41, %v3327_v46  ;;  %9472 = vst [vmem:[#allocation50_spill] sm:$0xff] %v7088_v8  ;;  %v9473_v31 = vld [vmem:[#allocation7_spill] sm:$0xff]  ;;  %v4134_v21 = vld [vmem:[#allocation3 + $0xb] sm:$0x1]  ;;  %v610_v46 = vsel %vm370_vm14, %v572_v58, %v574_v57  ;;  %v3695_v29 = vsel %vm1148_vm10, %v9474_v48, %v3604_v27  ;;  %v3881_v41 = vld [vmem:[#allocation3 + $0x18a] sm:$0x1] }
 0x131   : > { %732 = vrot.lane.b32.xlu0 %v9473_v31, %s6230_s30  ;;  %v7102_v7 = vld [vmem:[#allocation3 + $0x19d] sm:$0x1]  ;;  %635 = vst [vmem:[#allocation3 + $0x10f] sm:$0xfe] %v610_v46  ;;  %v4158_v47 = vld [vmem:[#allocation3 + $0x18b] sm:$0x1] }
 0x132   : > { %v1373_v48 = vld [vmem:[#allocation3 + $0x91] sm:$0x1]  ;;  %v9477_v31 = vrot.slane %v9476_v54, 5  ;;  %v9483_v58 = vrot.slane %v9482_v52, 6  ;;  %v9484_v19 = vrot.slane %v6820_v25, 7  ;;  %v1168_v52 = vrot.slane %v1079_v11, 7  ;;  %892 = vrot.lane.b32.xlu1 %v9475_v12, %s6231_s4 }
 0x133   : > { %v9479_v46 = vld [vmem:[#allocation49_spill] sm:$0xff]  ;;  %v7128_v22 = vld [vmem:[#allocation3 + $0x1ad] sm:$0x1]  ;;  %v7130_v54 = vld [vmem:[#allocation3 + $0x1bd] sm:$0x1]  ;;  %v9488_v25 = vrot.slane %v6757_v14, 6 }
 0x134   : > { %v7113_v40 = vsel %vm1154_vm13, %v9477_v31, %v3101_v53  ;;  %v9480_v55 = vrot.slane %v9479_v46, 5  ;;  %v7123_v57 = vsel %vm1151_vm11, %v9483_v58, %v3141_v56  ;;  %v3930_v27 = vsel %vm1148_vm10, %v9484_v19, %v3857_v16  ;;  %9485 = vst [vmem:[#allocation44_spill] sm:$0xff] %v7130_v54  ;;  %v357_v53 = vpop.permute.xlu1 %356  ;;  %v7132_v31 = vld [vmem:[#allocation3 + $0x38] sm:$0xff]  ;;  %v1080_v43 = vld [vmem:[#allocation3 + $0xa0] sm:$0x1] }
 0x135   : > { %9478 = vst [vmem:[#allocation53_spill] sm:$0xff] %v7113_v40  ;;  %890 = vrot.lane.b32.xlu0 %v7132_v31, %s6231_s4  ;;  %v9486_v46 = vld [vmem:[#allocation54_spill] sm:$0xff]  ;;  %v7144_v16 = vsel %vm1151_vm11, %v9488_v25, %v3653_v26  ;;  %v375_v8 = vsel %vm370_vm14, %v355_v42, %v357_v53  ;;  %v1372_v40 = vld [vmem:[#allocation3 + $0x81] sm:$0x1]  ;;  %v1375_v44 = vld [vmem:[#allocation3 + $0xb1] sm:$0x1]  ;;  %v584_v42 = vpop.permute.xlu0 %583 }
 0x136   : > { %v7118_v62 = vsel %vm1154_vm13, %v9480_v55, %v2866_v39  ;;  %v1078_v39 = vld [vmem:[#allocation3 + $0x80] sm:$0x1]  ;;  %v1081_v55 = vld [vmem:[#allocation3 + $0xb0] sm:$0x1]  ;;  %v9487_v56 = vrot.slane %v9486_v46, 6  ;;  %v9489_v11 = vrot.slane %v6799_v15, 6  ;;  %450 = vrot.lane.b32.xlu1 %v6625_v0, %s6230_s30 }
 0x137   : > { %9481 = vst [vmem:[#allocation7_spill] sm:$0xff] %v7118_v62  ;;  %v7147_v62 = vld [vmem:[#allocation3 + $0x1e] sm:$0x1]  ;;  %v9491_v26 = vrot.slane %v6884_v61, 7  ;;  %v4411_v25 = vld [vmem:[#allocation3 + $0xc] sm:$0x1] }
 0x138   : > { %v7139_v58 = vsel %vm1151_vm11, %v9487_v56, %v3376_v33  ;;  %v7153_v46 = vsel %vm1151_vm11, %v9489_v11, %v3418_v49  ;;  %v9490_v33 = vrot.slane %v6816_v3, 6  ;;  %392 = vst [vmem:[#allocation3 + $0x60] sm:$0xff] %v375_v8  ;;  %v1374_v15 = vld [vmem:[#allocation3 + $0xa1] sm:$0x1]  ;;  %v1450_v53 = vrot.slane %v1373_v48, 7 }
 0x139   : > { %v4207_v56 = vsel %vm1148_vm10, %v9491_v26, %v4134_v21  ;;  %v9492_v49 = vrot.slane %v6836_v5, 6  ;;  %v7174_v11 = vld [vmem:[#allocation3 + $0x2e] sm:$0x1]  ;;  %v1169_v8 = vsel %vm1148_vm10, %v1168_v52, %v1078_v39  ;;  %v9494_v26 = vrot.slane %v6950_v28, 7  ;;  %v7181_v19 = vld [vmem:[#allocation3 + $0x3e] sm:$0x1] }
 0x13a   : > { %v7158_v14 = vsel %vm1151_vm11, %v9490_v33, %v3695_v29  ;;  %v9493_v29 = vrot.slane %v6920_v24, 7  ;;  %v1172_v33 = vrot.slane %v1081_v55, 5  ;;  %v586_v24 = vpop.permute.xlu1 %585  ;;  %v1451_v39 = vsel %vm1148_vm10, %v1450_v53, %v1372_v40  ;;  %v7193_v52 = vld [vmem:[#allocation3 + $0xde] sm:$0x1]  ;;  %v7218_v0 = vld [vmem:[#allocation3 + $0x3f] sm:$0x1]  ;;  %434 = vrot.lane.b32.xlu1 %v6655_v6, %s6230_s30 }
 0x13b   : > { %v7168_v3 = vsel %vm1151_vm11, %v9492_v49, %v3930_v27  ;;  %v4249_v48 = vsel %vm1148_vm10, %v9494_v26, %v4158_v47  ;;  %v7183_v27 = vld [vmem:[#allocation3 + $0xce] sm:$0x1]  ;;  %v1454_v55 = vrot.slane %v1375_v44, 5  ;;  %v9496_v28 = vrot.slane %v6886_v59, 6  ;;  %9497 = vst [vmem:[#allocation49_spill] sm:$0xff] %v7193_v52  ;;  %v363_v59 = vpop.permute.xlu0 %362  ;;  %9504 = vst [vmem:[#allocation83_spill] sm:$0xff] %v7218_v0 }
 0x13c   : > { %v3972_v61 = vsel %vm1148_vm10, %v9493_v29, %v3881_v41  ;;  %9495 = vst [vmem:[#allocation42_spill] sm:$0xff] %v7183_v27  ;;  %v7185_v49 = vld [vmem:[#allocation3 + $0x28] sm:$0xff]  ;;  %v1170_v41 = vrot.slane %v1080_v43, 6  ;;  %v613_v26 = vsel %vm370_vm14, %v584_v42, %v586_v24  ;;  %v1452_v5 = vrot.slane %v1374_v15, 6  ;;  %v7198_v21 = vld [vmem:[#allocation3 + $0xfe] sm:$0x1] }
 0x13d   : > { %448 = vrot.lane.b32.xlu0 %v7185_v49, %s6230_s30  ;;  %v4209_v47 = vsel %vm1151_vm11, %v9496_v28, %v4207_v56  ;;  %v7195_v29 = vld [vmem:[#allocation3 + $0xee] sm:$0x1]  ;;  %9499 = vst [vmem:[#allocation54_spill] sm:$0xff] %v7198_v21  ;;  %638 = vst [vmem:[#allocation3 + $0x11f] sm:$0xfe] %v613_v26  ;;  %v9500_v40 = vrot.slane %v6932_v34, 6 }
 0x13e   : > { %9498 = vst [vmem:[#allocation51_spill] sm:$0xff] %v7195_v29  ;;  %v1171_v44 = vsel %vm1151_vm11, %v1170_v41, %v1169_v8  ;;  %v9501_v42 = vrot.slane %v6968_v20, 6  ;;  %v9502_v53 = vrot.slane %v6972_v13, 7  ;;  %v7214_v28 = vld [vmem:[#allocation3 + $0x1f] sm:$0x1]  ;;  %v1453_v34 = vsel %vm1151_vm11, %v1452_v5, %v1451_v39  ;;  %v365_v41 = vpop.permute.xlu1 %364  ;;  %458 = vrot.lane.b32.xlu1 %v9475_v12, %s6230_s30 }
 0x13f   : > { %v3974_v56 = vsel %vm1151_vm11, %v9500_v40, %v3972_v61  ;;  %v7216_v26 = vld [vmem:[#allocation3 + $0x2f] sm:$0x1]  ;;  %v1173_v8 = vsel %vm1154_vm13, %v1172_v33, %v1171_v44  ;;  %v1455_v13 = vsel %vm1154_vm13, %v1454_v55, %v1453_v34  ;;  %v377_v5 = vsel %vm370_vm14, %v363_v59, %v365_v41  ;;  %v560_v55 = vpop.permute.xlu0 %559  ;;  %v1368_v33 = vld [vmem:[#allocation3 + $0x41] sm:$0x1]  ;;  %v1650_v20 = vld [vmem:[#allocation3 + $0x92] sm:$0x1] }
 0x140   : > { %v4251_v15 = vsel %vm1151_vm11, %v9501_v42, %v4249_v48  ;;  %v4484_v24 = vsel %vm1148_vm10, %v9502_v53, %v4411_v25  ;;  %9503 = vst [vmem:[#allocation82_spill] sm:$0xff] %v7216_v26  ;;  %v7224_v48 = vld [vmem:[#allocation3 + $0x8] sm:$0xff]  ;;  %394 = vst [vmem:[#allocation3 + $0x70] sm:$0xff] %v377_v5  ;;  %v1074_v53 = vld [vmem:[#allocation3 + $0x40] sm:$0x1]  ;;  %v9513_v39 = vrot.slane %v6759_v9, 5 }
 0x141   : > { %432 = vrot.lane.b32.xlu0 %v7224_v48, %s6230_s30  ;;  %v9505_v34 = vld [vmem:[#allocation8_spill] sm:$0xff]  ;;  %v9510_v42 = vld [vmem:[#allocation55_spill] sm:$0xff]  ;;  %v1369_v43 = vld [vmem:[#allocation3 + $0x51] sm:$0x1]  ;;  %v9520_v9 = vrot.slane %v6818_v30, 5  ;;  %v1156_v21 = vrot.slane %v1074_v53, 4 }
 0x142   : > { %v9506_v25 = vrot.slane %v9505_v34, 4  ;;  %v9507_v59 = vld [vmem:[#allocation52_spill] sm:$0xff]  ;;  %v9511_v5 = vrot.slane %v9510_v42, 5  ;;  %v7257_v34 = vsel %vm1154_vm13, %v9513_v39, %v7144_v16  ;;  %v9522_v39 = vrot.slane %v6838_v23, 5  ;;  %344 = vrot.lane.b32.xlu1 %v6655_v6, %s6231_s4 }
 0x143   : > { %v9508_v41 = vrot.slane %v9507_v59, 5  ;;  %9514 = vst [vmem:[#allocation55_spill] sm:$0xff] %v7257_v34  ;;  %v9516_v59 = vld [vmem:[#allocation12_spill] sm:$0xff]  ;;  %v7276_v16 = vsel %vm1154_vm13, %v9520_v9, %v7158_v14  ;;  %v9526_v14 = vrot.slane %v6947_v1, 5  ;;  %v9528_v23 = vrot.slane %v6970_v36, 5  ;;  %v596_v36 = vpop.permute.xlu0 %595 }
 0x144   : > { %v1175_v40 = vsel %vm1157_vm15, %v9506_v25, %v1173_v8  ;;  %v7251_v44 = vsel %vm1154_vm13, %v9511_v5, %v7139_v58  ;;  %v7259_v8 = vld [vmem:[#allocation3 + $0xcf] sm:$0x1]  ;;  %v1075_v25 = vld [vmem:[#allocation3 + $0x50] sm:$0x1]  ;;  %v9517_v54 = vrot.slane %v9516_v59, 4  ;;  %v9518_v58 = vrot.slane %v6801_v35, 5 }
 0x145   : > { %v7245_v61 = vsel %vm1154_vm13, %v9508_v41, %v7123_v57  ;;  %9512 = vst [vmem:[#allocation52_spill] sm:$0xff] %v7251_v44  ;;  %9515 = vst [vmem:[#allocation84_spill] sm:$0xff] %v7259_v8  ;;  %v7264_v41 = vld [vmem:[#allocation3 + $0x93] sm:$0x1]  ;;  %v7282_v5 = vsel %vm1154_vm13, %v9522_v39, %v7168_v3  ;;  %456 = vrot.lane.b32.xlu0 %v7132_v31, %s6230_s30  ;;  %v1076_v35 = vld [vmem:[#allocation3 + $0x60] sm:$0x1]  ;;  %v7299_v3 = vsel %vm1154_vm13, %v9528_v23, %v4251_v15 }
 0x146   : > { %9509 = vst [vmem:[#allocation8_spill] sm:$0xff] %v7245_v61  ;;  %v1457_v57 = vsel %vm1157_vm15, %v9517_v54, %v1455_v13  ;;  %v7270_v42 = vsel %vm1154_vm13, %v9518_v58, %v7153_v46  ;;  %9521 = vst [vmem:[#allocation85_spill] sm:$0xff] %v7276_v16  ;;  %v562_v54 = vpop.permute.xlu1 %561  ;;  %v1370_v13 = vld [vmem:[#allocation3 + $0x61] sm:$0x1]  ;;  %v1651_v46 = vld [vmem:[#allocation3 + $0xa2] sm:$0x1]  ;;  %v7294_v58 = vsel %vm1154_vm13, %v9526_v14, %v3974_v56  ;;  %352 = vrot.lane.b32.xlu1 %v6593_v45, %s6231_s4 }
 0x147   : > { %9519 = vst [vmem:[#allocation12_spill] sm:$0xff] %v7270_v42  ;;  %9523 = vst [vmem:[#allocation86_spill] sm:$0xff] %v7282_v5  ;;  %v9524_v59 = vrot.slane %v6888_v10, 5  ;;  %v9530_v9 = vrot.slane %v6988_v2, 6  ;;  %v607_v10 = vsel %vm370_vm14, %v560_v55, %v562_v54  ;;  %v1442_v29 = vrot.slane %v1368_v33, 4  ;;  %v9533_v23 = vld [vmem:[#allocation13_spill] sm:$0xff] }
 0x148   : > { %9527 = vst [vmem:[#allocation88_spill] sm:$0xff] %v7294_v58  ;;  %9529 = vst [vmem:[#allocation89_spill] sm:$0xff] %v7299_v3  ;;  %v1649_v56 = vld [vmem:[#allocation3 + $0x82] sm:$0x1]  ;;  %v1652_v14 = vld [vmem:[#allocation3 + $0xb2] sm:$0x1] }
 0x149   : > { %v7289_v30 = vsel %vm1154_vm13, %v9524_v59, %v4209_v47  ;;  %v7304_v39 = vsel %vm1151_vm11, %v9530_v9, %v4484_v24  ;;  %v9531_v47 = vld [vmem:[#allocation9_spill] sm:$0xff]  ;;  %632 = vst [vmem:[#allocation3 + $0xff] sm:$0xfe] %v607_v10  ;;  %v1159_v15 = vrot.slane %v1075_v25, 3  ;;  %v1444_v2 = vrot.slane %v1369_v43, 3  ;;  %342 = vrot.lane.b32.xlu0 %v7224_v48, %s6231_s4  ;;  %v9535_v10 = vld [vmem:[#allocation10_spill] sm:$0xff] }
 0x14a   : > { %9525 = vst [vmem:[#allocation87_spill] sm:$0xff] %v7289_v30  ;;  %v9532_v59 = vrot.slane %v9531_v47, 3  ;;  %v9534_v24 = vrot.slane %v9533_v23, 3  ;;  %v1727_v55 = vrot.slane %v1650_v20, 7  ;;  %v1162_v53 = vrot.slane %v1076_v35, 2  ;;  %v598_v33 = vpop.permute.xlu1 %597  ;;  %v6162_v44 = vld [vmem:[#allocation2 + $0x18] sm:$0xff] }
 0x14b   : > { %v1446_v54 = vrot.slane %v1370_v13, 2  ;;  %v2004_v47 = vrot.slane %v7264_v41, 7  ;;  %v9536_v12 = vrot.slane %v9535_v10, 2  ;;  %v1731_v23 = vrot.slane %v1652_v14, 5  ;;  %v1077_v35 = vld [vmem:[#allocation3 + $0x70] sm:$0x1] }
 0x14c   : > { %v1177_v1 = vsel %vm1160_vm0, %v9532_v59, %v1175_v40  ;;  %v1459_v9 = vsel %vm1160_vm0, %v9534_v24, %v1457_v57  ;;  %v1728_v43 = vsel %vm1148_vm10, %v1727_v55, %v1649_v56  ;;  %v1729_v59 = vrot.slane %v1651_v46, 6  ;;  %v4688_v57 = vld [vmem:[#allocation3 + $0xd] sm:$0x1]  ;;  %v1371_v13 = vld [vmem:[#allocation3 + $0x71] sm:$0x1]  ;;  %v9537_v40 = vld [vmem:[#allocation14_spill] sm:$0xff]  ;;  %v693_v46 = vpop.permute.xlu0 %692 }
 0x14d   : > { %v1179_v25 = vsel %vm1163_vm1, %v9536_v12, %v1177_v1  ;;  %v616_v20 = vsel %vm370_vm14, %v596_v36, %v598_v33  ;;  %v1158_v41 = vsel %vm1157_vm15, %v1156_v21, %v6826_v60  ;;  %v1443_v24 = vsel %vm1157_vm15, %v1442_v29, %v6831_v63  ;;  %v1926_v29 = vld [vmem:[#allocation3 + $0x83] sm:$0x1]  ;;  %v1929_v55 = vld [vmem:[#allocation3 + $0xb3] sm:$0x1]  ;;  %v6158_v33 = vld [vmem:[#allocation3 + $0x18] sm:$0xff] }
 0x14e   : > { %v9538_v52 = vrot.slane %v9537_v40, 2  ;;  %641 = vst [vmem:[#allocation3 + $0x12f] sm:$0xfe] %v616_v20  ;;  %v1161_v1 = vsel %vm1160_vm0, %v1159_v15, %v1158_v41  ;;  %v1165_v56 = vrot.slane %v1077_v35, 1  ;;  %v1445_v14 = vsel %vm1160_vm0, %v1444_v2, %v1443_v24  ;;  %v695_v40 = vpop.permute.xlu1 %694  ;;  %350 = vrot.lane.b32.xlu0 %v6158_v33, %s6231_s4  ;;  %v9540_v2 = vld [vmem:[#allocation11_spill] sm:$0xff]  ;;  %v9585_v3 = vld [vmem:[#allocation28_spill] sm:$0xff] }
 0x14f   : > { %v1448_v36 = vrot.slane %v1371_v13, 1  ;;  %v1164_v60 = vsel %vm1163_vm1, %v1162_v53, %v1161_v1  ;;  %v1447_v21 = vsel %vm1163_vm1, %v1446_v54, %v1445_v14  ;;  %v1730_v63 = vsel %vm1151_vm11, %v1729_v59, %v1728_v43  ;;  %v9542_v43 = vld [vmem:[#allocation15_spill] sm:$0xff]  ;;  %v7350_v41 = vld [vmem:[#allocation3 + $0xdf] sm:$0x1]  ;;  %v2206_v14 = vld [vmem:[#allocation3 + $0xb4] sm:$0x1] }
 0x150   : > { %v1461_v10 = vsel %vm1163_vm1, %v9538_v52, %v1459_v9  ;;  %v2204_v52 = vld [vmem:[#allocation3 + $0x94] sm:$0x1]  ;;  %v9539_v9 = vrot.slane %v7026_v17, 7  ;;  %v1167_v15 = vsel %vm1166_vm2, %v1165_v56, %v1164_v60  ;;  %v9541_v12 = vrot.slane %v9540_v2, 1  ;;  %v1928_v35 = vld [vmem:[#allocation3 + $0xa3] sm:$0x1] }
 0x151   : > { %v1449_v54 = vsel %vm1166_vm2, %v1448_v36, %v1447_v21  ;;  %v9543_v59 = vrot.slane %v9542_v43, 1  ;;  %v4435_v17 = vld [vmem:[#allocation3 + $0x18c] sm:$0x1]  ;;  %9544 = vst [vmem:[#allocation9_spill] sm:$0xff] %v7350_v41  ;;  %v1732_v1 = vsel %vm1154_vm13, %v1731_v23, %v1730_v63  ;;  %v2203_v56 = vld [vmem:[#allocation3 + $0x84] sm:$0x1] }
 0x152   : > { %v4761_v6 = vsel %vm1148_vm10, %v9539_v9, %v4688_v57  ;;  %v1181_v53 = vsel %vm1166_vm2, %v9541_v12, %v1179_v25  ;;  %v740_v57 = vsel %vm460_vm12, %v693_v46, %v695_v40  ;;  %v7354_v60 = vld [vmem:[#allocation3 + $0xef] sm:$0x1]  ;;  %v851_v25 = vpop.permute.xlu0 %850  ;;  %v2008_v36 = vrot.slane %v1929_v55, 5  ;;  %v2205_v21 = vld [vmem:[#allocation3 + $0xa4] sm:$0x1]  ;;  %999 = vrot.lane.b32.xlu0 %v6158_v33, %s6230_s30 }
 0x153   : > { %v1463_v20 = vsel %vm1166_vm2, %v9543_v59, %v1461_v10  ;;  %v6010_v13 = vpack.c.bf16 %v1181_v53, %v1167_v15  ;;  %9545 = vst [vmem:[#allocation13_spill] sm:$0xff] %v7354_v60  ;;  %765 = vst [vmem:[#allocation3 + $0x13f] sm:$0xfe] %v740_v57  ;;  %v2005_v10 = vsel %vm1148_vm10, %v2004_v47, %v1926_v29  ;;  %v2281_v9 = vrot.slane %v2204_v52, 7  ;;  %v2481_v2 = vld [vmem:[#allocation3 + $0x95] sm:$0x1]  ;;  %v853_v52 = vpop.permute.xlu1 %852 }
 0x154   : > { %v6016_v24 = vpack.c.bf16 %v1463_v20, %v1449_v54  ;;  %v9546_v46 = vrot.slane %v6990_v50, 5  ;;  %v4712_v63 = vld [vmem:[#allocation3 + $0x18d] sm:$0x1]  ;;  %v2006_v40 = vrot.slane %v1928_v35, 6  ;;  %v7365_v15 = vld [vmem:[#allocation3 + $0x96] sm:$0x1]  ;;  %v898_v35 = vsel %vm370_vm14, %v851_v25, %v853_v52 }
 0x155   : > { %6011 = vmatpush3.bf16.msra.mxu0 %v6010_v13  ;;  %v7367_v45 = vld [vmem:[#allocation3 + $0x97] sm:$0x1]  ;;  %v9548_v47 = vrot.slane %v7042_v18, 6  ;;  %v9549_v55 = vrot.slane %v7084_v37, 7  ;;  %v9550_v12 = vmov 0.0|0.0   ;;  %v9551_v53 = vld [vmem:[#allocation16_spill] sm:$0xff]  ;;  %v2282_v18 = vsel %vm1148_vm10, %v2281_v9, %v2203_v56 }
 0x156   : > { %v7363_v23 = vsel %vm1154_vm13, %v9546_v46, %v7304_v39  ;;  %6017 = vmatpush3.bf16.msra.mxu1 %v6016_v24  ;;  %6012 = vmatprep.subr.bf16.mxu0 %v9550_v12  ;;  %v9552_v54 = vrot.slane %v9551_v53, 4  ;;  %v2285_v59 = vrot.slane %v2206_v14, 5  ;;  %v4965_v20 = vld [vmem:[#allocation3 + $0xe] sm:$0x1]  ;;  %v2283_v33 = vrot.slane %v2205_v21, 6  ;;  %v6160_v37 = vld [vmem:[#allocation2 + $0x78] sm:$0xff] }
 0x157   : > { %9547 = vst [vmem:[#allocation10_spill] sm:$0xff] %v7363_v23  ;;  %v7372_v29 = vsel %vm1151_vm11, %v9548_v47, %v4761_v6  ;;  %v4526_v50 = vsel %vm1148_vm10, %v9549_v55, %v4435_v17  ;;  %v2482_v6 = vld [vmem:[#allocation3 + $0xa5] sm:$0x1]  ;;  %6018 = vmatprep.subr.bf16.mxu1 %v9550_v12  ;;  %v2007_v17 = vsel %vm1151_vm11, %v2006_v40, %v2005_v10  ;;  %v2483_v13 = vld [vmem:[#allocation3 + $0xb5] sm:$0x1]  ;;  %v2558_v24 = vrot.slane %v2481_v2, 7 }
 0x158   : > { %v1734_v43 = vsel %vm1157_vm15, %v9552_v54, %v1732_v1  ;;  %v2480_v57 = vld [vmem:[#allocation3 + $0x85] sm:$0x1]  ;;  %923 = vst [vmem:[#allocation3 + $0x1be] sm:$0xfc] %v898_v35  ;;  %v6159_v46 = vld [vmem:[#allocation2 + $0x48] sm:$0xff]  ;;  %v707_v1 = vpop.permute.xlu0 %706  ;;  %v2009_v14 = vsel %vm1154_vm13, %v2008_v36, %v2007_v17  ;;  %v2835_v25 = vrot.slane %v7365_v15, 7  ;;  %v2284_v54 = vsel %vm1151_vm11, %v2283_v33, %v2282_v18  ;;  %358 = vrot.lane.b32.xlu0 %v7185_v49, %s6231_s4 }
 0x159   : > { %1001 = vrot.lane.b32.xlu1 %v6159_v46, %s6230_s30  ;;  %v1645_v56 = vld [vmem:[#allocation3 + $0x42] sm:$0x1]  ;;  %v7390_v9 = vld [vmem:[#allocation3 + $0xa6] sm:$0x1]  ;;  %v3112_v47 = vrot.slane %v7367_v45, 7  ;;  %v9553_v10 = vrot.slane %v7086_v51, 6  ;;  %v2559_v18 = vsel %vm1148_vm10, %v2558_v24, %v2480_v57 }
 0x15a   : > { %v1646_v2 = vld [vmem:[#allocation3 + $0x52] sm:$0x1]  ;;  %v1922_v53 = vld [vmem:[#allocation3 + $0x43] sm:$0x1]  ;;  %v7403_v36 = vld [vmem:[#allocation3 + $0xa7] sm:$0x1] }
 0x15b   : > { %v7397_v21 = vsel %vm1151_vm11, %v9553_v10, %v4526_v50  ;;  %v9554_v40 = vld [vmem:[#allocation17_spill] sm:$0xff]  ;;  %v9556_v35 = vrot.slane %v7102_v7, 7  ;;  %v9557_v51 = vrot.slane %v7147_v62, 7  ;;  %v705_v50 = vpop.permute.xlu1 %704  ;;  %v2560_v17 = vrot.slane %v2482_v6, 6  ;;  %v2757_v46 = vld [vmem:[#allocation3 + $0x86] sm:$0x1] }
 0x15c   : > { %v9555_v55 = vrot.slane %v9554_v40, 3  ;;  %v2562_v33 = vrot.slane %v2483_v13, 5  ;;  %v3034_v7 = vld [vmem:[#allocation3 + $0x87] sm:$0x1]  ;;  %v1719_v10 = vrot.slane %v1645_v56, 4  ;;  %v9558_v62 = vld [vmem:[#allocation20_spill] sm:$0xff]  ;;  %1011 = vrot.lane.b32.xlu0 %v7185_v49, %s6230_s30 }
 0x15d   : > { %v7408_v15 = vsel %vm1148_vm10, %v9556_v35, %v4712_v63  ;;  %v7413_v45 = vsel %vm1148_vm10, %v9557_v51, %v4965_v20  ;;  %v743_v63 = vsel %vm460_vm12, %v705_v50, %v707_v1  ;;  %v1923_v40 = vld [vmem:[#allocation3 + $0x53] sm:$0x1]  ;;  %v2199_v35 = vld [vmem:[#allocation3 + $0x44] sm:$0x1]  ;;  %360 = vrot.lane.b32.xlu1 %v6160_v37, %s6231_s4  ;;  %v7425_v6 = vld [vmem:[#allocation3 + $0x110] sm:$0x1]  ;;  %v2561_v51 = vsel %vm1151_vm11, %v2560_v17, %v2559_v18 }
 0x15e   : > { %v1736_v52 = vsel %vm1160_vm0, %v9555_v55, %v1734_v43  ;;  %v2286_v43 = vsel %vm1154_vm13, %v2285_v59, %v2284_v54  ;;  %v9559_v55 = vrot.slane %v9558_v62, 4  ;;  %768 = vst [vmem:[#allocation3 + $0x14f] sm:$0xfe] %v743_v63  ;;  %v865_v59 = vpop.permute.xlu0 %864  ;;  %v1721_v57 = vrot.slane %v1646_v2, 3  ;;  %v9560_v13 = vld [vmem:[#allocation18_spill] sm:$0xff]  ;;  %v9562_v63 = vld [vmem:[#allocation24_spill] sm:$0xff] }
 0x15f   : > { %v9561_v24 = vrot.slane %v9560_v13, 2  ;;  %v1996_v56 = vrot.slane %v1922_v53, 4  ;;  %v7431_v50 = vld [vmem:[#allocation3 + $0x111] sm:$0x1]  ;;  %v7435_v62 = vld [vmem:[#allocation3 + $0x54] sm:$0x1]  ;;  %v7442_v2 = vsel %vm1148_vm10, %v2835_v25, %v2757_v46  ;;  %v863_v53 = vpop.permute.xlu1 %862 }
 0x160   : > { %v2011_v20 = vsel %vm1157_vm15, %v9559_v55, %v2009_v14  ;;  %v7433_v14 = vld [vmem:[#allocation3 + $0x112] sm:$0x1]  ;;  %v9563_v55 = vrot.slane %v9562_v63, 4  ;;  %v1998_v13 = vrot.slane %v1923_v40, 3  ;;  %v2273_v63 = vrot.slane %v2199_v35, 4  ;;  %v9566_v17 = vld [vmem:[#allocation19_spill] sm:$0xff]  ;;  %366 = vrot.lane.b32.xlu0 %v7132_v31, %s6231_s4 }
 0x161   : > { %v1738_v1 = vsel %vm1163_vm1, %v9561_v24, %v1736_v52  ;;  %v7445_v52 = vsel %vm1148_vm10, %v3112_v47, %v3034_v7  ;;  %v9564_v24 = vld [vmem:[#allocation21_spill] sm:$0xff]  ;;  %v7452_v41 = vld [vmem:[#allocation3 + $0x45] sm:$0x1]  ;;  %v901_v25 = vsel %vm370_vm14, %v863_v53, %v865_v59  ;;  %v1720_v47 = vsel %vm1157_vm15, %v1719_v10, %v6876_v4  ;;  %1013 = vrot.lane.b32.xlu1 %v6160_v37, %s6230_s30  ;;  %v7470_v35 = vld [vmem:[#allocation3 + $0x62] sm:$0x1] }
 0x162   : > { %v2288_v39 = vsel %vm1157_vm15, %v9563_v55, %v2286_v43  ;;  %v9565_v54 = vrot.slane %v9564_v24, 3  ;;  %v2563_v43 = vsel %vm1154_vm13, %v2562_v33, %v2561_v51  ;;  %v9567_v46 = vrot.slane %v9566_v17, 1  ;;  %v7464_v7 = vld [vmem:[#allocation3 + $0x113] sm:$0x1]  ;;  %v7466_v40 = vld [vmem:[#allocation3 + $0x55] sm:$0x1]  ;;  %v717_v33 = vpop.permute.xlu0 %716 }
 0x163   : > { %926 = vst [vmem:[#allocation3 + $0x1ce] sm:$0xfc] %v901_v25  ;;  %v2275_v4 = vrot.slane %v7435_v62, 3  ;;  %v9568_v10 = vld [vmem:[#allocation25_spill] sm:$0xff]  ;;  %v7480_v55 = vsel %vm1160_vm0, %v1721_v57, %v1720_v47  ;;  %v7482_v53 = vld [vmem:[#allocation3 + $0x63] sm:$0x1]  ;;  %v1997_v37 = vsel %vm1157_vm15, %v1996_v56, %v6939_v32 }
 0x164   : > { %v2013_v60 = vsel %vm1160_vm0, %v9565_v54, %v2011_v20  ;;  %v7462_v49 = vsel %vm1166_vm2, %v9567_v46, %v1738_v1  ;;  %v9569_v59 = vrot.slane %v9568_v10, 3  ;;  %v7477_v54 = vld [vmem:[#allocation3 + $0x120] sm:$0x1]  ;;  %v9570_v24 = vld [vmem:[#allocation22_spill] sm:$0xff]  ;;  %v7489_v46 = vld [vmem:[#allocation3 + $0x64] sm:$0x1]  ;;  %v1999_v47 = vsel %vm1160_vm0, %v1998_v13, %v1997_v37  ;;  %987 = vrot.lane.b32.xlu0 %v7224_v48, %s6230_s30 }
 0x165   : > { %v9571_v25 = vrot.slane %v9570_v24, 2  ;;  %v9572_v62 = vld [vmem:[#allocation29_spill] sm:$0xff]  ;;  %v7496_v57 = vld [vmem:[#allocation3 + $0x121] sm:$0x1]  ;;  %v7499_v51 = vld [vmem:[#allocation3 + $0x122] sm:$0x1] }
 0x166   : > { %v2290_v1 = vsel %vm1160_vm0, %v9569_v59, %v2288_v39  ;;  %v9573_v10 = vrot.slane %v9572_v62, 4  ;;  %v719_v59 = vpop.permute.xlu1 %718  ;;  %v2550_v56 = vrot.slane %v7452_v41, 4  ;;  %v7505_v24 = vld [vmem:[#allocation3 + $0x114] sm:$0x1]  ;;  %v7509_v62 = vld [vmem:[#allocation3 + $0x123] sm:$0x1] }
 0x167   : > { %v2015_v17 = vsel %vm1163_vm1, %v9571_v25, %v2013_v60  ;;  %v2274_v60 = vsel %vm1157_vm15, %v2273_v63, %v6960_v38  ;;  %v1723_v25 = vrot.slane %v7470_v35, 2  ;;  %v7514_v37 = vld [vmem:[#allocation3 + $0x65] sm:$0x1]  ;;  %v2552_v32 = vrot.slane %v7466_v40, 3  ;;  %v7517_v18 = vld [vmem:[#allocation3 + $0x115] sm:$0x1]  ;;  %v875_v63 = vpop.permute.xlu0 %874 }
 0x168   : > { %v2565_v39 = vsel %vm1157_vm15, %v9573_v10, %v2563_v43  ;;  %v746_v43 = vsel %vm460_vm12, %v717_v33, %v719_v59  ;;  %v9574_v10 = vld [vmem:[#allocation26_spill] sm:$0xff]  ;;  %v7519_v38 = vld [vmem:[#allocation3 + $0x46] sm:$0x1]  ;;  %v6161_v41 = vld [vmem:[#allocation2 + $0xa8] sm:$0xff]  ;;  %v2000_v35 = vrot.slane %v7482_v53, 2  ;;  %v2277_v59 = vrot.slane %v7489_v46, 2  ;;  %1023 = vrot.lane.b32.xlu0 %v7132_v31, %s6230_s30 }
 0x169   : > { %v9575_v20 = vrot.slane %v9574_v10, 2  ;;  %771 = vst [vmem:[#allocation3 + $0x15f] sm:$0xfe] %v746_v43  ;;  %368 = vrot.lane.b32.xlu1 %v6161_v41, %s6231_s4  ;;  %v7528_v40 = vld [vmem:[#allocation3 + $0x124] sm:$0x1]  ;;  %v2276_v53 = vsel %vm1160_vm0, %v2275_v4, %v2274_v60 }
 0x16a   : > { %v1648_v27 = vld [vmem:[#allocation3 + $0x72] sm:$0x1]  ;;  %v1925_v43 = vld [vmem:[#allocation3 + $0x73] sm:$0x1]  ;;  %v9578_v23 = vld [vmem:[#allocation23_spill] sm:$0xff]  ;;  %v877_v46 = vpop.permute.xlu1 %876  ;;  %v2278_v31 = vsel %vm1163_vm1, %v2277_v59, %v2276_v53  ;;  %v9589_v59 = vrot.slane %v7431_v50, 7 }
 0x16b   : > { %v2292_v13 = vsel %vm1163_vm1, %v9575_v20, %v2290_v1  ;;  %v9576_v20 = vld [vmem:[#allocation30_spill] sm:$0xff]  ;;  %v9579_v30 = vrot.slane %v9578_v23, 1  ;;  %v2554_v23 = vrot.slane %v7514_v37, 2  ;;  %v904_v48 = vsel %vm370_vm14, %v875_v63, %v877_v46  ;;  %v2479_v60 = vld [vmem:[#allocation3 + $0x75] sm:$0x1] }
 0x16c   : > { %v9577_v1 = vrot.slane %v9576_v20, 3  ;;  %v2202_v20 = vld [vmem:[#allocation3 + $0x74] sm:$0x1]  ;;  %v7561_v37 = vld [vmem:[#allocation3 + $0x56] sm:$0x1]  ;;  %v2556_v16 = vrot.slane %v2479_v60, 1 }
 0x16d   : > { %v7534_v5 = vsel %vm1166_vm2, %v9579_v30, %v2015_v17  ;;  %v7547_v30 = vld [vmem:[#allocation3 + $0x125] sm:$0x1]  ;;  %v9582_v17 = vrot.slane %v7390_v9, 6  ;;  %929 = vst [vmem:[#allocation3 + $0x1de] sm:$0xfc] %v904_v48  ;;  %989 = vrot.lane.b32.xlu1 %v6162_v44, %s6230_s30  ;;  %v729_v9 = vpop.permute.xlu0 %728  ;;  %v2551_v48 = vsel %vm1157_vm15, %v2550_v56, %v9585_v3  ;;  %v9591_v50 = vrot.slane %v7464_v7, 7 }
 0x16e   : > { %v2567_v10 = vsel %vm1160_vm0, %v9577_v1, %v2565_v39  ;;  %v9580_v1 = vld [vmem:[#allocation27_spill] sm:$0xff]  ;;  %v731_v58 = vpop.permute.xlu1 %730  ;;  %v7581_v3 = vld [vmem:[#allocation3 + $0x131] sm:$0x1]  ;;  %v7583_v56 = vld [vmem:[#allocation3 + $0x132] sm:$0x1] }
 0x16f   : > { %v9581_v8 = vrot.slane %v9580_v1, 1  ;;  %v7553_v4 = vsel %vm1151_vm11, %v9582_v17, %v7442_v2  ;;  %v9583_v39 = vld [vmem:[#allocation31_spill] sm:$0xff]  ;;  %v1725_v2 = vrot.slane %v1648_v27, 1  ;;  %v2002_v17 = vrot.slane %v1925_v43, 1 }
 0x170   : > { %v9584_v33 = vrot.slane %v9583_v39, 2  ;;  %v7565_v46 = vld [vmem:[#allocation3 + $0x66] sm:$0x1]  ;;  %v2827_v39 = vrot.slane %v7519_v38, 4  ;;  %v2001_v27 = vsel %vm1163_vm1, %v2000_v35, %v1999_v47  ;;  %v1657_v43 = vld [vmem:[#allocation3 + $0x102] sm:$0x1]  ;;  %v2553_v38 = vsel %vm1160_vm0, %v2552_v32, %v2551_v48 }
 0x171   : > { %v7544_v34 = vsel %vm1166_vm2, %v9581_v8, %v2292_v13  ;;  %v1724_v13 = vsel %vm1163_vm1, %v1723_v25, %v7480_v55  ;;  %v2279_v8 = vrot.slane %v2202_v20, 1  ;;  %v1934_v63 = vld [vmem:[#allocation3 + $0x103] sm:$0x1]  ;;  %v749_v55 = vsel %vm460_vm12, %v729_v9, %v731_v58  ;;  %v521_v25 = vld [vmem:[#allocation2 + $0x50] sm:$0x1]  ;;  %v9586_v35 = vld [vmem:[#allocation32_spill] sm:$0xff]  ;;  %1025 = vrot.lane.b32.xlu1 %v6161_v41, %s6230_s30  ;;  %v887_v58 = vpop.permute.xlu0 %886 }
 0x172   : > { %v2569_v1 = vsel %vm1163_vm1, %v9584_v33, %v2567_v10  ;;  %v1086_v33 = vld [vmem:[#allocation3 + $0x100] sm:$0x1]  ;;  %v1380_v10 = vld [vmem:[#allocation3 + $0x101] sm:$0x1]  ;;  %v7579_v20 = vld [vmem:[#allocation3 + $0x130] sm:$0x1]  ;;  %v2555_v47 = vsel %vm1163_vm1, %v2554_v23, %v2553_v38  ;;  %v7602_v23 = vsel %vm1166_vm2, %v1725_v2, %v1724_v13  ;;  %579 = vrot.lane.b32.xlu0 %v521_v25, %s6231_s4 }
 0x173   : > { %v9587_v44 = vrot.slane %v9586_v35, 1  ;;  %774 = vst [vmem:[#allocation3 + $0x16f] sm:$0xfe] %v749_v55  ;;  %v1090_v60 = vld [vmem:[#allocation3 + $0x140] sm:$0x1]  ;;  %v9588_v9 = vrot.slane %v7425_v6, 7  ;;  %v1465_v53 = vsel %vm1148_vm10, %v9589_v59, %v1380_v10  ;;  %v2019_v10 = vsel %vm1148_vm10, %v9591_v50, %v1934_v63 }
 0x174   : > { %v7596_v42 = vld [vmem:[#allocation3 + $0x141] sm:$0x1]  ;;  %v7609_v41 = vld [vmem:[#allocation3 + $0x1c0] sm:$0x1]  ;;  %v9590_v6 = vrot.slane %v7433_v14, 7  ;;  %v7620_v13 = vsel %vm1166_vm2, %v2279_v8, %v2278_v31  ;;  %v1186_v55 = vrot.slane %v7579_v20, 5 }
 0x175   : > { %v7590_v32 = vsel %vm1166_vm2, %v9587_v44, %v2569_v1  ;;  %v1183_v48 = vsel %vm1148_vm10, %v9588_v9, %v1086_v33  ;;  %v7605_v1 = vsel %vm1166_vm2, %v2002_v17, %v2001_v27  ;;  %v7607_v44 = vld [vmem:[#allocation3 + $0x133] sm:$0x1]  ;;  %v7611_v38 = vld [vmem:[#allocation3 + $0x1c1] sm:$0x1]  ;;  %v889_v17 = vpop.permute.xlu1 %888  ;;  %v522_v27 = vld [vmem:[#allocation2 + $0x58] sm:$0x1]  ;;  %v996_v25 = vpop.permute.xlu0 %995 }
 0x176   : > { %v1742_v33 = vsel %vm1148_vm10, %v9590_v6, %v1657_v43  ;;  %v1468_v35 = vrot.slane %v7581_v3, 5  ;;  %v7628_v43 = vsel %vm1166_vm2, %v2556_v16, %v2555_v47  ;;  %v907_v7 = vsel %vm370_vm14, %v887_v58, %v889_v17  ;;  %v527_v63 = vld [vmem:[#allocation2 + $0x80] sm:$0x1]  ;;  %581 = vrot.lane.b32.xlu1 %v522_v27, %s6231_s4  ;;  %v1091_v20 = vld [vmem:[#allocation3 + $0x150] sm:$0x1] }
 0x177   : > { %v1188_v8 = vrot.slane %v1090_v60, 4  ;;  %v1470_v31 = vrot.slane %v7596_v42, 4  ;;  %932 = vst [vmem:[#allocation3 + $0x1ee] sm:$0xfc] %v907_v7  ;;  %v1202_v3 = vrot.slane %v7609_v41, 4  ;;  %v1484_v6 = vrot.slane %v7611_v38, 4  ;;  %591 = vrot.lane.b32.xlu0 %v527_v63, %s6231_s4 }
 0x178   : > { %v1385_v59 = vld [vmem:[#allocation3 + $0x151] sm:$0x1]  ;;  %v9592_v16 = vld [vmem:[#allocation35_spill] sm:$0xff]  ;;  %v9593_v58 = vrot.slane %v7403_v36, 6  ;;  %v528_v60 = vld [vmem:[#allocation2 + $0x88] sm:$0x1] }
 0x179   : > { %v7638_v47 = vsel %vm1157_vm15, %v2827_v39, %v9592_v16  ;;  %v1092_v50 = vld [vmem:[#allocation3 + $0x160] sm:$0x1]  ;;  %v1099_v17 = vld [vmem:[#allocation3 + $0x1d0] sm:$0x1]  ;;  %v9594_v27 = vrot.slane %v7477_v54, 6  ;;  %v9595_v38 = vrot.slane %v7496_v57, 6 }
 0x17a   : > { %v7644_v42 = vsel %vm1151_vm11, %v9593_v58, %v7445_v52  ;;  %v1393_v7 = vld [vmem:[#allocation3 + $0x1d1] sm:$0x1]  ;;  %v998_v52 = vpop.permute.xlu1 %997  ;;  %v1100_v16 = vld [vmem:[#allocation3 + $0x1e0] sm:$0x1]  ;;  %v1386_v58 = vld [vmem:[#allocation3 + $0x161] sm:$0x1]  ;;  %593 = vrot.lane.b32.xlu1 %v528_v60, %s6231_s4 }
 0x17b   : > { %v1185_v41 = vsel %vm1151_vm11, %v9594_v27, %v1183_v48  ;;  %v1467_v2 = vsel %vm1151_vm11, %v9595_v38, %v1465_v53  ;;  %v1394_v9 = vld [vmem:[#allocation3 + $0x1e1] sm:$0x1]  ;;  %v9596_v54 = vrot.slane %v7499_v51, 6  ;;  %v9597_v57 = vrot.slane %v7509_v62, 6  ;;  %v1093_v36 = vld [vmem:[#allocation3 + $0x170] sm:$0x1]  ;;  %v1008_v62 = vpop.permute.xlu0 %1007 }
 0x17c   : > { %v1034_v63 = vsel %vm460_vm12, %v996_v25, %v998_v52  ;;  %v1187_v39 = vsel %vm1154_vm13, %v1186_v55, %v1185_v41  ;;  %v1190_v51 = vrot.slane %v1091_v20, 3  ;;  %v1387_v14 = vld [vmem:[#allocation3 + $0x171] sm:$0x1]  ;;  %v1486_v27 = vrot.slane %v1393_v7, 3  ;;  %v515_v61 = vld [vmem:[#allocation2 + $0x20] sm:$0x1] }
 0x17d   : > { %v7660_v48 = vsel %vm1151_vm11, %v9596_v54, %v1742_v33  ;;  %v7665_v53 = vsel %vm1151_vm11, %v9597_v57, %v2019_v10  ;;  %v1472_v33 = vrot.slane %v1385_v59, 3  ;;  %1059 = vst [vmem:[#allocation3 + $0x20e] sm:$0xfc] %v1034_v63  ;;  %v1189_v10 = vsel %vm1157_vm15, %v1188_v8, %v1187_v39  ;;  %v516_v55 = vld [vmem:[#allocation2 + $0x28] sm:$0x1]  ;;  %567 = vrot.lane.b32.xlu0 %v515_v61, %s6231_s4  ;;  %v9598_v59 = vld [vmem:[#allocation65_spill] sm:$0xff] }
 0x17e   : > { %v1204_v54 = vrot.slane %v1099_v17, 3  ;;  %v1469_v57 = vsel %vm1154_vm13, %v1468_v35, %v1467_v2  ;;  %v1192_v38 = vrot.slane %v1092_v50, 2  ;;  %v1206_v0 = vrot.slane %v1100_v16, 2  ;;  %v1010_v26 = vpop.permute.xlu1 %1009  ;;  %v533_v2 = vld [vmem:[#allocation2 + $0xb0] sm:$0x1]  ;;  %v9599_v39 = vld [vmem:[#allocation66_spill] sm:$0xff]  ;;  %569 = vrot.lane.b32.xlu1 %v516_v55, %s6231_s4 }
 0x17f   : > { %v1474_v25 = vrot.slane %v1386_v58, 2  ;;  %v1488_v52 = vrot.slane %v1394_v9, 2  ;;  %v1194_v20 = vrot.slane %v1093_v36, 1  ;;  %v1203_v60 = vsel %vm1157_vm15, %v1202_v3, %v9598_v59  ;;  %v1101_v35 = vld [vmem:[#allocation3 + $0x1f0] sm:$0x1]  ;;  %v984_v3 = vpop.permute.xlu0 %983 }
 0x180   : > { %v1471_v41 = vsel %vm1157_vm15, %v1470_v31, %v1469_v57  ;;  %v1476_v8 = vrot.slane %v1387_v14, 1  ;;  %v1037_v17 = vsel %vm460_vm12, %v1008_v62, %v1010_v26  ;;  %v1191_v50 = vsel %vm1160_vm0, %v1190_v51, %v1189_v10  ;;  %v1395_v7 = vld [vmem:[#allocation3 + $0x1f1] sm:$0x1]  ;;  %v2211_v61 = vld [vmem:[#allocation3 + $0x104] sm:$0x1] }
 0x181   : > { %v1473_v9 = vsel %vm1160_vm0, %v1472_v33, %v1471_v41  ;;  %v1485_v16 = vsel %vm1157_vm15, %v1484_v6, %v9599_v39  ;;  %1062 = vst [vmem:[#allocation3 + $0x21e] sm:$0xfc] %v1037_v17  ;;  %v1205_v31 = vsel %vm1160_vm0, %v1204_v54, %v1203_v60  ;;  %v1208_v14 = vrot.slane %v1101_v35, 1  ;;  %v7688_v58 = vld [vmem:[#allocation3 + $0x134] sm:$0x1]  ;;  %603 = vrot.lane.b32.xlu0 %v533_v2, %s6231_s4 }
 0x182   : > { %v1487_v26 = vsel %vm1160_vm0, %v1486_v27, %v1485_v16  ;;  %v1490_v36 = vrot.slane %v1395_v7, 1  ;;  %v2488_v63 = vld [vmem:[#allocation3 + $0x105] sm:$0x1]  ;;  %v1193_v51 = vsel %vm1163_vm1, %v1192_v38, %v1191_v50  ;;  %v1207_v33 = vsel %vm1163_vm1, %v1206_v0, %v1205_v31  ;;  %v1661_v10 = vld [vmem:[#allocation3 + $0x142] sm:$0x1]  ;;  %v986_v54 = vpop.permute.xlu1 %985 }
 0x183   : > { %v1475_v6 = vsel %vm1163_vm1, %v1474_v25, %v1473_v9  ;;  %v1489_v62 = vsel %vm1163_vm1, %v1488_v52, %v1487_v26  ;;  %v7694_v57 = vld [vmem:[#allocation3 + $0x143] sm:$0x1]  ;;  %v7696_v55 = vld [vmem:[#allocation3 + $0x135] sm:$0x1]  ;;  %v1195_v27 = vsel %vm1166_vm2, %v1194_v20, %v1193_v51  ;;  %v1209_v59 = vsel %vm1166_vm2, %v1208_v14, %v1207_v33  ;;  %v7703_v60 = vld [vmem:[#allocation3 + $0x1c2] sm:$0x1] }
 0x184   : > { %v1477_v38 = vsel %vm1166_vm2, %v1476_v8, %v1475_v6  ;;  %v1491_v0 = vsel %vm1166_vm2, %v1490_v36, %v1489_v62  ;;  %v7705_v25 = vld [vmem:[#allocation3 + $0x1c3] sm:$0x1]  ;;  %v7707_v52 = vld [vmem:[#allocation3 + $0x144] sm:$0x1]  ;;  %v1031_v41 = vsel %vm460_vm12, %v984_v3, %v986_v54  ;;  %v534_v17 = vld [vmem:[#allocation2 + $0xb8] sm:$0x1]  ;;  %v6013_v35 = vpack.c.bf16 %v1209_v59, %v1195_v27  ;;  %v1020_v8 = vpop.permute.xlu0 %1019 }
 0x185   : > { %v6019_v50 = vpack.c.bf16 %v1491_v0, %v1477_v38  ;;  %v648_v2 = vld [vmem:[#allocation2 + $0x20] sm:$0x1]  ;;  %v9600_v20 = vrot.slane %v7505_v24, 7  ;;  %1056 = vst [vmem:[#allocation3 + $0x1fe] sm:$0xfc] %v1031_v41  ;;  %605 = vrot.lane.b32.xlu1 %v534_v17, %s6231_s4  ;;  %v1747_v9 = vrot.slane %v1661_v10, 4 }
 0x186   : > { %v2024_v39 = vrot.slane %v7694_v57, 4  ;;  %v2299_v16 = vrot.slane %v7688_v58, 5  ;;  %v7716_v31 = vld [vmem:[#allocation3 + $0x145] sm:$0x1]  ;;  %v9601_v3 = vrot.slane %v7517_v18, 7  ;;  %6014 = vmatpush3.bf16.msra.mxu0 %v6013_v35  ;;  %v2038_v36 = vrot.slane %v7705_v25, 4  ;;  %v1022_v58 = vpop.permute.xlu1 %1021  ;;  %700 = vrot.lane.b32.xlu0 %v648_v2, %s6230_s30 }
 0x187   : > { %v2296_v7 = vsel %vm1148_vm10, %v9600_v20, %v2211_v61  ;;  %6020 = vmatpush3.bf16.msra.mxu1 %v6019_v50  ;;  %v649_v24 = vld [vmem:[#allocation2 + $0x28] sm:$0x1]  ;;  %v7721_v26 = vld [vmem:[#allocation3 + $0x152] sm:$0x1]  ;;  %v1761_v61 = vrot.slane %v7703_v60, 4  ;;  %v2301_v51 = vrot.slane %v7707_v52, 4  ;;  %v1040_v38 = vsel %vm460_vm12, %v1020_v8, %v1022_v58 }
 0x188   : > { %v2573_v14 = vsel %vm1148_vm10, %v9601_v3, %v2488_v63  ;;  %v2576_v33 = vrot.slane %v7696_v55, 5  ;;  %v9602_v6 = vmov 0.0   ;;  %v9603_v18 = vrot.slane %v7583_v56, 5  ;;  %v1939_v62 = vld [vmem:[#allocation3 + $0x153] sm:$0x1]  ;;  %v576_v17 = vpop.permute.xlu0 %575 }
 0x189   : > { %5809 = vmatprep.subr.mxu0 %v9602_v6  ;;  %v2223_v10 = vld [vmem:[#allocation3 + $0x1c4] sm:$0x1]  ;;  %v9604_v57 = vrot.slane %v7528_v40, 6  ;;  %v7736_v27 = vld [vmem:[#allocation3 + $0x1c5] sm:$0x1]  ;;  %v9605_v55 = vrot.slane %v7561_v37, 3  ;;  %5822 = vmatprep.subr.mxu1 %v9602_v6 }
 0x18a   : > { %v1746_v63 = vsel %vm1154_vm13, %v9603_v18, %v7660_v48  ;;  %v806_v0 = vld [vmem:[#allocation2 + $0x20] sm:$0x3]  ;;  %v7744_v56 = vld [vmem:[#allocation3 + $0x1d2] sm:$0x1]  ;;  %v7746_v48 = vld [vmem:[#allocation3 + $0x1d3] sm:$0x1]  ;;  %702 = vrot.lane.b32.xlu1 %v649_v24, %s6230_s30  ;;  %v578_v24 = vpop.permute.xlu1 %577 }
 0x18b   : > { %v2298_v54 = vsel %vm1151_vm11, %v9604_v57, %v2296_v7  ;;  %v2830_v59 = vsel %vm1160_vm0, %v9605_v55, %v7638_v47  ;;  %v9606_v40 = vrot.slane %v7607_v44, 5  ;;  %v2216_v25 = vld [vmem:[#allocation3 + $0x154] sm:$0x1]  ;;  %v9607_v52 = vrot.slane %v7547_v30, 6  ;;  %1065 = vst [vmem:[#allocation3 + $0x22e] sm:$0xfc] %v1040_v38  ;;  %858 = vrot.lane.b32.xlu0 %v806_v0, %s6231_s4 }
 0x18c   : > { %v9608_v47 = vrot.slane %v7565_v46, 2  ;;  %v1748_v35 = vsel %vm1157_vm15, %v1747_v9, %v1746_v63  ;;  %v1749_v44 = vrot.slane %v7721_v26, 3  ;;  %v2300_v30 = vsel %vm1154_vm13, %v2299_v16, %v2298_v54  ;;  %v7766_v50 = vld [vmem:[#allocation3 + $0x155] sm:$0x1]  ;;  %v1103_v2 = vld [vmem:[#allocation3 + $0x210] sm:$0x1]  ;;  %v588_v55 = vpop.permute.xlu0 %587 }
 0x18d   : > { %v2023_v60 = vsel %vm1154_vm13, %v9606_v40, %v7665_v53  ;;  %v2575_v37 = vsel %vm1151_vm11, %v9607_v52, %v2573_v14  ;;  %v7763_v53 = vld [vmem:[#allocation3 + $0x1d4] sm:$0x1]  ;;  %v2578_v46 = vrot.slane %v7716_v31, 4  ;;  %v1397_v20 = vld [vmem:[#allocation3 + $0x211] sm:$0x1]  ;;  %v2026_v8 = vrot.slane %v1939_v62, 3 }
 0x18e   : > { %v7758_v41 = vsel %vm1163_vm1, %v9608_v47, %v2830_v59  ;;  %v2025_v7 = vsel %vm1157_vm15, %v2024_v39, %v2023_v60  ;;  %v2315_v3 = vrot.slane %v2223_v10, 4  ;;  %v2577_v14 = vsel %vm1154_vm13, %v2576_v33, %v2575_v37  ;;  %v807_v9 = vld [vmem:[#allocation2 + $0x28] sm:$0x3]  ;;  %v654_v63 = vld [vmem:[#allocation2 + $0x50] sm:$0x1]  ;;  %v9609_v10 = vld [vmem:[#allocation74_spill] sm:$0xff] }
 0x18f   : > { %v1763_v26 = vrot.slane %v7744_v56, 3  ;;  %v2040_v16 = vrot.slane %v7746_v48, 3  ;;  %v2303_v58 = vrot.slane %v2216_v25, 3  ;;  %v2592_v31 = vrot.slane %v7736_v27, 4  ;;  %v1102_v39 = vld [vmem:[#allocation3 + $0x200] sm:$0x1]  ;;  %860 = vrot.lane.b32.xlu1 %v807_v9, %s6231_s4  ;;  %712 = vrot.lane.b32.xlu0 %v654_v63, %s6230_s30 }
 0x190   : > { %v611_v18 = vsel %vm370_vm14, %v576_v17, %v578_v24  ;;  %v1396_v62 = vld [vmem:[#allocation3 + $0x201] sm:$0x1]  ;;  %v1762_v33 = vsel %vm1157_vm15, %v1761_v61, %v9609_v10  ;;  %v2317_v57 = vrot.slane %v7763_v53, 3  ;;  %v1104_v59 = vld [vmem:[#allocation3 + $0x220] sm:$0x1]  ;;  %v1210_v38 = vrot.slane %v1103_v2, 7 }
 0x191   : > { %636 = vst [vmem:[#allocation3 + $0x117] sm:$0xff] %v611_v18  ;;  %v1398_v0 = vld [vmem:[#allocation3 + $0x221] sm:$0x1]  ;;  %v1492_v27 = vrot.slane %v1397_v20, 7  ;;  %v2302_v60 = vsel %vm1157_vm15, %v2301_v51, %v2300_v30  ;;  %v655_v25 = vld [vmem:[#allocation2 + $0x58] sm:$0x1]  ;;  %v7787_v37 = vsel %vm1160_vm0, %v1749_v44, %v1748_v35  ;;  %v7792_v17 = vsel %vm1160_vm0, %v2026_v8, %v2025_v7 }
 0x192   : > { %v9610_v56 = vld [vmem:[#allocation75_spill] sm:$0xff]  ;;  %v9611_v2 = vld [vmem:[#allocation33_spill] sm:$0xff]  ;;  %v2579_v24 = vsel %vm1157_vm15, %v2578_v46, %v2577_v14  ;;  %v1211_v51 = vsel %vm1148_vm10, %v1210_v38, %v1102_v39  ;;  %v7803_v18 = vsel %vm1160_vm0, %v2303_v58, %v2302_v60  ;;  %v9612_v8 = vld [vmem:[#allocation34_spill] sm:$0xff]  ;;  %v1212_v63 = vrot.slane %v1104_v59, 6  ;;  %v564_v38 = vpop.permute.xlu0 %563 }
 0x193   : > { %v2039_v40 = vsel %vm1157_vm15, %v2038_v36, %v9610_v56  ;;  %v7784_v52 = vld [vmem:[#allocation3 + $0x162] sm:$0x1]  ;;  %v7789_v47 = vld [vmem:[#allocation3 + $0x163] sm:$0x1]  ;;  %v2316_v20 = vsel %vm1157_vm15, %v2315_v3, %v9611_v2  ;;  %v590_v36 = vpop.permute.xlu1 %589  ;;  %v1493_v30 = vsel %vm1148_vm10, %v1492_v27, %v1396_v62  ;;  %v1672_v9 = vld [vmem:[#allocation3 + $0x1f2] sm:$0x1]  ;;  %v7809_v3 = vsel %vm1157_vm15, %v2592_v31, %v9612_v8  ;;  %714 = vrot.lane.b32.xlu1 %v655_v25, %s6230_s30 }
 0x194   : > { %v1671_v61 = vld [vmem:[#allocation3 + $0x1e2] sm:$0x1]  ;;  %v1948_v35 = vld [vmem:[#allocation3 + $0x1e3] sm:$0x1]  ;;  %v7800_v44 = vld [vmem:[#allocation3 + $0x1f3] sm:$0x1]  ;;  %v614_v46 = vsel %vm370_vm14, %v588_v55, %v590_v36  ;;  %v1764_v62 = vsel %vm1160_vm0, %v1763_v26, %v1762_v33  ;;  %v1213_v31 = vsel %vm1151_vm11, %v1212_v63, %v1211_v51  ;;  %v7842_v48 = vsel %vm1160_vm0, %v2317_v57, %v2316_v20 }
 0x195   : > { %v7805_v7 = vld [vmem:[#allocation3 + $0x1d5] sm:$0x1]  ;;  %v1105_v14 = vld [vmem:[#allocation3 + $0x230] sm:$0x1]  ;;  %v1399_v39 = vld [vmem:[#allocation3 + $0x231] sm:$0x1] }
 0x196   : > { %v1494_v10 = vrot.slane %v1398_v0, 6  ;;  %639 = vst [vmem:[#allocation3 + $0x127] sm:$0xff] %v614_v46  ;;  %v1214_v58 = vrot.slane %v1105_v14, 5  ;;  %v1496_v27 = vrot.slane %v1399_v39, 5  ;;  %v1664_v56 = vld [vmem:[#allocation3 + $0x172] sm:$0x1] }
 0x197   : > { %v1751_v60 = vrot.slane %v7784_v52, 2  ;;  %v1765_v2 = vrot.slane %v1671_v61, 2  ;;  %v812_v36 = vld [vmem:[#allocation2 + $0x50] sm:$0x3]  ;;  %v1767_v59 = vrot.slane %v1672_v9, 1  ;;  %v2042_v0 = vrot.slane %v1948_v35, 2  ;;  %v566_v54 = vpop.permute.xlu1 %565 }
 0x198   : > { %v1495_v55 = vsel %vm1151_vm11, %v1494_v10, %v1493_v30  ;;  %v1941_v8 = vld [vmem:[#allocation3 + $0x173] sm:$0x1]  ;;  %v1215_v26 = vsel %vm1154_vm13, %v1214_v58, %v1213_v31  ;;  %v813_v25 = vld [vmem:[#allocation2 + $0x58] sm:$0x3]  ;;  %870 = vrot.lane.b32.xlu0 %v812_v36, %s6231_s4  ;;  %v7823_v52 = vld [vmem:[%s9239_s1] sm:$0xff]  ;;  %v2028_v61 = vrot.slane %v7789_v47, 2  ;;  %v608_v30 = vsel %vm370_vm14, %v564_v38, %v566_v54  ;;  %v600_v54 = vpop.permute.xlu0 %599 }
 0x199   : > { %v1497_v33 = vsel %vm1154_vm13, %v1496_v27, %v1495_v55  ;;  %v2044_v51 = vrot.slane %v7800_v44, 1  ;;  %5810 = vmatpush3.msk.msra.mxu0 %vm1224_vm3, %v1215_v26  ;;  %v1753_v9 = vrot.slane %v1664_v56, 1  ;;  %v2041_v35 = vsel %vm1160_vm0, %v2040_v16, %v2039_v40  ;;  %v1674_v46 = vld [vmem:[#allocation3 + $0x212] sm:$0x1]  ;;  %v7833_v14 = vld [vmem:[#allocation3 + $0x164] sm:$0x1]  ;;  %872 = vrot.lane.b32.xlu1 %v813_v25, %s6231_s4 }
 0x19a   : > { %5823 = vmatpush3.msk.msra.mxu1 %vm1224_vm3, %v1497_v33  ;;  %v2594_v63 = vrot.slane %v7805_v7, 3  ;;  %633 = vst [vmem:[#allocation3 + $0x107] sm:$0xff] %v608_v30  ;;  %6021 = vmatprep.subr.bf16.mxu0 %v9550_v12  ;;  %v660_v47 = vld [vmem:[#allocation2 + $0x80] sm:$0x1]  ;;  %v1766_v44 = vsel %vm1163_vm1, %v1765_v2, %v1764_v62  ;;  %v2030_v39 = vrot.slane %v1941_v8, 1  ;;  %v9613_v16 = vrot.slane %v7766_v50, 3 }
 0x19b   : > { %6027 = vmatprep.subr.bf16.mxu1 %v9550_v12  ;;  %5812 = vmatmul.mubr.msk.f32.vlgmr.msra.gmra.mrb[0].mxu0 %vm1220_vm4, %v7823_v52  ;;  %v661_v7 = vld [vmem:[#allocation2 + $0x88] sm:$0x1]  ;;  %v1752_v10 = vsel %vm1163_vm1, %v1751_v60, %v7787_v37  ;;  %v1768_v62 = vsel %vm1166_vm2, %v1767_v59, %v1766_v44  ;;  %v2043_v53 = vsel %vm1163_vm1, %v2042_v0, %v2041_v35  ;;  %v1951_v57 = vld [vmem:[#allocation3 + $0x213] sm:$0x1]  ;;  %v7856_v20 = vld [vmem:[#allocation3 + $0x1e4] sm:$0x1]  ;;  %v602_v58 = vpop.permute.xlu1 %601 }
 0x19c   : > { %v7847_v40 = vsel %vm1160_vm0, %v9613_v16, %v2579_v24  ;;  %v7858_v50 = vld [vmem:[#allocation3 + $0x1e5] sm:$0x1]  ;;  %v7860_v24 = vld [vmem:[#allocation3 + $0xb6] sm:$0x1]  ;;  %5825 = vmatmul.mubr.msk.f32.vlgmr.msra.gmra.mrb[0].mxu1 %vm1220_vm4, %v7823_v52  ;;  %v9614_v38 = vpack.c.bf16 %v7462_v49, %v7602_v23  ;;  %v2029_v37 = vsel %vm1163_vm1, %v2028_v61, %v7792_v17  ;;  %v2045_v27 = vsel %vm1166_vm2, %v2044_v51, %v2043_v53  ;;  %v1673_v56 = vld [vmem:[#allocation3 + $0x202] sm:$0x1]  ;;  %v697_v33 = vpop.permute.xlu0 %696 }
 0x19d   : > { %v1676_v60 = vld [vmem:[#allocation3 + $0x232] sm:$0x1]  ;;  %v1769_v2 = vrot.slane %v1674_v46, 7  ;;  %v2305_v31 = vrot.slane %v7833_v14, 2  ;;  %v7871_v55 = vld [vmem:[#allocation3 + $0xb7] sm:$0x1]  ;;  %v9615_v36 = vpack.c.bf16 %v7534_v5, %v7605_v1  ;;  %v617_v49 = vsel %vm370_vm14, %v600_v54, %v602_v58  ;;  %724 = vrot.lane.b32.xlu0 %v660_v47, %s6230_s30  ;;  %726 = vrot.lane.b32.xlu1 %v661_v7, %s6230_s30 }
 0x19e   : > { %6023 = vmatpush3.bf16.msra.mxu0 %v9614_v38  ;;  %v1754_v23 = vsel %vm1166_vm2, %v1753_v9, %v1752_v10  ;;  %v1675_v17 = vld [vmem:[#allocation3 + $0x222] sm:$0x1]  ;;  %v1950_v59 = vld [vmem:[#allocation3 + $0x203] sm:$0x1]  ;;  %v1953_v8 = vld [vmem:[#allocation3 + $0x233] sm:$0x1]  ;;  %v2595_v26 = vsel %vm1160_vm0, %v2594_v63, %v7809_v3  ;;  %v2031_v1 = vsel %vm1166_vm2, %v2030_v39, %v2029_v37  ;;  %5837 = vmatprep.mubr.msk.f32.mxu0 %vm6233_vm9, %v9602_v6 }
 0x19f   : > { %6029 = vmatpush3.bf16.msra.mxu1 %v9615_v36  ;;  %v7879_v0 = vld [vmem:[#allocation3 + $0x165] sm:$0x1]  ;;  %642 = vst [vmem:[#allocation3 + $0x137] sm:$0xff] %v617_v49  ;;  %6024 = vmatprep.subr.bf16.mxu0 %v9550_v12  ;;  %v6025_v5 = vpack.c.bf16 %v1768_v62, %v1754_v23  ;;  %v818_v25 = vld [vmem:[#allocation2 + $0x80] sm:$0x3]  ;;  %v2046_v51 = vrot.slane %v1951_v57, 7  ;;  %v6031_v35 = vpack.c.bf16 %v2045_v27, %v2031_v1  ;;  %v699_v47 = vpop.permute.xlu1 %698 }
 0x1a0   : > { %v1952_v61 = vld [vmem:[#allocation3 + $0x223] sm:$0x1]  ;;  %v2226_v30 = vld [vmem:[#allocation3 + $0x1f4] sm:$0x1]  ;;  %v2319_v9 = vrot.slane %v7856_v20, 2  ;;  %6030 = vmatprep.subr.bf16.mxu1 %v9550_v12  ;;  %v1770_v3 = vsel %vm1148_vm10, %v1769_v2, %v1673_v56  ;;  %v1773_v46 = vrot.slane %v1676_v60, 5  ;;  %5850 = vmatprep.mubr.msk.f32.mxu1 %vm6233_vm9, %v9602_v6  ;;  %v741_v62 = vsel %vm460_vm12, %v697_v33, %v699_v47  ;;  %v855_v58 = vpop.permute.xlu0 %854 }
 0x1a1   : > { %v2218_v14 = vld [vmem:[#allocation3 + $0x174] sm:$0x1]  ;;  %v2503_v63 = vld [vmem:[#allocation3 + $0x1f5] sm:$0x1]  ;;  %v2596_v54 = vrot.slane %v7858_v50, 2  ;;  %v1771_v44 = vrot.slane %v1675_v17, 6  ;;  %v2047_v39 = vsel %vm1148_vm10, %v2046_v51, %v1950_v59  ;;  %882 = vrot.lane.b32.xlu0 %v818_v25, %s6231_s4  ;;  %v2306_v2 = vsel %vm1163_vm1, %v2305_v31, %v7803_v18 }
 0x1a2   : > { %6026 = vmatpush3.bf16.msra.mxu0 %v6025_v5  ;;  %v2050_v16 = vrot.slane %v1953_v8, 5  ;;  %v2495_v7 = vld [vmem:[#allocation3 + $0x175] sm:$0x1]  ;;  %v2839_v10 = vrot.slane %v7860_v24, 5  ;;  %v819_v53 = vld [vmem:[#allocation2 + $0x88] sm:$0x3]  ;;  %v2320_v23 = vsel %vm1163_vm1, %v2319_v9, %v7842_v48 }
 0x1a3   : > { %6032 = vmatpush3.bf16.msra.mxu1 %v6031_v35  ;;  %v2048_v57 = vrot.slane %v1952_v61, 6  ;;  %v2321_v20 = vrot.slane %v2226_v30, 1  ;;  %v3116_v50 = vrot.slane %v7871_v55, 5  ;;  %766 = vst [vmem:[#allocation3 + $0x147] sm:$0xff] %v741_v62  ;;  %884 = vrot.lane.b32.xlu1 %v819_v53, %s6231_s4  ;;  %v1772_v38 = vsel %vm1151_vm11, %v1771_v44, %v1770_v3  ;;  %v857_v49 = vpop.permute.xlu1 %856  ;;  %v2228_v59 = vld [vmem:[#allocation3 + $0x214] sm:$0x1] }
 0x1a4   : > { %5835 = vmatprep.subr.mxu0 %v9602_v6  ;;  %v2307_v37 = vrot.slane %v2218_v14, 1  ;;  %v2582_v24 = vrot.slane %v7879_v0, 2  ;;  %v2598_v27 = vrot.slane %v2503_v63, 1  ;;  %5848 = vmatprep.subr.mxu1 %v9602_v6  ;;  %v1774_v56 = vsel %vm1154_vm13, %v1773_v46, %v1772_v38  ;;  %v2505_v8 = vld [vmem:[#allocation3 + $0x215] sm:$0x1]  ;;  %v9617_v47 = vld [vmem:[#allocation36_spill] sm:$0xff] }
 0x1a5   : > { %v2049_v60 = vsel %vm1151_vm11, %v2048_v57, %v2047_v39  ;;  %v2584_v55 = vrot.slane %v2495_v7, 1  ;;  %v2597_v17 = vsel %vm1163_vm1, %v2596_v54, %v2595_v26  ;;  %v2840_v0 = vsel %vm1154_vm13, %v2839_v10, %v7553_v4  ;;  %v667_v31 = vld [vmem:[#allocation2 + $0xb8] sm:$0x1]  ;;  %v2756_v1 = vld [vmem:[#allocation3 + $0x76] sm:$0x1]  ;;  %v709_v26 = vpop.permute.xlu0 %708  ;;  %v9620_v57 = vld [vmem:[#allocation43_spill] sm:$0xff] }
 0x1a6   : > { %5836 = vmatpush3.msk.msra.mxu0 %vm1224_vm3, %v1774_v56  ;;  %v2051_v36 = vsel %vm1154_vm13, %v2050_v16, %v2049_v60  ;;  %v899_v18 = vsel %vm370_vm14, %v855_v58, %v857_v49  ;;  %v2322_v5 = vsel %vm1166_vm2, %v2321_v20, %v2320_v23  ;;  %v3030_v33 = vld [vmem:[#allocation3 + $0x47] sm:$0x1]  ;;  %v7919_v25 = vld [vmem:[#allocation3 + $0x57] sm:$0x1]  ;;  %v3117_v48 = vsel %vm1154_vm13, %v3116_v50, %v7644_v42  ;;  %v666_v4 = vld [vmem:[#allocation2 + $0xb0] sm:$0x1] }
 0x1a7   : > { %5849 = vmatpush3.msk.msra.mxu1 %vm1224_vm3, %v2051_v36  ;;  %6033 = vmatprep.subr.bf16.mxu0 %v9550_v12  ;;  %924 = vst [vmem:[#allocation3 + $0x1c6] sm:$0xff] %v899_v18  ;;  %v2308_v61 = vsel %vm1166_vm2, %v2307_v37, %v2306_v2  ;;  %v2583_v51 = vsel %vm1163_vm1, %v2582_v24, %v7847_v40  ;;  %v2227_v9 = vld [vmem:[#allocation3 + $0x204] sm:$0x1]  ;;  %v7930_v35 = vld [vmem:[#allocation3 + $0x67] sm:$0x1]  ;;  %v2323_v54 = vrot.slane %v2228_v59, 7  ;;  %v711_v7 = vpop.permute.xlu1 %710 }
 0x1a8   : > { %6039 = vmatprep.subr.bf16.mxu1 %v9550_v12  ;;  %5838 = vmatmul.mubr.msk.f32.vlgmr.msra.gmra.mrb[2].mxu0 %vm1220_vm4, %v7823_v52  ;;  %v2599_v30 = vsel %vm1166_vm2, %v2598_v27, %v2597_v17  ;;  %v7932_v3 = vld [vmem:[#allocation3 + $0x77] sm:$0x1]  ;;  %v9616_v42 = vpack.c.bf16 %v7544_v34, %v7620_v13  ;;  %v2585_v46 = vsel %vm1166_vm2, %v2584_v55, %v2583_v51  ;;  %v2229_v14 = vld [vmem:[#allocation3 + $0x224] sm:$0x1]  ;;  %v2230_v63 = vld [vmem:[#allocation3 + $0x234] sm:$0x1] }
 0x1a9   : > { %5851 = vmatmul.mubr.msk.f32.vlgmr.msra.gmra.mrb[2].mxu1 %vm1220_vm4, %v7823_v52  ;;  %v2600_v40 = vrot.slane %v2505_v8, 7  ;;  %v9618_v44 = vrot.slane %v9617_v47, 4  ;;  %v9619_v16 = vpack.c.bf16 %v7590_v32, %v7628_v43  ;;  %738 = vrot.lane.b32.xlu1 %v667_v31, %s6230_s30  ;;  %v6037_v10 = vpack.c.bf16 %v2322_v5, %v2308_v61  ;;  %v2504_v34 = vld [vmem:[#allocation3 + $0x205] sm:$0x1]  ;;  %v2507_v13 = vld [vmem:[#allocation3 + $0x235] sm:$0x1]  ;;  %v867_v24 = vpop.permute.xlu0 %866 }
 0x1aa   : > { %6035 = vmatpush3.bf16.msra.mxu0 %v9616_v42  ;;  %v2833_v62 = vrot.slane %v2756_v1, 1  ;;  %v3104_v53 = vrot.slane %v3030_v33, 4  ;;  %v9621_v20 = vrot.slane %v9620_v57, 4  ;;  %736 = vrot.lane.b32.xlu0 %v666_v4, %s6230_s30  ;;  %v744_v38 = vsel %vm460_vm12, %v709_v26, %v711_v7  ;;  %v2506_v58 = vld [vmem:[#allocation3 + $0x225] sm:$0x1]  ;;  %v9622_v60 = vld [vmem:[#allocation37_spill] sm:$0xff] }
 0x1ab   : > { %v2842_v39 = vsel %vm1157_vm15, %v9618_v44, %v2840_v0  ;;  %6041 = vmatpush3.bf16.msra.mxu1 %v9619_v16  ;;  %6036 = vmatprep.subr.bf16.mxu0 %v9550_v12  ;;  %v6043_v32 = vpack.c.bf16 %v2599_v30, %v2585_v46  ;;  %v2324_v43 = vsel %vm1148_vm10, %v2323_v54, %v2227_v9  ;;  %v3106_v37 = vrot.slane %v7919_v25, 3  ;;  %v825_v49 = vld [vmem:[#allocation2 + $0xb8] sm:$0x3]  ;;  %v824_v23 = vld [vmem:[#allocation2 + $0xb0] sm:$0x3]  ;;  %v869_v5 = vpop.permute.xlu1 %868 }
 0x1ac   : > { %v3119_v50 = vsel %vm1157_vm15, %v9621_v20, %v3117_v48  ;;  %6042 = vmatprep.subr.bf16.mxu1 %v9550_v12  ;;  %769 = vst [vmem:[#allocation3 + $0x157] sm:$0xff] %v744_v38  ;;  %v2325_v27 = vrot.slane %v2229_v14, 6  ;;  %v2327_v56 = vrot.slane %v2230_v63, 5  ;;  %5863 = vmatprep.mubr.msk.f32.mxu0 %vm6233_vm9, %v9602_v6  ;;  %v9623_v2 = vrot.slane %v9622_v60, 3  ;;  %v9624_v0 = vld [vmem:[#allocation45_spill] sm:$0xff]  ;;  %v9627_v9 = vld [vmem:[#allocation38_spill] sm:$0xff] }
 0x1ad   : > { %v3108_v36 = vrot.slane %v7930_v35, 2  ;;  %v2601_v17 = vsel %vm1148_vm10, %v2600_v40, %v2504_v34  ;;  %v2604_v59 = vrot.slane %v2507_v13, 5  ;;  %5876 = vmatprep.mubr.msk.f32.mxu1 %vm6233_vm9, %v9602_v6  ;;  %v3110_v8 = vrot.slane %v7932_v3, 1  ;;  %896 = vrot.lane.b32.xlu1 %v825_v49, %s6231_s4  ;;  %v9626_v48 = vld [vmem:[#allocation53_spill] sm:$0xff]  ;;  %v5242_v26 = vld [vmem:[#allocation3 + $0xf] sm:$0x1]  ;;  %v721_v7 = vpop.permute.xlu0 %720 }
 0x1ae   : > { %v2844_v55 = vsel %vm1160_vm0, %v9623_v2, %v2842_v39  ;;  %6038 = vmatpush3.bf16.msra.mxu0 %v6037_v10  ;;  %v9625_v18 = vrot.slane %v9624_v0, 3  ;;  %v2326_v1 = vsel %vm1151_vm11, %v2325_v27, %v2324_v43  ;;  %v2602_v33 = vrot.slane %v2506_v58, 6  ;;  %v7975_v61 = vld [vmem:[#allocation3 + $0xff] sm:$0x1]  ;;  %894 = vrot.lane.b32.xlu0 %v824_v23, %s6231_s4  ;;  %v946_v30 = vld [vmem:[#allocation2 + $0x58] sm:$0x3] }
 0x1af   : > { %6044 = vmatpush3.bf16.msra.mxu1 %v6043_v32  ;;  %v2834_v25 = vsel %vm1166_vm2, %v2833_v62, %v7758_v41  ;;  %v3105_v4 = vsel %vm1157_vm15, %v3104_v53, %v9626_v48  ;;  %5861 = vmatprep.subr.mxu0 %v9602_v6  ;;  %v902_v51 = vsel %vm370_vm14, %v867_v24, %v869_v5  ;;  %v9628_v35 = vrot.slane %v9627_v9, 2  ;;  %v2765_v41 = vld [vmem:[#allocation3 + $0x106] sm:$0x1]  ;;  %v2766_v46 = vld [vmem:[#allocation3 + $0x116] sm:$0x1]  ;;  %v9629_v44 = vld [vmem:[#allocation46_spill] sm:$0xff] }
 0x1b0   : > { %v3121_v31 = vsel %vm1160_vm0, %v9625_v18, %v3119_v50  ;;  %v3107_v42 = vsel %vm1160_vm0, %v3106_v37, %v3105_v4  ;;  %v7984_v14 = vld [vmem:[#allocation3 + $0x126] sm:$0x1]  ;;  %5874 = vmatprep.subr.mxu1 %v9602_v6  ;;  %927 = vst [vmem:[#allocation3 + $0x1d6] sm:$0xff] %v902_v51  ;;  %v2328_v63 = vsel %vm1154_vm13, %v2327_v56, %v2326_v1  ;;  %v945_v40 = vld [vmem:[#allocation2 + $0x50] sm:$0x3]  ;;  %v9630_v39 = vrot.slane %v9629_v44, 2  ;;  %v723_v56 = vpop.permute.xlu1 %722 }
 0x1b1   : > { %v2846_v3 = vsel %vm1163_vm1, %v9628_v35, %v2844_v55  ;;  %v2603_v54 = vsel %vm1151_vm11, %v2602_v33, %v2601_v17  ;;  %v3109_v47 = vsel %vm1163_vm1, %v3108_v36, %v3107_v42  ;;  %v7993_v10 = vld [vmem:[#allocation3 + $0x136] sm:$0x1]  ;;  %v7995_v34 = vld [vmem:[#allocation3 + $0x146] sm:$0x1]  ;;  %v8006_v50 = vld [vmem:[#allocation3 + $0x117] sm:$0x1]  ;;  %1005 = vrot.lane.b32.xlu1 %v946_v30, %s6230_s30  ;;  %v747_v17 = vsel %vm460_vm12, %v721_v7, %v723_v56  ;;  %v879_v5 = vpop.permute.xlu0 %878 }
 0x1b2   : > { %v3123_v16 = vsel %vm1163_vm1, %v9630_v39, %v3121_v31  ;;  %v7997_v13 = vld [vmem:[#allocation3 + $0x156] sm:$0x1]  ;;  %5862 = vmatpush3.msk.msra.mxu0 %vm1224_vm3, %v2328_v63  ;;  %v2605_v62 = vsel %vm1154_vm13, %v2604_v59, %v2603_v54  ;;  %v3111_v53 = vsel %vm1166_vm2, %v3110_v8, %v3109_v47  ;;  %v8002_v57 = vld [vmem:[#allocation3 + $0x166] sm:$0x1]  ;;  %v9631_v38 = vrot.slane %v7128_v22, 6  ;;  %1003 = vrot.lane.b32.xlu0 %v945_v40, %s6230_s30  ;;  %v9638_v7 = vld [vmem:[#allocation40_spill] sm:$0xff] }
 0x1b3   : > { %v8004_v20 = vld [vmem:[#allocation3 + $0x176] sm:$0x1]  ;;  %v9632_v43 = vrot.slane %v7174_v11, 6  ;;  %5875 = vmatpush3.msk.msra.mxu1 %vm1224_vm3, %v2605_v62  ;;  %v9633_v37 = vld [vmem:[#allocation39_spill] sm:$0xff]  ;;  %v2849_v60 = vrot.slane %v2766_v46, 7  ;;  %v9635_v2 = vrot.slane %v7214_v28, 7  ;;  %6045 = vmatprep.subr.bf16.mxu0 %v9550_v12 }
 0x1b4   : > { %v8012_v32 = vsel %vm1151_vm11, %v9631_v38, %v7408_v15  ;;  %v9634_v24 = vrot.slane %v9633_v37, 1  ;;  %v8025_v22 = vld [vmem:[#allocation3 + $0x118] sm:$0x1]  ;;  %v8027_v15 = vld [vmem:[#allocation3 + $0x119] sm:$0x1]  ;;  %v9636_v36 = vld [vmem:[#allocation47_spill] sm:$0xff]  ;;  %6051 = vmatprep.subr.bf16.mxu1 %v9550_v12  ;;  %5864 = vmatmul.mubr.msk.f32.vlgmr.msra.gmra.mrb[4].mxu0 %vm1220_vm4, %v7823_v52 }
 0x1b5   : > { %v8018_v58 = vsel %vm1151_vm11, %v9632_v43, %v7413_v45  ;;  %v8032_v11 = vsel %vm1148_vm10, %v9635_v2, %v5242_v26  ;;  %v9637_v49 = vrot.slane %v9636_v36, 1  ;;  %v952_v59 = vld [vmem:[#allocation2 + $0x88] sm:$0x3]  ;;  %v2851_v8 = vrot.slane %v7984_v14, 6  ;;  %v8042_v28 = vld [vmem:[#allocation3 + $0x127] sm:$0x1]  ;;  %5877 = vmatmul.mubr.msk.f32.vlgmr.msra.gmra.mrb[4].mxu1 %vm1220_vm4, %v7823_v52  ;;  %v441_v62 = vpop.permute.xlu0 %440  ;;  %5889 = vmatprep.mubr.msk.f32.mxu0 %vm6233_vm9, %v9602_v6 }
 0x1b6   : > { %v2848_v27 = vsel %vm1166_vm2, %v9634_v24, %v2846_v3  ;;  %v8044_v0 = vld [vmem:[#allocation3 + $0x128] sm:$0x1]  ;;  %772 = vst [vmem:[#allocation3 + $0x167] sm:$0xff] %v747_v17  ;;  %v951_v31 = vld [vmem:[#allocation2 + $0x80] sm:$0x3]  ;;  %v2850_v1 = vsel %vm1148_vm10, %v2849_v60, %v2765_v41  ;;  %v2853_v33 = vrot.slane %v7993_v10, 5  ;;  %1017 = vrot.lane.b32.xlu1 %v952_v59, %s6230_s30  ;;  %v881_v3 = vpop.permute.xlu1 %880  ;;  %5902 = vmatprep.mubr.msk.f32.mxu1 %vm6233_vm9, %v9602_v6 }
 0x1b7   : > { %v6046_v55 = vpack.c.bf16 %v2848_v27, %v2834_v25  ;;  %v3125_v23 = vsel %vm1166_vm2, %v9637_v49, %v3123_v16  ;;  %v2855_v25 = vrot.slane %v7995_v34, 4  ;;  %v8052_v48 = vld [vmem:[#allocation3 + $0x11a] sm:$0x1]  ;;  %v2857_v4 = vrot.slane %v7997_v13, 3  ;;  %v8060_v9 = vld [vmem:[#allocation3 + $0x129] sm:$0x1]  ;;  %1015 = vrot.lane.b32.xlu0 %v951_v31, %s6230_s30 }
 0x1b8   : > { %v6052_v18 = vpack.c.bf16 %v3125_v23, %v3111_v53  ;;  %v2859_v26 = vrot.slane %v8002_v57, 2  ;;  %v2861_v51 = vrot.slane %v8004_v20, 1  ;;  %v3126_v30 = vrot.slane %v8006_v50, 7  ;;  %v8062_v35 = vld [vmem:[#allocation3 + $0x11b] sm:$0x1]  ;;  %v9642_v2 = vld [vmem:[#allocation44_spill] sm:$0xff] }
 0x1b9   : > { %6047 = vmatpush3.bf16.msra.mxu0 %v6046_v55  ;;  %v3042_v42 = vld [vmem:[#allocation3 + $0x107] sm:$0x1]  ;;  %v3128_v52 = vrot.slane %v8042_v28, 6  ;;  %v3403_v41 = vrot.slane %v8025_v22, 7  ;;  %v3405_v46 = vrot.slane %v8044_v0, 6  ;;  %v3680_v14 = vrot.slane %v8027_v15, 7 }
 0x1ba   : > { %6053 = vmatpush3.bf16.msra.mxu1 %v6052_v18  ;;  %v905_v63 = vsel %vm370_vm14, %v879_v5, %v881_v3  ;;  %v940_v54 = vld [vmem:[#allocation2 + $0x28] sm:$0x3]  ;;  %6048 = vmatprep.subr.bf16.mxu0 %v9550_v12  ;;  %v2852_v40 = vsel %vm1151_vm11, %v2851_v8, %v2850_v1  ;;  %v8073_v47 = vld [vmem:[#allocation3 + $0x137] sm:$0x1]  ;;  %v8075_v16 = vld [vmem:[#allocation3 + $0x12a] sm:$0x1]  ;;  %v443_v8 = vpop.permute.xlu1 %442 }
 0x1bb   : > { %v3319_v44 = vld [vmem:[#allocation3 + $0x108] sm:$0x1]  ;;  %v3596_v39 = vld [vmem:[#allocation3 + $0x109] sm:$0x1]  ;;  %v9639_v10 = vrot.slane %v9638_v7, 5  ;;  %930 = vst [vmem:[#allocation3 + $0x1e6] sm:$0xff] %v905_v63  ;;  %6054 = vmatprep.subr.bf16.mxu1 %v9550_v12  ;;  %v2854_v53 = vsel %vm1154_vm13, %v2853_v33, %v2852_v40  ;;  %993 = vrot.lane.b32.xlu1 %v940_v54, %s6230_s30  ;;  %v464_v1 = vsel %vm460_vm12, %v441_v62, %v443_v8 }
 0x1bc   : > { %v939_v13 = vld [vmem:[#allocation2 + $0x20] sm:$0x3]  ;;  %v3682_v57 = vrot.slane %v8060_v9, 6  ;;  %v3873_v50 = vld [vmem:[#allocation3 + $0x10a] sm:$0x1]  ;;  %v3957_v38 = vrot.slane %v8052_v48, 7  ;;  %v2856_v56 = vsel %vm1157_vm15, %v2855_v25, %v2854_v53  ;;  %v3404_v48 = vsel %vm1148_vm10, %v3403_v41, %v3319_v44 }
 0x1bd   : > { %v8081_v34 = vsel %vm1154_vm13, %v9639_v10, %v7372_v29  ;;  %v4150_v43 = vld [vmem:[#allocation3 + $0x10b] sm:$0x1]  ;;  %v9640_v29 = vld [vmem:[#allocation50_spill] sm:$0xff]  ;;  %v9643_v55 = vrot.slane %v9642_v2, 5  ;;  %v2858_v18 = vsel %vm1160_vm0, %v2857_v4, %v2856_v56  ;;  %v8124_v31 = vld [vmem:[#allocation3 + $0x147] sm:$0x1]  ;;  %991 = vrot.lane.b32.xlu0 %v939_v13, %s6230_s30  ;;  %v3406_v20 = vsel %vm1151_vm11, %v3405_v46, %v3404_v48 }
 0x1be   : > { %v8089_v37 = vld [vmem:[#allocation3 + $0x12b] sm:$0x1]  ;;  %v9641_v24 = vrot.slane %v9640_v29, 5  ;;  %v8100_v60 = vld [vmem:[#allocation3 + $0x138] sm:$0x1]  ;;  %v3130_v5 = vrot.slane %v8073_v47, 5  ;;  %v2860_v33 = vsel %vm1163_vm1, %v2859_v26, %v2858_v18  ;;  %v3958_v40 = vsel %vm1148_vm10, %v3957_v38, %v3873_v50  ;;  %v735_v7 = vpop.permute.xlu1 %734 }
 0x1bf   : > { %v8102_v22 = vld [vmem:[#allocation3 + $0x139] sm:$0x1]  ;;  %v8104_v15 = vld [vmem:[#allocation3 + $0x13a] sm:$0x1]  ;;  %v8110_v36 = vsel %vm1154_vm13, %v9643_v55, %v8012_v32  ;;  %v3127_v32 = vsel %vm1148_vm10, %v3126_v30, %v3042_v42  ;;  %v8134_v25 = vld [vmem:[#allocation3 + $0x148] sm:$0x1]  ;;  %v3681_v30 = vsel %vm1148_vm10, %v3680_v14, %v3596_v39 }
 0x1c0   : > { %v8095_v27 = vsel %vm1154_vm13, %v9641_v24, %v7397_v21  ;;  %v9644_v21 = vrot.slane %v7181_v19, 5  ;;  %v9645_v23 = vld [vmem:[#allocation82_spill] sm:$0xff]  ;;  %v8137_v4 = vld [vmem:[#allocation3 + $0x149] sm:$0x1]  ;;  %v8140_v3 = vld [vmem:[#allocation3 + $0x14a] sm:$0x1]  ;;  %v3129_v29 = vsel %vm1151_vm11, %v3128_v52, %v3127_v32  ;;  %v3683_v28 = vsel %vm1151_vm11, %v3682_v57, %v3681_v30 }
 0x1c1   : > { %v9646_v17 = vrot.slane %v9645_v23, 6  ;;  %v8128_v19 = vld [vmem:[#allocation3 + $0x13b] sm:$0x1]  ;;  %481 = vst [vmem:[#allocation3 + $0x98] sm:$0xff] %v464_v1  ;;  %v957_v42 = vld [vmem:[#allocation2 + $0xb0] sm:$0x3]  ;;  %v3131_v2 = vsel %vm1154_vm13, %v3130_v5, %v3129_v29 }
 0x1c2   : > { %v8116_v49 = vsel %vm1154_vm13, %v9644_v21, %v8018_v58  ;;  %v4234_v58 = vrot.slane %v8062_v35, 7  ;;  %v733_v35 = vpop.permute.xlu0 %732  ;;  %v3407_v63 = vrot.slane %v8100_v60, 5  ;;  %v3684_v54 = vrot.slane %v8102_v22, 5  ;;  %v8150_v39 = vld [vmem:[#allocation3 + $0x11c] sm:$0x1]  ;;  %1027 = vrot.lane.b32.xlu0 %v957_v42, %s6230_s30  ;;  %v9647_v56 = vld [vmem:[#allocation83_spill] sm:$0xff]  ;;  %v893_v18 = vpop.permute.xlu1 %892 }
 0x1c3   : > { %v5317_v59 = vsel %vm1151_vm11, %v9646_v17, %v8032_v11  ;;  %v958_v11 = vld [vmem:[#allocation2 + $0xb8] sm:$0x3]  ;;  %v3959_v26 = vrot.slane %v8075_v16, 6  ;;  %v3961_v47 = vrot.slane %v8104_v15, 5  ;;  %v4236_v44 = vrot.slane %v8089_v37, 6 }
 0x1c4   : > { %v4235_v41 = vsel %vm1148_vm10, %v4234_v58, %v4150_v43  ;;  %v4238_v14 = vrot.slane %v8128_v19, 5  ;;  %1029 = vrot.lane.b32.xlu1 %v958_v11, %s6230_s30  ;;  %v3132_v10 = vrot.slane %v8124_v31, 4  ;;  %v3409_v13 = vrot.slane %v8134_v25, 4  ;;  %v8157_v53 = vld [vmem:[#allocation3 + $0x12c] sm:$0x1]  ;;  %s6168_s30 = sshll.u32 %s6236_s29, 4  ;;  %s6169_s30 = int_to_ptr.vmem [resolvable:$false] %s6168_s30 }
 0x1c5   : > { %v3686_v62 = vrot.slane %v8137_v4, 4  ;;  %v3963_v16 = vrot.slane %v8140_v3, 4  ;;  %v750_v50 = vsel %vm460_vm12, %v733_v35, %v735_v7  ;;  %v2777_v38 = vld [vmem:[#allocation3 + $0x1c6] sm:$0x1]  ;;  %v8164_v43 = vsel %vm1166_vm2, %v2861_v51, %v2860_v33  ;;  %v3054_v37 = vld [vmem:[#allocation3 + $0x1c7] sm:$0x1]  ;;  %p6171_p0 = scmp.lt.s32.totalorder %s9189_s24, %s6169_s30 }
 0x1c6   : > { %v4154_v24 = vld [vmem:[#allocation3 + $0x14b] sm:$0x1]  ;;  %v9648_v60 = vrot.slane %v9647_v56, 5  ;;  %775 = vst [vmem:[#allocation3 + $0x177] sm:$0xff] %v750_v50  ;;  %v891_v15 = vpop.permute.xlu0 %890  ;;  %v3331_v55 = vld [vmem:[#allocation3 + $0x1c8] sm:$0x1]  ;;  %v3960_v21 = vsel %vm1151_vm11, %v3959_v26, %v3958_v40  ;;  %v3685_v0 = vsel %vm1154_vm13, %v3684_v54, %v3683_v28  ;;  %v4237_v9 = vsel %vm1151_vm11, %v4236_v44, %v4235_v41  ;;  %v451_v7 = vpop.permute.xlu1 %450 }
 0x1c7   : > { %v3608_v51 = vld [vmem:[#allocation3 + $0x1c9] sm:$0x1]  ;;  %v8181_v52 = vld [vmem:[#allocation3 + $0x1ca] sm:$0x1]  ;;  %v8184_v23 = vld [vmem:[#allocation3 + $0x157] sm:$0x1]  ;;  %v3962_v46 = vsel %vm1154_vm13, %v3961_v47, %v3960_v21  ;;  %v908_v58 = vsel %vm370_vm14, %v891_v15, %v893_v18  ;;  %v3133_v40 = vsel %vm1157_vm15, %v3132_v10, %v3131_v2  ;;  %v8210_v47 = vsel %vm1157_vm15, %v3686_v62, %v3685_v0 }
 0x1c8   : > { %v8172_v22 = vsel %vm1154_vm13, %v9648_v60, %v5317_v59  ;;  %v8186_v17 = vld [vmem:[#allocation3 + $0x158] sm:$0x1]  ;;  %v3408_v59 = vsel %vm1154_vm13, %v3407_v63, %v3406_v20  ;;  %v8189_v8 = vld [vmem:[#allocation3 + $0x159] sm:$0x1]  ;;  %v2869_v57 = vrot.slane %v2777_v38, 4  ;;  %v3146_v31 = vrot.slane %v3054_v37, 4 }
 0x1c9   : > { %v4240_v32 = vrot.slane %v4154_v24, 4  ;;  %v4427_v5 = vld [vmem:[#allocation3 + $0x10c] sm:$0x1]  ;;  %v4511_v19 = vrot.slane %v8150_v39, 7  ;;  %v3423_v1 = vrot.slane %v3331_v55, 4  ;;  %v3700_v11 = vrot.slane %v3608_v51, 4 }
 0x1ca   : > { %v8196_v33 = vld [vmem:[#allocation3 + $0x1cb] sm:$0x1]  ;;  %v4513_v25 = vrot.slane %v8157_v53, 6  ;;  %933 = vst [vmem:[#allocation3 + $0x1f6] sm:$0xff] %v908_v58  ;;  %v449_v48 = vpop.permute.xlu0 %448  ;;  %v3134_v4 = vrot.slane %v8184_v23, 3  ;;  %v3411_v30 = vrot.slane %v8186_v17, 3  ;;  %v8207_v26 = vsel %vm1157_vm15, %v3409_v13, %v3408_v59 }
 0x1cb   : > { %v3688_v3 = vrot.slane %v8189_v8, 3  ;;  %v8202_v42 = vld [vmem:[#allocation3 + $0x15a] sm:$0x1]  ;;  %v3977_v35 = vrot.slane %v8181_v52, 4  ;;  %v2778_v63 = vld [vmem:[#allocation3 + $0x1d6] sm:$0x1]  ;;  %v4239_v44 = vsel %vm1154_vm13, %v4238_v14, %v4237_v9  ;;  %v8220_v10 = vsel %vm1157_vm15, %v3963_v16, %v3962_v46 }
 0x1cc   : > { %v3055_v54 = vld [vmem:[#allocation3 + $0x1d7] sm:$0x1]  ;;  %v8212_v41 = vld [vmem:[#allocation3 + $0x15b] sm:$0x1]  ;;  %v8215_v39 = vld [vmem:[#allocation3 + $0x13c] sm:$0x1]  ;;  %v8223_v13 = vsel %vm1157_vm15, %v4240_v32, %v4239_v44  ;;  %v4512_v62 = vsel %vm1148_vm10, %v4511_v19, %v4427_v5  ;;  %v466_v24 = vsel %vm460_vm12, %v449_v48, %v451_v7 }
 0x1cd   : > { %v2779_v53 = vld [vmem:[#allocation3 + $0x1e6] sm:$0x1]  ;;  %v3048_v37 = vld [vmem:[#allocation3 + $0x167] sm:$0x1]  ;;  %v3049_v14 = vld [vmem:[#allocation3 + $0x177] sm:$0x1] }
 0x1ce   : > { %v9649_v50 = vld [vmem:[#allocation7_spill] sm:$0xff]  ;;  %v9650_v56 = vld [vmem:[#allocation8_spill] sm:$0xff]  ;;  %v8229_v15 = vld [vmem:[#allocation3 + $0x1d8] sm:$0x1]  ;;  %483 = vst [vmem:[#allocation3 + $0xa8] sm:$0xff] %v466_v24  ;;  %v433_v28 = vpop.permute.xlu0 %432  ;;  %v2871_v52 = vrot.slane %v2778_v63, 3 }
 0x1cf   : > { %v2870_v38 = vsel %vm1157_vm15, %v2869_v57, %v9649_v50  ;;  %v3056_v29 = vld [vmem:[#allocation3 + $0x1e7] sm:$0x1]  ;;  %v3147_v60 = vsel %vm1157_vm15, %v3146_v31, %v9650_v56  ;;  %v9651_v2 = vld [vmem:[#allocation12_spill] sm:$0xff]  ;;  %v8235_v20 = vld [vmem:[#allocation3 + $0x1d9] sm:$0x1]  ;;  %v3148_v21 = vrot.slane %v3055_v54, 3  ;;  %v435_v57 = vpop.permute.xlu1 %434 }
 0x1d0   : > { %v8233_v55 = vsel %vm1157_vm15, %v3423_v1, %v9651_v2  ;;  %v9652_v16 = vld [vmem:[#allocation85_spill] sm:$0xff]  ;;  %v3965_v23 = vrot.slane %v8202_v42, 3  ;;  %v4254_v59 = vrot.slane %v8196_v33, 4  ;;  %v2873_v0 = vrot.slane %v2779_v53, 2  ;;  %v8246_v19 = vld [vmem:[#allocation3 + $0x1da] sm:$0x1] }
 0x1d1   : > { %v8239_v51 = vsel %vm1157_vm15, %v3700_v11, %v9652_v16  ;;  %v3136_v46 = vrot.slane %v3048_v37, 2  ;;  %v3150_v9 = vrot.slane %v3056_v29, 2  ;;  %v4242_v18 = vrot.slane %v8212_v41, 3  ;;  %v2780_v11 = vld [vmem:[#allocation3 + $0x1f6] sm:$0x1]  ;;  %v9653_v63 = vld [vmem:[#allocation88_spill] sm:$0xff] }
 0x1d2   : > { %v3138_v31 = vrot.slane %v3049_v14, 1  ;;  %v3425_v32 = vrot.slane %v8229_v15, 3  ;;  %v3702_v5 = vrot.slane %v8235_v20, 3  ;;  %v4515_v58 = vrot.slane %v8215_v39, 5  ;;  %v3057_v48 = vld [vmem:[#allocation3 + $0x1f7] sm:$0x1]  ;;  %v457_v44 = vpop.permute.xlu0 %456 }
 0x1d3   : > { %v462_v1 = vsel %vm460_vm12, %v433_v28, %v435_v57  ;;  %v3135_v33 = vsel %vm1160_vm0, %v3134_v4, %v3133_v40  ;;  %v8251_v42 = vld [vmem:[#allocation3 + $0x168] sm:$0x1]  ;;  %v8255_v54 = vsel %vm1157_vm15, %v3977_v35, %v9653_v63  ;;  %v8258_v41 = vsel %vm1151_vm11, %v4513_v25, %v4512_v62  ;;  %v8265_v24 = vld [vmem:[#allocation3 + $0x169] sm:$0x1]  ;;  %v8267_v35 = vld [vmem:[#allocation3 + $0x16a] sm:$0x1]  ;;  %v459_v14 = vpop.permute.xlu1 %458 }
 0x1d4   : > { %479 = vst [vmem:[#allocation3 + $0x88] sm:$0xff] %v462_v1  ;;  %v2872_v7 = vsel %vm1160_vm0, %v2871_v52, %v2870_v38  ;;  %v2875_v53 = vrot.slane %v2780_v11, 1  ;;  %v3149_v50 = vsel %vm1160_vm0, %v3148_v21, %v3147_v60  ;;  %v3152_v37 = vrot.slane %v3057_v48, 1  ;;  %v8270_v62 = vld [vmem:[#allocation3 + $0x14c] sm:$0x1]  ;;  %s6170_s4 = scalar_lea.vmem %s6169_s30, 4096 }
 0x1d5   : > { %v2874_v29 = vsel %vm1163_vm1, %v2873_v0, %v2872_v7  ;;  %v3137_v4 = vsel %vm1163_vm1, %v3136_v46, %v3135_v33  ;;  %v3151_v40 = vsel %vm1163_vm1, %v3150_v9, %v3149_v50  ;;  %v3979_v25 = vrot.slane %v8246_v19, 3  ;;  %v8276_v16 = vld [vmem:[#allocation3 + $0x16b] sm:$0x1]  ;;  %v8278_v28 = vld [vmem:[#allocation3 + $0x1db] sm:$0x1]  ;;  %p6172_p1 = scmp.lt.s32.totalorder %s6170_s4, %s6164_s28 }
 0x1d6   : > { %v2876_v38 = vsel %vm1166_vm2, %v2875_v53, %v2874_v29  ;;  %v3139_v56 = vsel %vm1166_vm2, %v3138_v31, %v3137_v4  ;;  %v3153_v60 = vsel %vm1166_vm2, %v3152_v37, %v3151_v40  ;;  %v3413_v2 = vrot.slane %v8251_v42, 2  ;;  %v8282_v46 = vld [vmem:[#allocation3 + $0x1e8] sm:$0x1]  ;;  %v8288_v57 = vld [vmem:[#allocation3 + $0x1e9] sm:$0x1]  ;;  %v343_v1 = vpop.permute.xlu0 %342 }
 0x1d7   : > { %v468_v52 = vsel %vm460_vm12, %v457_v44, %v459_v14  ;;  %v6049_v21 = vpack.c.bf16 %v2876_v38, %v8164_v43  ;;  %v6055_v0 = vpack.c.bf16 %v3153_v60, %v3139_v56  ;;  %v3412_v9 = vsel %vm1160_vm0, %v3411_v30, %v8207_v26  ;;  %v8290_v31 = vld [vmem:[#allocation3 + $0x1ea] sm:$0x1]  ;;  %v8292_v11 = vld [vmem:[#allocation3 + $0x98] sm:$0x1]  ;;  %v8294_v48 = vld [vmem:[#allocation3 + $0x99] sm:$0x1]  ;;  %p6173_p2 = por %p6172_p1, %p6171_p0 }
 0x1d8   : > { %485 = vst [vmem:[#allocation3 + $0xb8] sm:$0xff] %v468_v52  ;;  %v3689_v43 = vsel %vm1160_vm0, %v3688_v3, %v8210_v47  ;;  %v3690_v33 = vrot.slane %v8265_v24, 2  ;;  %v3966_v17 = vsel %vm1160_vm0, %v3965_v23, %v8220_v10  ;;  %v3967_v30 = vrot.slane %v8267_v35, 2  ;;  %v8304_v26 = vld [vmem:[#allocation3 + $0x9a] sm:$0x1]  ;;  %v9654_v44 = vld [vmem:[#allocation89_spill] sm:$0xff]  ;;  %v345_v10 = vpop.permute.xlu1 %344 }
 0x1d9   : > { %6050 = vmatpush3.bf16.msra.mxu0 %v6049_v21  ;;  %6056 = vmatpush3.bf16.msra.mxu1 %v6055_v0  ;;  %v8306_v42 = vld [vmem:[#allocation3 + $0x9b] sm:$0x1]  ;;  %v4243_v63 = vsel %vm1160_vm0, %v4242_v18, %v8223_v13  ;;  %v4244_v8 = vrot.slane %v8276_v16, 2  ;;  %v4255_v3 = vsel %vm1157_vm15, %v4254_v59, %v9654_v44  ;;  %v4256_v47 = vrot.slane %v8278_v28, 3  ;;  %v8314_v7 = vld [vmem:[#allocation3 + $0x15c] sm:$0x1]  ;;  %p6174_p3 = pnand %p6173_p2, %p6167_p13 }
 0x1da   : > { %5887 = vmatprep.subr.mxu0 %v9602_v6  ;;  %5900 = vmatprep.subr.mxu1 %v9602_v6  ;;  %v3427_v23 = vrot.slane %v8282_v46, 2  ;;  %v3704_v53 = vrot.slane %v8288_v57, 2  ;;  %v3981_v13 = vrot.slane %v8290_v31, 2  ;;  %v4164_v18 = vld [vmem:[#allocation3 + $0x1eb] sm:$0x1]  ;;  %v4517_v59 = vrot.slane %v8270_v62, 4  ;;  %v351_v38 = vpop.permute.xlu0 %350 }
 0x1db   : > { %v8321_v50 = vld [vmem:[#allocation3 + $0x16c] sm:$0x1]  ;;  %v372_v37 = vsel %vm370_vm14, %v343_v1, %v345_v10  ;;  %v3389_v29 = vrot.slane %v8292_v11, 7  ;;  %v3666_v4 = vrot.slane %v8294_v48, 7  ;;  %v3426_v40 = vsel %vm1160_vm0, %v3425_v32, %v8233_v55  ;;  %v8331_v24 = vld [vmem:[#allocation3 + $0x9c] sm:$0x1] }
 0x1dc   : > { %v8333_v35 = vld [vmem:[#allocation3 + $0x9d] sm:$0x1]  ;;  %v8335_v14 = vld [vmem:[#allocation3 + $0x1cc] sm:$0x1]  ;;  %389 = vst [vmem:[#allocation3 + $0x48] sm:$0xff] %v372_v37  ;;  %v3703_v60 = vsel %vm1160_vm0, %v3702_v5, %v8239_v51  ;;  %v3943_v16 = vrot.slane %v8304_v26, 7  ;;  %v4516_v55 = vsel %vm1154_vm13, %v4515_v58, %v8258_v41  ;;  %v3414_v28 = vsel %vm1163_vm1, %v3413_v2, %v3412_v9  ;;  %v353_v5 = vpop.permute.xlu1 %352 }
 0x1dd   : > { %v3326_v62 = vld [vmem:[#allocation3 + $0x178] sm:$0x1]  ;;  %v3603_v56 = vld [vmem:[#allocation3 + $0x179] sm:$0x1]  ;;  %v4220_v15 = vrot.slane %v8306_v42, 7  ;;  %v3691_v21 = vsel %vm1163_vm1, %v3690_v33, %v3689_v43  ;;  %v8352_v20 = vsel %vm1163_vm1, %v3967_v30, %v3966_v17  ;;  %v3980_v51 = vsel %vm1160_vm0, %v3979_v25, %v8255_v54  ;;  %v9661_v42 = vld [vmem:[#allocation57_spill] sm:$0xff] }
 0x1de   : > { %v3334_v32 = vld [vmem:[#allocation3 + $0x1f8] sm:$0x1]  ;;  %v3611_v52 = vld [vmem:[#allocation3 + $0x1f9] sm:$0x1]  ;;  %v8349_v0 = vld [vmem:[#allocation3 + $0x17a] sm:$0x1]  ;;  %v374_v46 = vsel %vm370_vm14, %v351_v38, %v353_v5  ;;  %v1000_v1 = vpop.permute.xlu0 %999  ;;  %v3428_v30 = vsel %vm1163_vm1, %v3427_v23, %v3426_v40  ;;  %v4257_v10 = vsel %vm1160_vm0, %v4256_v47, %v4255_v3 }
 0x1df   : > { %v4258_v39 = vrot.slane %v4164_v18, 2  ;;  %v4497_v58 = vrot.slane %v8331_v24, 7  ;;  %v4774_v41 = vrot.slane %v8333_v35, 7  ;;  %v4519_v2 = vrot.slane %v8314_v7, 3  ;;  %391 = vst [vmem:[#allocation3 + $0x58] sm:$0xff] %v374_v46 }
 0x1e0   : > { %v3415_v9 = vrot.slane %v3326_v62, 1  ;;  %v3692_v57 = vrot.slane %v3603_v56, 1  ;;  %v4521_v31 = vrot.slane %v8321_v50, 2  ;;  %v3429_v11 = vrot.slane %v3334_v32, 1  ;;  %v8364_v25 = vld [vmem:[#allocation3 + $0x17b] sm:$0x1]  ;;  %v1002_v50 = vpop.permute.xlu1 %1001 }
 0x1e1   : > { %v3706_v19 = vrot.slane %v3611_v52, 1  ;;  %v3969_v54 = vrot.slane %v8349_v0, 1  ;;  %v4531_v43 = vrot.slane %v8335_v14, 4  ;;  %v3311_v33 = vld [vmem:[#allocation3 + $0x88] sm:$0x1]  ;;  %v4245_v7 = vsel %vm1163_vm1, %v4244_v8, %v4243_v63 }
 0x1e2   : > { %v3314_v17 = vld [vmem:[#allocation3 + $0xb8] sm:$0x1]  ;;  %v3888_v44 = vld [vmem:[#allocation3 + $0x1fa] sm:$0x1]  ;;  %v4518_v18 = vsel %vm1157_vm15, %v4517_v59, %v4516_v55  ;;  %v3313_v37 = vld [vmem:[#allocation3 + $0xa8] sm:$0x1]  ;;  %v3705_v56 = vsel %vm1163_vm1, %v3704_v53, %v3703_v60  ;;  %v3982_v32 = vsel %vm1163_vm1, %v3981_v13, %v3980_v51  ;;  %v4259_v14 = vsel %vm1163_vm1, %v4258_v39, %v4257_v10  ;;  %v359_v53 = vpop.permute.xlu0 %358 }
 0x1e3   : > { %v3588_v38 = vld [vmem:[#allocation3 + $0x89] sm:$0x1]  ;;  %v3591_v62 = vld [vmem:[#allocation3 + $0xb9] sm:$0x1]  ;;  %v4520_v52 = vsel %vm1160_vm0, %v4519_v2, %v4518_v18  ;;  %v1035_v23 = vsel %vm460_vm12, %v1000_v1, %v1002_v50  ;;  %v8377_v63 = vsel %vm1166_vm2, %v3415_v9, %v3414_v28  ;;  %v8380_v8 = vsel %vm1166_vm2, %v3692_v57, %v3691_v21  ;;  %v3865_v3 = vld [vmem:[#allocation3 + $0x8a] sm:$0x1] }
 0x1e4   : > { %v3590_v40 = vld [vmem:[#allocation3 + $0xa9] sm:$0x1]  ;;  %v3868_v47 = vld [vmem:[#allocation3 + $0xba] sm:$0x1]  ;;  %v4522_v59 = vsel %vm1163_vm1, %v4521_v31, %v4520_v52  ;;  %1060 = vst [vmem:[#allocation3 + $0x216] sm:$0xff] %v1035_v23  ;;  %v3390_v13 = vsel %vm1148_vm10, %v3389_v29, %v3311_v33  ;;  %v3393_v60 = vrot.slane %v3314_v17, 5  ;;  %v8385_v55 = vsel %vm1166_vm2, %v3429_v11, %v3428_v30  ;;  %v361_v46 = vpop.permute.xlu1 %360 }
 0x1e5   : > { %v3867_v0 = vld [vmem:[#allocation3 + $0xaa] sm:$0x1]  ;;  %v4165_v51 = vld [vmem:[#allocation3 + $0x1fb] sm:$0x1]  ;;  %v4246_v28 = vrot.slane %v8364_v25, 1  ;;  %v3391_v5 = vrot.slane %v3313_v37, 6  ;;  %v3667_v21 = vsel %vm1148_vm10, %v3666_v4, %v3588_v38  ;;  %v8392_v57 = vsel %vm1166_vm2, %v3706_v19, %v3705_v56 }
 0x1e6   : > { %v3670_v39 = vrot.slane %v3591_v62, 5  ;;  %v3983_v2 = vrot.slane %v3888_v44, 1  ;;  %v3668_v9 = vrot.slane %v3590_v40, 6  ;;  %v3944_v29 = vsel %vm1148_vm10, %v3943_v16, %v3865_v3  ;;  %v4434_v1 = vld [vmem:[#allocation3 + $0x17c] sm:$0x1]  ;;  %v1012_v4 = vpop.permute.xlu0 %1011  ;;  %v9655_v40 = vld [vmem:[#allocation56_spill] sm:$0xff] }
 0x1e7   : > { %v3947_v31 = vrot.slane %v3868_v47, 5  ;;  %v376_v11 = vsel %vm370_vm14, %v359_v53, %v361_v46  ;;  %v3392_v25 = vsel %vm1151_vm11, %v3391_v5, %v3390_v13  ;;  %v3945_v48 = vrot.slane %v3867_v0, 6  ;;  %v4144_v19 = vld [vmem:[#allocation3 + $0xab] sm:$0x1]  ;;  %v4145_v50 = vld [vmem:[#allocation3 + $0xbb] sm:$0x1] }
 0x1e8   : > { %v4260_v33 = vrot.slane %v4165_v51, 1  ;;  %393 = vst [vmem:[#allocation3 + $0x68] sm:$0xff] %v376_v11  ;;  %v3394_v17 = vsel %vm1154_vm13, %v3393_v60, %v3392_v25  ;;  %v3669_v30 = vsel %vm1151_vm11, %v3668_v9, %v3667_v21  ;;  %v8403_v26 = vsel %vm1166_vm2, %v3969_v54, %v8352_v20  ;;  %v4142_v18 = vld [vmem:[#allocation3 + $0x8b] sm:$0x1]  ;;  %v1014_v62 = vpop.permute.xlu1 %1013  ;;  %v4698_v52 = vld [vmem:[#allocation3 + $0xad] sm:$0x1] }
 0x1e9   : > { %v4532_v16 = vsel %vm1157_vm15, %v4531_v43, %v8095_v27  ;;  %v3671_v44 = vsel %vm1154_vm13, %v3670_v39, %v3669_v30  ;;  %v3946_v10 = vsel %vm1151_vm11, %v3945_v48, %v3944_v29  ;;  %v8410_v37 = vsel %vm1166_vm2, %v3983_v2, %v3982_v32  ;;  %v4421_v43 = vld [vmem:[#allocation3 + $0xac] sm:$0x1]  ;;  %v4440_v60 = vld [vmem:[#allocation3 + $0x1dc] sm:$0x1]  ;;  %v4696_v2 = vld [vmem:[#allocation3 + $0x8d] sm:$0x1] }
 0x1ea   : > { %v4523_v38 = vrot.slane %v4434_v1, 1  ;;  %v3948_v54 = vsel %vm1154_vm13, %v3947_v31, %v3946_v10  ;;  %v8418_v27 = vsel %vm1166_vm2, %v4246_v28, %v4245_v7  ;;  %v1038_v23 = vsel %vm460_vm12, %v1012_v4, %v1014_v62  ;;  %v4419_v13 = vld [vmem:[#allocation3 + $0x8c] sm:$0x1]  ;;  %v367_v0 = vpop.permute.xlu0 %366  ;;  %v3307_v46 = vld [vmem:[#allocation3 + $0x48] sm:$0x1]  ;;  %v9692_v39 = vld [vmem:[#allocation77_spill] sm:$0xff] }
 0x1eb   : > { %v9656_v32 = vrot.slane %v9655_v40, 4  ;;  %v4222_v47 = vrot.slane %v4144_v19, 6  ;;  %v8425_v53 = vsel %vm1166_vm2, %v4260_v33, %v4259_v14  ;;  %1063 = vst [vmem:[#allocation3 + $0x226] sm:$0xff] %v1038_v23  ;;  %v9657_v51 = vld [vmem:[#allocation60_spill] sm:$0xff]  ;;  %v4221_v28 = vsel %vm1148_vm10, %v4220_v15, %v4142_v18  ;;  %v4422_v31 = vld [vmem:[#allocation3 + $0xbc] sm:$0x1] }
 0x1ec   : > { %v9658_v5 = vrot.slane %v9657_v51, 4  ;;  %v4224_v21 = vrot.slane %v4145_v50, 5  ;;  %v9659_v14 = vld [vmem:[#allocation64_spill] sm:$0xff]  ;;  %v4499_v1 = vrot.slane %v4421_v43, 6  ;;  %v4776_v11 = vrot.slane %v4698_v52, 6  ;;  %v369_v48 = vpop.permute.xlu1 %368  ;;  %v9663_v18 = vld [vmem:[#allocation61_spill] sm:$0xff] }
 0x1ed   : > { %v3396_v3 = vsel %vm1157_vm15, %v9656_v32, %v3394_v17  ;;  %v9660_v9 = vrot.slane %v9659_v14, 4  ;;  %v8439_v25 = vsel %vm1166_vm2, %v4523_v38, %v4522_v59  ;;  %v9662_v33 = vrot.slane %v9661_v42, 3  ;;  %v3584_v4 = vld [vmem:[#allocation3 + $0x49] sm:$0x1]  ;;  %v3861_v17 = vld [vmem:[#allocation3 + $0x4a] sm:$0x1] }
 0x1ee   : > { %v3673_v7 = vsel %vm1157_vm15, %v9658_v5, %v3671_v44  ;;  %v4498_v19 = vsel %vm1148_vm10, %v4497_v58, %v4419_v13  ;;  %v4533_v44 = vrot.slane %v4440_v60, 3  ;;  %v378_v10 = vsel %vm370_vm14, %v367_v0, %v369_v48  ;;  %v988_v43 = vpop.permute.xlu0 %987  ;;  %v3308_v24 = vld [vmem:[#allocation3 + $0x58] sm:$0x1]  ;;  %v9665_v58 = vld [vmem:[#allocation67_spill] sm:$0xff]  ;;  %v3585_v35 = vld [vmem:[#allocation3 + $0x59] sm:$0x1] }
 0x1ef   : > { %v3950_v29 = vsel %vm1157_vm15, %v9660_v9, %v3948_v54  ;;  %v3398_v15 = vsel %vm1160_vm0, %v9662_v33, %v3396_v3  ;;  %v9664_v59 = vrot.slane %v9663_v18, 3  ;;  %v4223_v38 = vsel %vm1151_vm11, %v4222_v47, %v4221_v28  ;;  %v8457_v54 = vld [vmem:[#allocation3 + $0x1ec] sm:$0x1]  ;;  %395 = vst [vmem:[#allocation3 + $0x78] sm:$0xff] %v378_v10  ;;  %v9667_v13 = vld [vmem:[#allocation58_spill] sm:$0xff]  ;;  %v9676_v18 = vld [vmem:[#allocation59_spill] sm:$0xff] }
 0x1f0   : > { %v4775_v62 = vsel %vm1148_vm10, %v4774_v41, %v4696_v2  ;;  %v3381_v52 = vrot.slane %v3307_v46, 4  ;;  %v9666_v23 = vrot.slane %v9665_v58, 3  ;;  %v4225_v32 = vsel %vm1154_vm13, %v4224_v21, %v4223_v38  ;;  %v3862_v41 = vld [vmem:[#allocation3 + $0x5a] sm:$0x1]  ;;  %v9671_v48 = vld [vmem:[#allocation68_spill] sm:$0xff]  ;;  %v9678_v58 = vld [vmem:[#allocation55_spill] sm:$0xff] }
 0x1f1   : > { %v3675_v50 = vsel %vm1160_vm0, %v9664_v59, %v3673_v7  ;;  %v4501_v3 = vrot.slane %v4422_v31, 5  ;;  %v9668_v60 = vrot.slane %v9667_v13, 2  ;;  %v3658_v0 = vrot.slane %v3584_v4, 4  ;;  %v990_v7 = vpop.permute.xlu1 %989  ;;  %v9669_v28 = vld [vmem:[#allocation62_spill] sm:$0xff]  ;;  %v4138_v33 = vld [vmem:[#allocation3 + $0x4b] sm:$0x1] }
 0x1f2   : > { %v3952_v40 = vsel %vm1160_vm0, %v9666_v23, %v3950_v29  ;;  %v3935_v51 = vrot.slane %v3861_v17, 4  ;;  %v4500_v5 = vsel %vm1151_vm11, %v4499_v1, %v4498_v19  ;;  %v9670_v2 = vrot.slane %v9669_v28, 2  ;;  %v9673_v4 = vld [vmem:[#allocation70_spill] sm:$0xff]  ;;  %v8484_v10 = vld [vmem:[#allocation3 + $0x216] sm:$0x1] }
 0x1f3   : > { %v3400_v47 = vsel %vm1163_vm1, %v9668_v60, %v3398_v15  ;;  %v8471_v14 = vsel %vm1151_vm11, %v4776_v11, %v4775_v62  ;;  %v8474_v21 = vsel %vm1160_vm0, %v4533_v44, %v4532_v16  ;;  %v4535_v9 = vrot.slane %v8457_v54, 2  ;;  %v4139_v15 = vld [vmem:[#allocation3 + $0x5b] sm:$0x1]  ;;  %v1024_v11 = vpop.permute.xlu0 %1023  ;;  %v9675_v16 = vld [vmem:[#allocation52_spill] sm:$0xff]  ;;  %v8502_v60 = vld [vmem:[#allocation3 + $0x218] sm:$0x1] }
 0x1f4   : > { %v3677_v46 = vsel %vm1163_vm1, %v9670_v2, %v3675_v50  ;;  %v1032_v29 = vsel %vm460_vm12, %v988_v43, %v990_v7  ;;  %v3383_v31 = vrot.slane %v3308_v24, 3  ;;  %v9672_v42 = vrot.slane %v9671_v48, 2  ;;  %v4415_v43 = vld [vmem:[#allocation3 + $0x4c] sm:$0x1]  ;;  %v8493_v24 = vld [vmem:[#allocation3 + $0x217] sm:$0x1] }
 0x1f5   : > { %v9674_v17 = vrot.slane %v9673_v4, 4  ;;  %1057 = vst [vmem:[#allocation3 + $0x206] sm:$0xff] %v1032_v29  ;;  %v3382_v44 = vsel %vm1157_vm15, %v3381_v52, %v9675_v16  ;;  %v9677_v59 = vrot.slane %v9676_v18, 1  ;;  %v3660_v38 = vrot.slane %v3585_v35, 3  ;;  %v9681_v52 = vld [vmem:[#allocation86_spill] sm:$0xff]  ;;  %v9682_v2 = vld [vmem:[#allocation69_spill] sm:$0xff] }
 0x1f6   : > { %v3954_v1 = vsel %vm1163_vm1, %v9672_v42, %v3952_v40  ;;  %v3937_v62 = vrot.slane %v3862_v41, 3  ;;  %v3659_v23 = vsel %vm1157_vm15, %v3658_v0, %v9678_v58  ;;  %v9679_v40 = vld [vmem:[#allocation63_spill] sm:$0xff]  ;;  %v3936_v7 = vsel %vm1157_vm15, %v3935_v51, %v9681_v52  ;;  %v1026_v41 = vpop.permute.xlu1 %1025  ;;  %v8507_v28 = vld [vmem:[#allocation3 + $0x219] sm:$0x1]  ;;  %v8517_v16 = vld [vmem:[#allocation3 + $0x21a] sm:$0x1] }
 0x1f7   : > { %v4227_v19 = vsel %vm1157_vm15, %v9674_v17, %v4225_v32  ;;  %v8491_v50 = vsel %vm1166_vm2, %v9677_v59, %v3400_v47  ;;  %v9680_v32 = vrot.slane %v9679_v40, 1  ;;  %v4416_v47 = vld [vmem:[#allocation3 + $0x5c] sm:$0x1]  ;;  %v4502_v35 = vsel %vm1154_vm13, %v4501_v3, %v4500_v5  ;;  %v3309_v5 = vld [vmem:[#allocation3 + $0x68] sm:$0x1] }
 0x1f8   : > { %v9683_v29 = vrot.slane %v9682_v2, 1  ;;  %v4212_v48 = vrot.slane %v4138_v33, 4  ;;  %v4214_v42 = vrot.slane %v4139_v15, 3  ;;  %v1041_v51 = vsel %vm460_vm12, %v1024_v11, %v1026_v41  ;;  %v8522_v59 = vld [vmem:[#allocation3 + $0x21b] sm:$0x1] }
 0x1f9   : > { %v8500_v13 = vsel %vm1166_vm2, %v9680_v32, %v3677_v46  ;;  %v9684_v46 = vld [vmem:[#allocation71_spill] sm:$0xff]  ;;  %v2877_v3 = vrot.slane %v8484_v10, 7  ;;  %v3384_v18 = vsel %vm1160_vm0, %v3383_v31, %v3382_v44  ;;  %v4489_v58 = vrot.slane %v4415_v43, 4  ;;  %1066 = vst [vmem:[#allocation3 + $0x236] sm:$0xff] %v1041_v51  ;;  %v8529_v11 = vld [vmem:[#allocation3 + $0x4d] sm:$0x1] }
 0x1fa   : > { %v8512_v0 = vsel %vm1166_vm2, %v9683_v29, %v3954_v1  ;;  %v9685_v4 = vrot.slane %v9684_v46, 3  ;;  %v580_v1 = vpop.permute.xlu0 %579  ;;  %v3154_v33 = vrot.slane %v8493_v24, 7  ;;  %v3431_v15 = vrot.slane %v8502_v60, 7  ;;  %v3586_v10 = vld [vmem:[#allocation3 + $0x69] sm:$0x1] }
 0x1fb   : > { %v4491_v40 = vrot.slane %v4416_v47, 3  ;;  %v3661_v41 = vsel %vm1160_vm0, %v3660_v38, %v3659_v23  ;;  %v8533_v44 = vld [vmem:[#allocation3 + $0x6a] sm:$0x1]  ;;  %v582_v47 = vpop.permute.xlu1 %581  ;;  %v3310_v46 = vld [vmem:[#allocation3 + $0x78] sm:$0x1]  ;;  %v3662_v29 = vrot.slane %v3586_v10, 2  ;;  %v8570_v10 = vsel %vm1163_vm1, %v4535_v9, %v8474_v21 }
 0x1fc   : > { %v4229_v17 = vsel %vm1160_vm0, %v9685_v4, %v4227_v19  ;;  %v9686_v19 = vld [vmem:[#allocation76_spill] sm:$0xff]  ;;  %v3385_v4 = vrot.slane %v3309_v5, 2  ;;  %v3587_v51 = vld [vmem:[#allocation3 + $0x79] sm:$0x1]  ;;  %v2781_v45 = vld [vmem:[#allocation3 + $0x206] sm:$0x1] }
 0x1fd   : > { %v9687_v32 = vrot.slane %v9686_v19, 4  ;;  %v9688_v43 = vld [vmem:[#allocation72_spill] sm:$0xff]  ;;  %v9690_v19 = vld [vmem:[#allocation87_spill] sm:$0xff] }
 0x1fe   : > { %v9689_v2 = vrot.slane %v9688_v43, 2  ;;  %v4213_v38 = vsel %vm1157_vm15, %v4212_v48, %v9690_v19  ;;  %v3058_v43 = vld [vmem:[#allocation3 + $0x207] sm:$0x1]  ;;  %v8546_v30 = vld [vmem:[#allocation3 + $0x6b] sm:$0x1]  ;;  %v592_v48 = vpop.permute.xlu0 %591  ;;  %v3386_v56 = vsel %vm1163_vm1, %v3385_v4, %v3384_v18 }
 0x1ff   : > { %v4504_v52 = vsel %vm1157_vm15, %v9687_v32, %v4502_v35  ;;  %v8540_v35 = vsel %vm1160_vm0, %v3937_v62, %v3936_v7  ;;  %v612_v32 = vsel %vm370_vm14, %v580_v1, %v582_v47  ;;  %v9693_v62 = vrot.slane %v9692_v39, 3  ;;  %v2783_v19 = vld [vmem:[#allocation3 + $0x226] sm:$0x1]  ;;  %v3060_v23 = vld [vmem:[#allocation3 + $0x227] sm:$0x1]  ;;  %v9694_v1 = vld [vmem:[#allocation73_spill] sm:$0xff] }
 0x200   : > { %v4231_v24 = vsel %vm1163_vm1, %v9689_v2, %v4229_v17  ;;  %v8549_v17 = vsel %vm1160_vm0, %v4214_v42, %v4213_v38  ;;  %v9691_v2 = vld [vmem:[#allocation10_spill] sm:$0xff]  ;;  %637 = vst [vmem:[#allocation3 + $0x11f] sm:$0x1] %v612_v32  ;;  %v9695_v47 = vrot.slane %v9694_v1, 1  ;;  %v4766_v38 = vrot.slane %v8529_v11, 4  ;;  %v594_v32 = vpop.permute.xlu1 %593 }
 0x201   : > { %v4490_v5 = vsel %vm1157_vm15, %v4489_v58, %v9691_v2  ;;  %v4506_v7 = vsel %vm1160_vm0, %v9693_v62, %v4504_v52  ;;  %v3387_v58 = vrot.slane %v3310_v46, 1  ;;  %v3664_v2 = vrot.slane %v3587_v51, 1  ;;  %v4699_v52 = vld [vmem:[#allocation3 + $0xbd] sm:$0x1]  ;;  %v2784_v54 = vld [vmem:[#allocation3 + $0x236] sm:$0x1] }
 0x202   : > { %v8559_v20 = vsel %vm1166_vm2, %v9695_v47, %v4231_v24  ;;  %v8562_v42 = vsel %vm1160_vm0, %v4491_v40, %v4490_v5  ;;  %v3939_v39 = vrot.slane %v8533_v44, 2  ;;  %v2878_v24 = vsel %vm1148_vm10, %v2877_v3, %v2781_v45  ;;  %v8575_v5 = vld [vmem:[#allocation3 + $0x6c] sm:$0x1]  ;;  %v9696_v11 = vld [vmem:[#allocation78_spill] sm:$0xff]  ;;  %v3061_v21 = vld [vmem:[#allocation3 + $0x237] sm:$0x1]  ;;  %v568_v45 = vpop.permute.xlu0 %567 }
 0x203   : > { %v3155_v62 = vsel %vm1148_vm10, %v3154_v33, %v3058_v43  ;;  %v4216_v40 = vrot.slane %v8546_v30, 2  ;;  %v9697_v46 = vrot.slane %v9696_v11, 2  ;;  %v4693_v51 = vld [vmem:[#allocation3 + $0x5d] sm:$0x1]  ;;  %v615_v1 = vsel %vm370_vm14, %v592_v48, %v594_v32  ;;  %v3864_v43 = vld [vmem:[#allocation3 + $0x7a] sm:$0x1] }
 0x204   : > { %v2879_v47 = vrot.slane %v2783_v19, 6  ;;  %v3156_v9 = vrot.slane %v3060_v23, 6  ;;  %640 = vst [vmem:[#allocation3 + $0x12f] sm:$0x1] %v615_v1  ;;  %v2881_v3 = vrot.slane %v2784_v54, 5  ;;  %v3158_v33 = vrot.slane %v3061_v21, 5  ;;  %v570_v18 = vpop.permute.xlu1 %569 }
 0x205   : > { %v4508_v44 = vsel %vm1163_vm1, %v9697_v46, %v4506_v7  ;;  %v3663_v30 = vsel %vm1163_vm1, %v3662_v29, %v3661_v41  ;;  %v4778_v31 = vrot.slane %v4699_v52, 5  ;;  %v3388_v48 = vsel %vm1166_vm2, %v3387_v58, %v3386_v56  ;;  %v8587_v32 = vld [vmem:[#allocation3 + $0x228] sm:$0x1]  ;;  %v4694_v23 = vld [vmem:[#allocation3 + $0x6d] sm:$0x1]  ;;  %v9698_v58 = vld [vmem:[#allocation79_spill] sm:$0xff] }
 0x206   : > { %v2880_v11 = vsel %vm1151_vm11, %v2879_v47, %v2878_v24  ;;  %v3157_v7 = vsel %vm1151_vm11, %v3156_v9, %v3155_v62  ;;  %v3665_v19 = vsel %vm1166_vm2, %v3664_v2, %v3663_v30  ;;  %v8591_v1 = vld [vmem:[#allocation3 + $0x7b] sm:$0x1]  ;;  %v4493_v41 = vrot.slane %v8575_v5, 2  ;;  %v4442_v52 = vld [vmem:[#allocation3 + $0x1fc] sm:$0x1]  ;;  %v604_v47 = vpop.permute.xlu0 %603 }
 0x207   : > { %v2882_v4 = vsel %vm1154_vm13, %v2881_v3, %v2880_v11  ;;  %v3159_v46 = vsel %vm1154_vm13, %v3158_v33, %v3157_v7  ;;  %v4768_v29 = vrot.slane %v4693_v51, 3  ;;  %v609_v24 = vsel %vm370_vm14, %v568_v45, %v570_v18  ;;  %v3335_v21 = vld [vmem:[#allocation3 + $0x208] sm:$0x1]  ;;  %v3614_v45 = vld [vmem:[#allocation3 + $0x229] sm:$0x1] }
 0x208   : > { %5888 = vmatpush3.msk.msra.mxu0 %vm1224_vm3, %v2882_v4  ;;  %5901 = vmatpush3.msk.msra.mxu1 %vm1224_vm3, %v3159_v46  ;;  %v3941_v56 = vrot.slane %v3864_v43, 1  ;;  %v9699_v2 = vrot.slane %v9698_v58, 1  ;;  %v4767_v54 = vsel %vm1157_vm15, %v4766_v38, %v8081_v34  ;;  %634 = vst [vmem:[#allocation3 + $0x10f] sm:$0x1] %v609_v24  ;;  %v6058_v5 = vpack.c.bf16 %v8491_v50, %v3388_v48  ;;  %v4418_v38 = vld [vmem:[#allocation3 + $0x7c] sm:$0x1]  ;;  %v606_v43 = vpop.permute.xlu1 %605 }
 0x209   : > { %6057 = vmatprep.subr.bf16.mxu0 %v9550_v12  ;;  %6063 = vmatprep.subr.bf16.mxu1 %v9550_v12  ;;  %v6064_v51 = vpack.c.bf16 %v8500_v13, %v3665_v19  ;;  %v3433_v9 = vrot.slane %v8587_v32, 6  ;;  %v4770_v3 = vrot.slane %v4694_v23, 2  ;;  %v3940_v34 = vsel %vm1163_vm1, %v3939_v39, %v8540_v35  ;;  %v8621_v13 = vld [vmem:[#allocation3 + $0x22a] sm:$0x1]  ;;  %v3338_v11 = vld [vmem:[#allocation3 + $0x238] sm:$0x1] }
 0x20a   : > { %v8600_v62 = vsel %vm1166_vm2, %v9699_v2, %v4508_v44  ;;  %v8612_v44 = vld [vmem:[%s9239_s1] sm:$0xff]  ;;  %v4218_v50 = vrot.slane %v8591_v1, 1  ;;  %v4779_v33 = vsel %vm1154_vm13, %v4778_v31, %v8471_v14  ;;  %v4537_v30 = vrot.slane %v4442_v52, 1  ;;  %v3612_v7 = vld [vmem:[#allocation3 + $0x209] sm:$0x1] }
 0x20b   : > { %5890 = vmatmul.mubr.msk.f32.vlgmr.msra.gmra.mrb[6].mxu0 %vm1220_vm4, %v8612_v44  ;;  %5903 = vmatmul.mubr.msk.f32.vlgmr.msra.gmra.mrb[6].mxu1 %vm1220_vm4, %v8612_v44  ;;  %v3615_v48 = vld [vmem:[#allocation3 + $0x239] sm:$0x1]  ;;  %v4217_v19 = vsel %vm1163_vm1, %v4216_v40, %v8549_v17  ;;  %v4494_v35 = vsel %vm1163_vm1, %v4493_v41, %v8562_v42  ;;  %v4769_v39 = vsel %vm1160_vm0, %v4768_v29, %v4767_v54  ;;  %v3710_v31 = vrot.slane %v3614_v45, 6  ;;  %v4168_v17 = vld [vmem:[#allocation3 + $0x22b] sm:$0x1]  ;;  %v701_v40 = vpop.permute.xlu0 %700 }
 0x20c   : > { %6059 = vmatpush3.bf16.msra.mxu0 %v6058_v5  ;;  %6065 = vmatpush3.bf16.msra.mxu1 %v6064_v51  ;;  %v618_v32 = vsel %vm370_vm14, %v604_v47, %v606_v43  ;;  %v3432_v14 = vsel %vm1148_vm10, %v3431_v15, %v3335_v21  ;;  %v8637_v23 = vsel %vm1166_vm2, %v3941_v56, %v3940_v34  ;;  %v3889_v42 = vld [vmem:[#allocation3 + $0x20a] sm:$0x1]  ;;  %v3987_v18 = vrot.slane %v8621_v13, 6  ;;  %v4705_v41 = vld [vmem:[#allocation3 + $0x11d] sm:$0x1]  ;;  %v703_v47 = vpop.permute.xlu1 %702 }
 0x20d   : > { %6060 = vmatprep.subr.bf16.mxu0 %v9550_v12  ;;  %6066 = vmatprep.subr.bf16.mxu1 %v9550_v12  ;;  %643 = vst [vmem:[#allocation3 + $0x13f] sm:$0x1] %v618_v32  ;;  %v4495_v4 = vrot.slane %v4418_v38, 1  ;;  %v4771_v60 = vsel %vm1163_vm1, %v4770_v3, %v4769_v39  ;;  %v9700_v15 = vld [vmem:[#allocation80_spill] sm:$0xff]  ;;  %v3435_v29 = vrot.slane %v3338_v11, 5  ;;  %v9702_v52 = vrot.slane %v8507_v28, 7 }
 0x20e   : > { %5915 = vmatprep.mubr.msk.f32.mxu0 %vm6233_vm9, %v9602_v6  ;;  %5928 = vmatprep.mubr.msk.f32.mxu1 %vm6233_vm9, %v9602_v6  ;;  %v9701_v46 = vrot.slane %v9700_v15, 4  ;;  %v3712_v56 = vrot.slane %v3615_v48, 5  ;;  %v4166_v58 = vld [vmem:[#allocation3 + $0x20b] sm:$0x1]  ;;  %v4695_v2 = vld [vmem:[#allocation3 + $0x7d] sm:$0x1]  ;;  %v8653_v54 = vsel %vm1166_vm2, %v4537_v30, %v8570_v10  ;;  %v9703_v5 = vpack.c.bf16 %v8385_v55, %v8377_v63 }
 0x20f   : > { %v3709_v24 = vsel %vm1148_vm10, %v9702_v52, %v3612_v7  ;;  %v9704_v51 = vpack.c.bf16 %v8392_v57, %v8380_v8  ;;  %v3434_v28 = vsel %vm1151_vm11, %v3433_v9, %v3432_v14  ;;  %v6070_v21 = vpack.c.bf16 %v8512_v0, %v8637_v23  ;;  %v3892_v3 = vld [vmem:[#allocation3 + $0x23a] sm:$0x1]  ;;  %v4169_v34 = vld [vmem:[#allocation3 + $0x23b] sm:$0x1]  ;;  %v9706_v55 = vld [vmem:[#allocation41_spill] sm:$0xff]  ;;  %v859_v38 = vpop.permute.xlu0 %858 }
 0x210   : > { %v4781_v1 = vsel %vm1157_vm15, %v9701_v46, %v4779_v33  ;;  %6062 = vmatpush3.bf16.msra.mxu0 %v9703_v5  ;;  %v4219_v45 = vsel %vm1166_vm2, %v4218_v50, %v4217_v19  ;;  %v4264_v10 = vrot.slane %v4168_v17, 6  ;;  %v742_v13 = vsel %vm460_vm12, %v701_v40, %v703_v47  ;;  %v4707_v7 = vld [vmem:[#allocation3 + $0x13d] sm:$0x1]  ;;  %v4706_v14 = vld [vmem:[#allocation3 + $0x12d] sm:$0x1] }
 0x211   : > { %6068 = vmatpush3.bf16.msra.mxu1 %v9704_v51  ;;  %5913 = vmatprep.subr.mxu0 %v9602_v6  ;;  %v9705_v63 = vrot.slane %v8517_v16, 7  ;;  %v9707_v57 = vrot.slane %v9706_v55, 3  ;;  %v4788_v0 = vrot.slane %v4705_v41, 7  ;;  %767 = vst [vmem:[#allocation3 + $0x14f] sm:$0x1] %v742_v13  ;;  %v3711_v50 = vsel %vm1151_vm11, %v3710_v31, %v3709_v24  ;;  %v9709_v17 = vld [vmem:[#allocation48_spill] sm:$0xff] }
 0x212   : > { %5926 = vmatprep.subr.mxu1 %v9602_v6  ;;  %v9708_v33 = vrot.slane %v8522_v59, 7  ;;  %v8679_v43 = vsel %vm1166_vm2, %v4495_v4, %v4494_v35  ;;  %v4772_v11 = vrot.slane %v4695_v2, 1  ;;  %v4704_v16 = vld [vmem:[#allocation3 + $0x10d] sm:$0x1]  ;;  %v3436_v48 = vsel %vm1154_vm13, %v3435_v29, %v3434_v28  ;;  %v861_v59 = vpop.permute.xlu1 %860  ;;  %v8692_v4 = vld [vmem:[#allocation3 + $0x15d] sm:$0x1] }
 0x213   : > { %v3986_v8 = vsel %vm1148_vm10, %v9705_v63, %v3889_v42  ;;  %v4783_v9 = vsel %vm1160_vm0, %v9707_v57, %v4781_v1  ;;  %v3713_v19 = vsel %vm1154_vm13, %v3712_v56, %v3711_v50  ;;  %v3989_v39 = vrot.slane %v3892_v3, 5  ;;  %v8683_v23 = vld [vmem:[#allocation3 + $0x14d] sm:$0x1]  ;;  %v8702_v41 = vld [vmem:[#allocation3 + $0x1dd] sm:$0x1]  ;;  %v713_v56 = vpop.permute.xlu0 %712  ;;  %v9711_v13 = vld [vmem:[#allocation81_spill] sm:$0xff] }
 0x214   : > { %v4263_v30 = vsel %vm1148_vm10, %v9708_v33, %v4166_v58  ;;  %v4266_v32 = vrot.slane %v4169_v34, 5  ;;  %5914 = vmatpush3.msk.msra.mxu0 %vm1224_vm3, %v3436_v48  ;;  %v6076_v35 = vpack.c.bf16 %v8559_v20, %v4219_v45  ;;  %v3988_v31 = vsel %vm1151_vm11, %v3987_v18, %v3986_v8  ;;  %v8694_v15 = vld [vmem:[#allocation3 + $0x16d] sm:$0x1]  ;;  %v4974_v52 = vld [vmem:[#allocation3 + $0x9e] sm:$0x1] }
 0x215   : > { %5927 = vmatpush3.msk.msra.mxu1 %vm1224_vm3, %v3713_v19  ;;  %v9710_v40 = vrot.slane %v9709_v17, 2  ;;  %v8696_v46 = vld [vmem:[#allocation3 + $0x1cd] sm:$0x1]  ;;  %6069 = vmatprep.subr.bf16.mxu0 %v9550_v12  ;;  %v900_v1 = vsel %vm370_vm14, %v859_v38, %v861_v59  ;;  %v4265_v20 = vsel %vm1151_vm11, %v4264_v10, %v4263_v30  ;;  %v4789_v18 = vsel %vm1148_vm10, %v4788_v0, %v4704_v16  ;;  %v5251_v24 = vld [vmem:[#allocation3 + $0x9f] sm:$0x1] }
 0x216   : > { %6075 = vmatprep.subr.bf16.mxu1 %v9550_v12  ;;  %v4792_v29 = vrot.slane %v4707_v7, 5  ;;  %925 = vst [vmem:[#allocation3 + $0x1ce] sm:$0x3] %v900_v1  ;;  %5916 = vmatmul.mubr.msk.f32.vlgmr.msra.gmra.mrb[8].mxu0 %vm1220_vm4, %v8612_v44  ;;  %v6082_v58 = vpack.c.bf16 %v8600_v62, %v8679_v43  ;;  %v8712_v2 = vsel %vm1166_vm2, %v4772_v11, %v4771_v60  ;;  %v8716_v51 = vld [vmem:[#allocation3 + $0x1ed] sm:$0x1]  ;;  %v4790_v47 = vrot.slane %v4706_v14, 6 }
 0x217   : > { %v4785_v42 = vsel %vm1163_vm1, %v9710_v40, %v4783_v9  ;;  %5929 = vmatmul.mubr.msk.f32.vlgmr.msra.gmra.mrb[8].mxu1 %vm1220_vm4, %v8612_v44  ;;  %v6085_v5 = vpack.c.bf16 %v8653_v54, %v8439_v25  ;;  %v4973_v28 = vld [vmem:[#allocation3 + $0x8e] sm:$0x1]  ;;  %v5252_v3 = vld [vmem:[#allocation3 + $0xaf] sm:$0x1]  ;;  %6071 = vmatpush3.bf16.msra.mxu0 %v6070_v21  ;;  %v3990_v34 = vsel %vm1154_vm13, %v3989_v39, %v3988_v31  ;;  %v9712_v63 = vrot.slane %v9711_v13, 1  ;;  %v715_v9 = vpop.permute.xlu1 %714  ;;  %v871_v39 = vpop.permute.xlu0 %870 }
 0x218   : > { %v4975_v45 = vld [vmem:[#allocation3 + $0xae] sm:$0x1]  ;;  %6077 = vmatpush3.bf16.msra.mxu1 %v6076_v35  ;;  %v4267_v10 = vsel %vm1154_vm13, %v4266_v32, %v4265_v20  ;;  %v4794_v8 = vrot.slane %v8683_v23, 4  ;;  %v4976_v55 = vld [vmem:[#allocation3 + $0xbe] sm:$0x1]  ;;  %6072 = vmatprep.subr.bf16.mxu0 %v9550_v12  ;;  %v4791_v21 = vsel %vm1151_vm11, %v4790_v47, %v4789_v18  ;;  %v4796_v0 = vrot.slane %v8692_v4, 3 }
 0x219   : > { %v8723_v60 = vsel %vm1166_vm2, %v9712_v63, %v4785_v42  ;;  %v5253_v57 = vld [vmem:[#allocation3 + $0xbf] sm:$0x1]  ;;  %6078 = vmatprep.subr.bf16.mxu1 %v9550_v12  ;;  %v4798_v50 = vrot.slane %v8694_v15, 2  ;;  %v5051_v38 = vrot.slane %v4974_v52, 7  ;;  %v5250_v33 = vld [vmem:[#allocation3 + $0x8f] sm:$0x1]  ;;  %v745_v30 = vsel %vm460_vm12, %v713_v56, %v715_v9  ;;  %5941 = vmatprep.mubr.msk.f32.mxu0 %vm6233_vm9, %v9602_v6 }
 0x21a   : > { %5954 = vmatprep.mubr.msk.f32.mxu1 %vm6233_vm9, %v9602_v6  ;;  %v8736_v11 = vld [vmem:[#allocation3 + $0x17d] sm:$0x1]  ;;  %v4793_v7 = vsel %vm1154_vm13, %v4792_v29, %v4791_v21  ;;  %v4808_v48 = vrot.slane %v8696_v46, 4  ;;  %v5328_v19 = vrot.slane %v5251_v24, 7  ;;  %770 = vst [vmem:[#allocation3 + $0x15f] sm:$0x1] %v745_v30  ;;  %v9713_v35 = vpack.c.bf16 %v8410_v37, %v8403_v26 }
 0x21b   : > { %v4719_v16 = vld [vmem:[#allocation3 + $0x1fd] sm:$0x1]  ;;  %v4810_v32 = vrot.slane %v8702_v41, 3  ;;  %v5052_v14 = vsel %vm1148_vm10, %v5051_v38, %v4973_v28  ;;  %v5055_v23 = vrot.slane %v4976_v55, 5  ;;  %v5332_v59 = vrot.slane %v5253_v57, 5  ;;  %v873_v15 = vpop.permute.xlu1 %872  ;;  %v725_v13 = vpop.permute.xlu0 %724 }
 0x21c   : > { %6074 = vmatpush3.bf16.msra.mxu0 %v9713_v35  ;;  %v9714_v31 = vpack.c.bf16 %v8425_v53, %v8418_v27  ;;  %v4812_v17 = vrot.slane %v8716_v51, 2  ;;  %v5053_v40 = vrot.slane %v4975_v45, 6  ;;  %v5329_v42 = vsel %vm1148_vm10, %v5328_v19, %v5250_v33  ;;  %v4444_v53 = vld [vmem:[#allocation3 + $0x21c] sm:$0x1]  ;;  %v4969_v1 = vld [vmem:[#allocation3 + $0x4e] sm:$0x1] }
 0x21d   : > { %v5330_v4 = vrot.slane %v5252_v3, 6  ;;  %5939 = vmatprep.subr.mxu0 %v9602_v6  ;;  %v6088_v46 = vpack.c.bf16 %v8723_v60, %v8712_v2  ;;  %v4795_v26 = vsel %vm1157_vm15, %v4794_v8, %v4793_v7  ;;  %v4800_v37 = vrot.slane %v8736_v11, 1  ;;  %v8759_v18 = vld [vmem:[#allocation3 + $0x23c] sm:$0x1]  ;;  %v4721_v29 = vld [vmem:[#allocation3 + $0x21d] sm:$0x1] }
 0x21e   : > { %6080 = vmatpush3.bf16.msra.mxu1 %v9714_v31  ;;  %v4814_v27 = vrot.slane %v4719_v16, 1  ;;  %v903_v20 = vsel %vm370_vm14, %v871_v39, %v873_v15  ;;  %v4809_v41 = vsel %vm1157_vm15, %v4808_v48, %v8110_v36  ;;  %v8761_v52 = vld [vmem:[#allocation3 + $0x5e] sm:$0x1]  ;;  %v5054_v24 = vsel %vm1151_vm11, %v5053_v40, %v5052_v14  ;;  %v8767_v47 = vld [vmem:[#allocation3 + $0x6e] sm:$0x1] }
 0x21f   : > { %5952 = vmatprep.subr.mxu1 %v9602_v6  ;;  %v5331_v56 = vsel %vm1151_vm11, %v5330_v4, %v5329_v42  ;;  %928 = vst [vmem:[#allocation3 + $0x1de] sm:$0x3] %v903_v20  ;;  %v4797_v2 = vsel %vm1160_vm0, %v4796_v0, %v4795_v26  ;;  %v4811_v51 = vsel %vm1160_vm0, %v4810_v32, %v4809_v41  ;;  %v5246_v45 = vld [vmem:[#allocation3 + $0x4f] sm:$0x1]  ;;  %v8770_v36 = vld [vmem:[#allocation3 + $0x5f] sm:$0x1]  ;;  %v727_v21 = vpop.permute.xlu1 %726  ;;  %v883_v42 = vpop.permute.xlu0 %882 }
 0x220   : > { %v5056_v28 = vsel %vm1154_vm13, %v5055_v23, %v5054_v24  ;;  %v5333_v3 = vsel %vm1154_vm13, %v5332_v59, %v5331_v56  ;;  %5940 = vmatpush3.msk.msra.mxu0 %vm1224_vm3, %v3990_v34  ;;  %v4799_v63 = vsel %vm1163_vm1, %v4798_v50, %v4797_v2  ;;  %v4813_v60 = vsel %vm1163_vm1, %v4812_v17, %v4811_v51  ;;  %v4443_v8 = vld [vmem:[#allocation3 + $0x20c] sm:$0x1]  ;;  %v4720_v57 = vld [vmem:[#allocation3 + $0x20d] sm:$0x1]  ;;  %v5248_v33 = vld [vmem:[#allocation3 + $0x6f] sm:$0x1] }
 0x221   : > { %v4539_v55 = vrot.slane %v4444_v53, 7  ;;  %v5043_v9 = vrot.slane %v4969_v1, 4  ;;  %6081 = vmatprep.subr.bf16.mxu0 %v9550_v12  ;;  %v4815_v0 = vsel %vm1166_vm2, %v4814_v27, %v4813_v60  ;;  %v4543_v34 = vrot.slane %v8759_v18, 5  ;;  %5942 = vmatmul.mubr.msk.f32.vlgmr.msra.gmra.mrb[10].mxu0 %vm1220_vm4, %v8612_v44  ;;  %v4972_v30 = vld [vmem:[#allocation3 + $0x7e] sm:$0x1]  ;;  %v9717_v39 = vld [vmem:[#allocation84_spill] sm:$0xff] }
 0x222   : > { %5953 = vmatpush3.msk.msra.mxu1 %vm1224_vm3, %v4267_v10  ;;  %v4816_v38 = vrot.slane %v4721_v29, 7  ;;  %v5045_v10 = vrot.slane %v8761_v52, 3  ;;  %v748_v50 = vsel %vm460_vm12, %v725_v13, %v727_v21  ;;  %v9715_v11 = vld [vmem:[#allocation42_spill] sm:$0xff]  ;;  %v5320_v19 = vrot.slane %v5246_v45, 4  ;;  %6083 = vmatpush3.bf16.msra.mxu0 %v6082_v58  ;;  %v4445_v4 = vld [vmem:[#allocation3 + $0x22c] sm:$0x1] }
 0x223   : > { %6087 = vmatprep.subr.bf16.mxu1 %v9550_v12  ;;  %5955 = vmatmul.mubr.msk.f32.vlgmr.msra.gmra.mrb[10].mxu1 %vm1220_vm4, %v8612_v44  ;;  %v9716_v16 = vrot.slane %v9715_v11, 4  ;;  %v5249_v48 = vld [vmem:[#allocation3 + $0x7f] sm:$0x1]  ;;  %v9718_v32 = vrot.slane %v9717_v39, 4  ;;  %773 = vst [vmem:[#allocation3 + $0x16f] sm:$0x1] %v748_v50  ;;  %v4801_v23 = vsel %vm1166_vm2, %v4800_v37, %v4799_v63  ;;  %v4540_v59 = vsel %vm1148_vm10, %v4539_v55, %v4443_v8 }
 0x224   : > { %6089 = vmatpush3.bf16.msra.mxu1 %v6088_v46  ;;  %v4723_v35 = vld [vmem:[#allocation3 + $0x23d] sm:$0x1]  ;;  %v5047_v31 = vrot.slane %v8767_v47, 2  ;;  %v5322_v17 = vrot.slane %v8770_v36, 3  ;;  %6084 = vmatprep.subr.bf16.mxu0 %v9550_v12  ;;  %v6091_v40 = vpack.c.bf16 %v4815_v0, %v4801_v23  ;;  %v4722_v62 = vld [vmem:[#allocation3 + $0x22d] sm:$0x1]  ;;  %v4817_v43 = vsel %vm1148_vm10, %v4816_v38, %v4720_v57  ;;  %v885_v46 = vpop.permute.xlu1 %884  ;;  %v737_v23 = vpop.permute.xlu0 %736 }
 0x225   : > { %v5058_v7 = vsel %vm1157_vm15, %v9716_v16, %v5056_v28  ;;  %v5335_v14 = vsel %vm1157_vm15, %v9718_v32, %v5333_v3  ;;  %6090 = vmatprep.subr.bf16.mxu1 %v9550_v12  ;;  %v5044_v58 = vsel %vm1157_vm15, %v5043_v9, %v8116_v49  ;;  %v5324_v15 = vrot.slane %v5248_v33, 2  ;;  %5967 = vmatprep.mubr.msk.f32.mxu0 %vm6233_vm9, %v9602_v6  ;;  %v9719_v37 = vld [vmem:[#allocation49_spill] sm:$0xff]  ;;  %v4982_v45 = vld [vmem:[#allocation3 + $0x11e] sm:$0x1]  ;;  %v1069_v36 = vld [vmem:[%s9240_s2] sm:$0xff] }
 0x226   : > { %5980 = vmatprep.mubr.msk.f32.mxu1 %vm6233_vm9, %v9602_v6  ;;  %v5049_v26 = vrot.slane %v4972_v30, 1  ;;  %v9720_v27 = vrot.slane %v9719_v37, 3  ;;  %v5326_v1 = vrot.slane %v5249_v48, 1  ;;  %v9721_v20 = vld [vmem:[#allocation9_spill] sm:$0xff]  ;;  %v906_v49 = vsel %vm370_vm14, %v883_v42, %v885_v46  ;;  %6086 = vmatpush3.bf16.msra.mxu0 %v6085_v5  ;;  %v4990_v60 = vld [vmem:[#allocation3 + $0x19e] sm:$0x1] }
 0x227   : > { %v9722_v41 = vrot.slane %v9721_v20, 3  ;;  %v4820_v52 = vrot.slane %v4723_v35, 5  ;;  %v5046_v24 = vsel %vm1160_vm0, %v5045_v10, %v5044_v58  ;;  %v5321_v56 = vsel %vm1157_vm15, %v5320_v19, %v8172_v22  ;;  %931 = vst [vmem:[#allocation3 + $0x1ee] sm:$0x3] %v906_v49  ;;  %5965 = vmatprep.subr.mxu0 %v9602_v6  ;;  %v9723_v22 = vld [vmem:[#allocation51_spill] sm:$0xff]  ;;  %v9725_v3 = vld [vmem:[#allocation13_spill] sm:$0xff] }
 0x228   : > { %v5060_v53 = vsel %vm1160_vm0, %v9720_v27, %v5058_v7  ;;  %6092 = vmatpush3.bf16.msra.mxu1 %v6091_v40  ;;  %v4541_v2 = vrot.slane %v4445_v4, 6  ;;  %v4818_v51 = vrot.slane %v4722_v62, 6  ;;  %v5048_v47 = vsel %vm1163_vm1, %v5047_v31, %v5046_v24  ;;  %v4981_v21 = vld [vmem:[#allocation3 + $0x10e] sm:$0x1]  ;;  %v4984_v0 = vld [vmem:[#allocation3 + $0x13e] sm:$0x1]  ;;  %v739_v16 = vpop.permute.xlu1 %738 }
 0x229   : > { %v5337_v29 = vsel %vm1160_vm0, %v9722_v41, %v5335_v14  ;;  %v5323_v28 = vsel %vm1160_vm0, %v5322_v17, %v5321_v56  ;;  %5978 = vmatprep.subr.mxu1 %v9602_v6  ;;  %v9724_v25 = vrot.slane %v9723_v22, 2  ;;  %v9726_v13 = vrot.slane %v9725_v3, 2  ;;  %v4983_v50 = vld [vmem:[#allocation3 + $0x12e] sm:$0x1]  ;;  %v9727_v7 = vld [vmem:[#allocation54_spill] sm:$0xff]  ;;  %v895_v56 = vpop.permute.xlu0 %894 }
 0x22a   : > { %v5325_v5 = vsel %vm1163_vm1, %v5324_v15, %v5323_v28  ;;  %v4542_v8 = vsel %vm1151_vm11, %v4541_v2, %v4540_v59  ;;  %v4819_v55 = vsel %vm1151_vm11, %v4818_v51, %v4817_v43  ;;  %v5050_v57 = vsel %vm1166_vm2, %v5049_v26, %v5048_v47  ;;  %v4989_v30 = vld [vmem:[#allocation3 + $0x18e] sm:$0x1]  ;;  %v5267_v14 = vld [vmem:[#allocation3 + $0x19f] sm:$0x1]  ;;  %v8854_v17 = vld [vmem:[#allocation3 + $0x15e] sm:$0x1] }
 0x22b   : > { %v5062_v54 = vsel %vm1163_vm1, %v9724_v25, %v5060_v53  ;;  %v5339_v63 = vsel %vm1163_vm1, %v9726_v13, %v5337_v29  ;;  %v5327_v9 = vsel %vm1166_vm2, %v5326_v1, %v5325_v5  ;;  %v6234_v38 = vmov 0   ;;  %v4985_v31 = vld [vmem:[#allocation3 + $0x14e] sm:$0x1]  ;;  %v8856_v40 = vld [vmem:[#allocation3 + $0x1be] sm:$0x1] }
 0x22c   : > { %6154 = vset.pattern.permute.xlu0 %v6234_v38  ;;  %v4544_v10 = vsel %vm1154_vm13, %v4543_v34, %v4542_v8  ;;  %v4821_v33 = vsel %vm1154_vm13, %v4820_v52, %v4819_v55  ;;  %v5065_v11 = vrot.slane %v4982_v45, 7  ;;  %v9728_v48 = vrot.slane %v9727_v7, 1  ;;  %v4991_v34 = vld [vmem:[#allocation3 + $0x1ae] sm:$0x1]  ;;  %v5268_v4 = vld [vmem:[#allocation3 + $0x1af] sm:$0x1]  ;;  %v897_v20 = vpop.permute.xlu1 %896 }
 0x22d   : > { %1108 = vperm.xlu0 %6154, %v1069_v36   ;;  %5966 = vmatpush3.msk.msra.mxu0 %vm1224_vm3, %v4544_v10  ;;  %v9729_v39 = vrot.slane %v7975_v61, 1  ;;  %v5079_v32 = vrot.slane %v4990_v60, 7  ;;  %v5069_v61 = vrot.slane %v4984_v0, 5  ;;  %v751_v62 = vsel %vm460_vm12, %v737_v23, %v739_v16  ;;  %v8864_v43 = vld [vmem:[#allocation3 + $0x16e] sm:$0x1]  ;;  %v1004_v10 = vpop.permute.xlu0 %1003 }
 0x22e   : > { %5979 = vmatpush3.msk.msra.mxu1 %vm1224_vm3, %v4821_v33  ;;  %v5064_v19 = vsel %vm1166_vm2, %v9728_v48, %v5062_v54  ;;  %6093 = vmatprep.subr.bf16.mxu0 %v9550_v12  ;;  %v5066_v42 = vsel %vm1148_vm10, %v5065_v11, %v4981_v21  ;;  %v8866_v58 = vld [vmem:[#allocation3 + $0x17e] sm:$0x1]  ;;  %v5067_v15 = vrot.slane %v4983_v50, 6  ;;  %v5266_v46 = vld [vmem:[#allocation3 + $0x18f] sm:$0x1]  ;;  %v5081_v26 = vrot.slane %v4991_v34, 6 }
 0x22f   : > { %v5341_v18 = vsel %vm1166_vm2, %v9729_v39, %v5339_v63  ;;  %6099 = vmatprep.subr.bf16.mxu1 %v9550_v12  ;;  %v6094_v59 = vpack.c.bf16 %v5064_v19, %v5050_v57  ;;  %5968 = vmatmul.mubr.msk.f32.vlgmr.msra.gmra.mrb[12].mxu0 %vm1220_vm4, %v8612_v44  ;;  %776 = vst [vmem:[#allocation3 + $0x17f] sm:$0x1] %v751_v62  ;;  %v5259_v37 = vld [vmem:[#allocation3 + $0x11f] sm:$0x1]  ;;  %v5260_v27 = vld [vmem:[#allocation3 + $0x12f] sm:$0x1] }
 0x230   : > { %v6100_v35 = vpack.c.bf16 %v5341_v18, %v5327_v9  ;;  %5981 = vmatmul.mubr.msk.f32.vlgmr.msra.gmra.mrb[12].mxu1 %vm1220_vm4, %v8612_v44  ;;  %v8868_v53 = vld [vmem:[#allocation3 + $0x1bf] sm:$0x1]  ;;  %v5356_v1 = vrot.slane %v5267_v14, 7  ;;  %v4993_v41 = vld [vmem:[#allocation3 + $0x1ce] sm:$0x1]  ;;  %v5068_v29 = vsel %vm1151_vm11, %v5067_v15, %v5066_v42  ;;  %v5080_v49 = vsel %vm1148_vm10, %v5079_v32, %v4989_v30  ;;  %5993 = vmatprep.mubr.msk.f32.mxu0 %vm6233_vm9, %v9602_v6  ;;  %v1006_v55 = vpop.permute.xlu1 %1005 }
 0x231   : > { %6095 = vmatpush3.bf16.msra.mxu0 %v6094_v59  ;;  %v5258_v52 = vld [vmem:[#allocation3 + $0x10f] sm:$0x1]  ;;  %v5261_v24 = vld [vmem:[#allocation3 + $0x13f] sm:$0x1]  ;;  %v5070_v2 = vsel %vm1154_vm13, %v5069_v61, %v5068_v29  ;;  %v5071_v51 = vrot.slane %v4985_v31, 4  ;;  %v5073_v47 = vrot.slane %v8854_v17, 3  ;;  %6006 = vmatprep.mubr.msk.f32.mxu1 %vm6233_vm9, %v9602_v6  ;;  %v5082_v3 = vsel %vm1151_vm11, %v5081_v26, %v5080_v49  ;;  %v1016_v42 = vpop.permute.xlu0 %1015 }
 0x232   : > { %6101 = vmatpush3.bf16.msra.mxu1 %v6100_v35  ;;  %6096 = vmatprep.subr.bf16.mxu0 %v9550_v12  ;;  %v5075_v28 = vrot.slane %v8864_v43, 2  ;;  %v5262_v45 = vld [vmem:[#allocation3 + $0x14f] sm:$0x1]  ;;  %v5077_v36 = vrot.slane %v8866_v58, 1  ;;  %v5083_v22 = vrot.slane %v8856_v40, 5  ;;  %v5358_v54 = vrot.slane %v5268_v4, 6 }
 0x233   : > { %6102 = vmatprep.subr.bf16.mxu1 %v9550_v12  ;;  %v909_v12 = vsel %vm370_vm14, %v895_v56, %v897_v20  ;;  %v5270_v25 = vld [vmem:[#allocation3 + $0x1cf] sm:$0x1]  ;;  %v4994_v5 = vld [vmem:[#allocation3 + $0x1de] sm:$0x1]  ;;  %v5085_v13 = vrot.slane %v4993_v41, 4  ;;  %v5342_v60 = vrot.slane %v5259_v37, 7  ;;  %v5357_v8 = vsel %vm1148_vm10, %v5356_v1, %v5266_v46 }
 0x234   : > { %934 = vst [vmem:[#allocation3 + $0x1fe] sm:$0x3] %v909_v12  ;;  %v5263_v63 = vld [vmem:[#allocation3 + $0x15f] sm:$0x1]  ;;  %v5344_v9 = vrot.slane %v5260_v27, 6  ;;  %v5346_v21 = vrot.slane %v5261_v24, 5  ;;  %v5072_v50 = vsel %vm1157_vm15, %v5071_v51, %v5070_v2  ;;  %v1036_v7 = vsel %vm460_vm12, %v1004_v10, %v1006_v55  ;;  %v1018_v59 = vpop.permute.xlu1 %1017 }
 0x235   : > { %v5271_v57 = vld [vmem:[#allocation3 + $0x1df] sm:$0x1]  ;;  %v5348_v0 = vrot.slane %v5262_v45, 4  ;;  %v5360_v38 = vrot.slane %v8868_v53, 5  ;;  %v4995_v33 = vld [vmem:[#allocation3 + $0x1ee] sm:$0x1]  ;;  %v5343_v16 = vsel %vm1148_vm10, %v5342_v60, %v5258_v52  ;;  %v5359_v39 = vsel %vm1151_vm11, %v5358_v54, %v5357_v8  ;;  %v992_v2 = vpop.permute.xlu0 %991 }
 0x236   : > { %v5264_v30 = vld [vmem:[#allocation3 + $0x16f] sm:$0x1]  ;;  %v5087_v48 = vrot.slane %v4994_v5, 3  ;;  %v5265_v19 = vld [vmem:[#allocation3 + $0x17f] sm:$0x1]  ;;  %v5362_v18 = vrot.slane %v5270_v25, 4  ;;  %v5074_v34 = vsel %vm1160_vm0, %v5073_v47, %v5072_v50  ;;  %v5084_v32 = vsel %vm1154_vm13, %v5083_v22, %v5082_v3 }
 0x237   : > { %v5272_v11 = vld [vmem:[#allocation3 + $0x1ef] sm:$0x1]  ;;  %1061 = vst [vmem:[#allocation3 + $0x21e] sm:$0x3] %v1036_v7  ;;  %v5350_v14 = vrot.slane %v5263_v63, 3  ;;  %v5364_v23 = vrot.slane %v5271_v57, 3  ;;  %v5345_v31 = vsel %vm1151_vm11, %v5344_v9, %v5343_v16  ;;  %v5086_v61 = vsel %vm1157_vm15, %v5085_v13, %v5084_v32 }
 0x238   : > { %v5089_v35 = vrot.slane %v4995_v33, 2  ;;  %v5352_v17 = vrot.slane %v5264_v30, 2  ;;  %v5366_v40 = vrot.slane %v5272_v11, 2  ;;  %v5347_v4 = vsel %vm1154_vm13, %v5346_v21, %v5345_v31  ;;  %v994_v29 = vpop.permute.xlu1 %993 }
 0x239   : > { %v5354_v62 = vrot.slane %v5265_v19, 1  ;;  %v5361_v43 = vsel %vm1154_vm13, %v5360_v38, %v5359_v39  ;;  %v1039_v58 = vsel %vm460_vm12, %v1016_v42, %v1018_v59  ;;  %v5088_v46 = vsel %vm1160_vm0, %v5087_v48, %v5086_v61  ;;  %v1028_v5 = vpop.permute.xlu0 %1027 }
 0x23a   : > { %v5349_v37 = vsel %vm1157_vm15, %v5348_v0, %v5347_v4  ;;  %v5363_v27 = vsel %vm1157_vm15, %v5362_v18, %v5361_v43  ;;  %1064 = vst [vmem:[#allocation3 + $0x22e] sm:$0x3] %v1039_v58  ;;  %v5076_v49 = vsel %vm1163_vm1, %v5075_v28, %v5074_v34  ;;  %v5090_v52 = vsel %vm1163_vm1, %v5089_v35, %v5088_v46 }
 0x23b   : > { %v4996_v15 = vld [vmem:[#allocation3 + $0x1fe] sm:$0x1]  ;;  %v5273_v26 = vld [vmem:[#allocation3 + $0x1ff] sm:$0x1]  ;;  %v5351_v1 = vsel %vm1160_vm0, %v5350_v14, %v5349_v37  ;;  %v5365_v20 = vsel %vm1160_vm0, %v5364_v23, %v5363_v27  ;;  %v5078_v51 = vsel %vm1166_vm2, %v5077_v36, %v5076_v49  ;;  %v1033_v22 = vsel %vm460_vm12, %v992_v2, %v994_v29 }
 0x23c   : > { %v5091_v53 = vrot.slane %v4996_v15, 1  ;;  %v5368_v41 = vrot.slane %v5273_v26, 1  ;;  %v5353_v24 = vsel %vm1163_vm1, %v5352_v17, %v5351_v1  ;;  %v5367_v56 = vsel %vm1163_vm1, %v5366_v40, %v5365_v20  ;;  %1058 = vst [vmem:[#allocation3 + $0x20e] sm:$0x3] %v1033_v22  ;;  %v1030_v28 = vpop.permute.xlu1 %1029 }
 0x23d   : > { %v5355_v45 = vsel %vm1166_vm2, %v5354_v62, %v5353_v24  ;;  %v1042_v36 = vsel %vm460_vm12, %v1028_v5, %v1030_v28  ;;  %v6235_v42 = vmov 1966171168   ;;  %v1303_v4 = vlaneseq }
 0x23e   : > { %v5092_v47 = vsel %vm1166_vm2, %v5091_v53, %v5090_v52  ;;  %v5369_v12 = vsel %vm1166_vm2, %v5368_v41, %v5367_v56  ;;  %1067 = vst [vmem:[#allocation3 + $0x23e] sm:$0x3] %v1042_v36  ;;  %v4998_v3 = vld [vmem:[#allocation3 + $0x21e] sm:$0x1]  ;;  %v5275_v13 = vld [vmem:[#allocation3 + $0x21f] sm:$0x1]  ;;  %v1301_v61 = vunpack.c.l.s4 %v6235_v42 }
 0x23f   : > { %v6097_v25 = vpack.c.bf16 %v5092_v47, %v5078_v51  ;;  %v6103_v54 = vpack.c.bf16 %v5369_v12, %v5355_v45  ;;  %v5093_v55 = vrot.slane %v4998_v3, 7  ;;  %v5370_v9 = vrot.slane %v5275_v13, 7 }
 0x240   : > { %v1302_v62 = vunpack.c.0.s8 %v1301_v61  ;;  %v1304_v43 = vshrl.u32 %v1303_v4, 7 }
 0x241   : > { %6098 = vmatpush3.bf16.msra.mxu0 %v6097_v25  ;;  %6104 = vmatpush3.bf16.msra.mxu1 %v6103_v54  ;;  %v4999_v8 = vld [vmem:[#allocation3 + $0x22e] sm:$0x1]  ;;  %v5276_v57 = vld [vmem:[#allocation3 + $0x22f] sm:$0x1] }
 0x242   : > { %5991 = vmatprep.subr.mxu0 %v9602_v6  ;;  %6004 = vmatprep.subr.mxu1 %v9602_v6  ;;  %v5095_v10 = vrot.slane %v4999_v8, 6  ;;  %v5372_v50 = vrot.slane %v5276_v57, 6 }
 0x243   : > { %v4997_v63 = vld [vmem:[#allocation3 + $0x20e] sm:$0x1]  ;;  %v5274_v60 = vld [vmem:[#allocation3 + $0x20f] sm:$0x1] }
 0x244   : > { %v5094_v21 = vsel %vm1148_vm10, %v5093_v55, %v4997_v63  ;;  %v5371_v0 = vsel %vm1148_vm10, %v5370_v9, %v5274_v60 }
 0x245   : > { %v5000_v38 = vld [vmem:[#allocation3 + $0x23e] sm:$0x1]  ;;  %v5277_v33 = vld [vmem:[#allocation3 + $0x23f] sm:$0x1]  ;;  %v5096_v11 = vsel %vm1151_vm11, %v5095_v10, %v5094_v21  ;;  %v5373_v16 = vsel %vm1151_vm11, %v5372_v50, %v5371_v0 }
 0x246   : > { %v5097_v6 = vrot.slane %v5000_v38, 5  ;;  %v5374_v30 = vrot.slane %v5277_v33, 5 }
 0x248   : > { %v5098_v7 = vsel %vm1154_vm13, %v5097_v6, %v5096_v11  ;;  %v5375_v48 = vsel %vm1154_vm13, %v5374_v30, %v5373_v16 }
 0x249   : > { %5992 = vmatpush3.msk.msra.mxu0 %vm1224_vm3, %v5098_v7  ;;  %6005 = vmatpush3.msk.msra.mxu1 %vm1224_vm3, %v5375_v48 }
 0x24a   : > { %5994 = vmatmul.mubr.msk.f32.vlgmr.msra.gmra.mrb[14].mxu0 %vm1220_vm4, %v8612_v44  ;;  %6007 = vmatmul.mubr.msk.f32.vlgmr.msra.gmra.mrb[14].mxu1 %vm1220_vm4, %v8612_v44  ;;  %v8928_v44 = vsub.s32 %v1302_v62, %v1304_v43 }
 0x26e   : > { %v1293_v19 = vpop.f32.mrb[0].mxu0 }
 0x26f   : > { %v1570_v39 = vpop.f32.mrb[0].mxu1  ;;  %v5813_v18 = vpop.f32.mrb[1].mxu0 }
 0x270   : > { %v5826_v34 = vpop.f32.mrb[1].mxu1 }
 0x27b   : > { %v1847_v32 = vpop.f32.mrb[2].mxu0 }
 0x27c   : > { %v2124_v14 = vpop.f32.mrb[2].mxu1  ;;  %v5839_v23 = vpop.f32.mrb[3].mxu0 }
 0x27d   : > { %v5852_v59 = vpop.f32.mrb[3].mxu1 }
 0x287   : > { %v2401_v35 = vpop.f32.mrb[4].mxu0 }
 0x288   : > { %v2678_v31 = vpop.f32.mrb[4].mxu1  ;;  %v5865_v17 = vpop.f32.mrb[5].mxu0 }
 0x289   : > { %v5878_v40 = vpop.f32.mrb[5].mxu1 }
 0x2ac   : > { %v8930_v58 = vpop.permute.xlu0 %1108 }
 0x2ad   : > { %v1294_v15 = vadd.f32 %v1293_v19, %v8930_v58  ;;  %v1571_v46 = vadd.f32 %v1570_v39, %v8930_v58  ;;  %v1848_v26 = vadd.f32 %v1847_v32, %v8930_v58  ;;  %v2125_v37 = vadd.f32 %v2124_v14, %v8930_v58 }
 0x2ae   : > { %v2402_v27 = vadd.f32 %v2401_v35, %v8930_v58  ;;  %v2679_v53 = vadd.f32 %v2678_v31, %v8930_v58 }
 0x2af   : > { %v1297_v1 = vmax.f32 %v1294_v15, 0.0  ;;  %v1574_v20 = vmax.f32 %v1571_v46, 0.0  ;;  %v1851_v41 = vmax.f32 %v1848_v26, 0.0  ;;  %v2128_v29 = vmax.f32 %v2125_v37, 0.0 }
 0x2b0   : > { %v8940_v49 = vmax.f32 %v2402_v27, 0.0  ;;  %v8942_v52 = vmax.f32 %v2679_v53, 0.0 }
 0x2b1   : > { %v1299_v24 = vcombine.high %v1297_v1, %v1297_v1  ;;  %v1306_v56 = vrot.slane %v1297_v1, %v8928_v44  ;;  %v1576_v2 = vcombine.high %v1574_v20, %v1574_v20  ;;  %v1583_v51 = vrot.slane %v1574_v20, %v8928_v44 }
 0x2b2   : > { %v1853_v47 = vcombine.high %v1851_v41, %v1851_v41  ;;  %v1860_v45 = vrot.slane %v1851_v41, %v8928_v44  ;;  %v2130_v12 = vcombine.high %v2128_v29, %v2128_v29  ;;  %v2137_v22 = vrot.slane %v2128_v29, %v8928_v44 }
 0x2b3   : > { %v1313_v25 = vrot.slane %v1299_v24, %v8928_v44  ;;  %v1314_v54 = vcombine.high %v1306_v56, %v1306_v56  ;;  %v1322_v28 = vrot.slane %v1306_v56, %v8928_v44  ;;  %5604 = vst.sshfl [vmem:[%s8950_s19] sm:$0x1 pattern:$0x73625140] %v1306_v56  ;;  %v1590_v5 = vrot.slane %v1576_v2, %v8928_v44 }
 0x2b4   : > { %5610 = vst.sshfl [vmem:[%s8950_s19 + $0x1] sm:$0x1 pattern:$0x73625140] %v1583_v51  ;;  %v1591_v36 = vcombine.high %v1583_v51, %v1583_v51  ;;  %v1599_v3 = vrot.slane %v1583_v51, %v8928_v44  ;;  %v1867_v13 = vrot.slane %v1853_v47, %v8928_v44  ;;  %v1868_v63 = vcombine.high %v1860_v45, %v1860_v45 }
 0x2b5   : > { %5616 = vst.sshfl [vmem:[%s8950_s19 + $0x2] sm:$0x1 pattern:$0x73625140] %v1860_v45  ;;  %v1315_v60 = vcombine.high %v1313_v25, %v1313_v25  ;;  %v1329_v8 = vrot.slane %v1313_v25, %v8928_v44  ;;  %v1336_v55 = vrot.slane %v1314_v54, %v8928_v44  ;;  %v1344_v57 = vcombine.high %v1322_v28, %v1322_v28 }
 0x2b6   : > { %5622 = vst.sshfl [vmem:[%s8950_s19 + $0x3] sm:$0x1 pattern:$0x73625140] %v2137_v22  ;;  %v1592_v9 = vcombine.high %v1590_v5, %v1590_v5  ;;  %v1606_v21 = vrot.slane %v1590_v5, %v8928_v44  ;;  %v1613_v0 = vrot.slane %v1591_v36, %v8928_v44  ;;  %v1621_v38 = vcombine.high %v1599_v3, %v1599_v3 }
 0x2b7   : > { %5605 = vst.sshfl [vmem:[%s8950_s19 + $0x10] sm:$0x1 pattern:$0x73625140] %v1314_v54  ;;  %v1343_v10 = vrot.slane %v1315_v60, %v8928_v44  ;;  %v1345_v33 = vcombine.high %v1329_v8, %v1329_v8  ;;  %v1346_v50 = vcombine.high %v1336_v55, %v1336_v55  ;;  %1358 = vst [vmem:[%s8950_s19 + $0x20] sm:$0x1] %v1344_v57 }
 0x2b8   : > { %5606 = vst.sshfl [vmem:[%s8950_s19 + $0x40] sm:$0x1 pattern:$0x73625140] %v1313_v25  ;;  %v1869_v6 = vcombine.high %v1867_v13, %v1867_v13  ;;  %v1620_v30 = vrot.slane %v1592_v9, %v8928_v44  ;;  %v1622_v11 = vcombine.high %v1606_v21, %v1606_v21  ;;  %v1623_v16 = vcombine.high %v1613_v0, %v1613_v0 }
 0x2b9   : > { %5612 = vst.sshfl [vmem:[%s8950_s19 + $0x41] sm:$0x1 pattern:$0x73625140] %v1590_v5  ;;  %1635 = vst [vmem:[%s8950_s19 + $0x21] sm:$0x1] %v1621_v38  ;;  %v1876_v7 = vrot.slane %v1860_v45, %v8928_v44  ;;  %v1347_v48 = vcombine.high %v1343_v10, %v1343_v10  ;;  %v1883_v19 = vrot.slane %v1867_v13, %v8928_v44 }
 0x2ba   : > { %5611 = vst.sshfl [vmem:[%s8950_s19 + $0x11] sm:$0x1 pattern:$0x73625140] %v1591_v36  ;;  %1359 = vst [vmem:[%s8950_s19 + $0x30] sm:$0x1] %v1346_v50  ;;  %v1890_v39 = vrot.slane %v1868_v63, %v8928_v44  ;;  %v1897_v18 = vrot.slane %v1869_v6, %v8928_v44  ;;  %v1624_v34 = vcombine.high %v1620_v30, %v1620_v30 }
 0x2bb   : > { %5617 = vst.sshfl [vmem:[%s8950_s19 + $0x12] sm:$0x1 pattern:$0x73625140] %v1868_v63  ;;  %1362 = vst [vmem:[%s8950_s19 + $0x60] sm:$0x1] %v1345_v33  ;;  %v1898_v32 = vcombine.high %v1876_v7, %v1876_v7  ;;  %v2144_v14 = vrot.slane %v2130_v12, %v8928_v44  ;;  %v2145_v23 = vcombine.high %v2137_v22, %v2137_v22 }
 0x2bc   : > { %5618 = vst.sshfl [vmem:[%s8950_s19 + $0x42] sm:$0x1 pattern:$0x73625140] %v1867_v13  ;;  %1636 = vst [vmem:[%s8950_s19 + $0x31] sm:$0x1] %v1623_v16  ;;  %v1899_v59 = vcombine.high %v1883_v19, %v1883_v19  ;;  %v1900_v35 = vcombine.high %v1890_v39, %v1890_v39  ;;  %v1901_v31 = vcombine.high %v1897_v18, %v1897_v18 }
 0x2bd   : > { %5607 = vst.sshfl [vmem:[%s8950_s19 + $0x50] sm:$0x1 pattern:$0x73625140] %v1315_v60  ;;  %1639 = vst [vmem:[%s8950_s19 + $0x61] sm:$0x1] %v1622_v11  ;;  %v2153_v17 = vrot.slane %v2137_v22, %v8928_v44  ;;  %v2146_v40 = vcombine.high %v2144_v14, %v2144_v14  ;;  %v2160_v42 = vrot.slane %v2144_v14, %v8928_v44 }
 0x2be   : > { %5613 = vst.sshfl [vmem:[%s8950_s19 + $0x51] sm:$0x1 pattern:$0x73625140] %v1592_v9  ;;  %1363 = vst [vmem:[%s8950_s19 + $0x70] sm:$0x1] %v1347_v48  ;;  %v2167_v61 = vrot.slane %v2145_v23, %v8928_v44  ;;  %v2407_v4 = vcombine.high %v8940_v49, %v8940_v49  ;;  %v2414_v43 = vrot.slane %v8940_v49, %v8928_v44 }
 0x2bf   : > { %5619 = vst.sshfl [vmem:[%s8950_s19 + $0x52] sm:$0x1 pattern:$0x73625140] %v1869_v6  ;;  %1640 = vst [vmem:[%s8950_s19 + $0x71] sm:$0x1] %v1624_v34  ;;  %v2175_v62 = vcombine.high %v2153_v17, %v2153_v17  ;;  %v2684_v15 = vcombine.high %v8942_v52, %v8942_v52  ;;  %v2691_v46 = vrot.slane %v8942_v52, %v8928_v44 }
 0x2c0   : > { %1912 = vst [vmem:[%s8950_s19 + $0x22] sm:$0x1] %v1898_v32  ;;  %5623 = vst.sshfl [vmem:[%s8950_s19 + $0x13] sm:$0x1 pattern:$0x73625140] %v2145_v23  ;;  %v2174_v26 = vrot.slane %v2146_v40, %v8928_v44  ;;  %v2176_v37 = vcombine.high %v2160_v42, %v2160_v42  ;;  %v2177_v27 = vcombine.high %v2167_v61, %v2167_v61 }
 0x2c1   : > { %5624 = vst.sshfl [vmem:[%s8950_s19 + $0x43] sm:$0x1 pattern:$0x73625140] %v2144_v14  ;;  %1913 = vst [vmem:[%s8950_s19 + $0x32] sm:$0x1] %v1900_v35  ;;  %v2421_v53 = vrot.slane %v2407_v4, %v8928_v44  ;;  %v2422_v1 = vcombine.high %v2414_v43, %v2414_v43  ;;  %v2430_v20 = vrot.slane %v2414_v43, %v8928_v44 }
 0x2c2   : > { %1916 = vst [vmem:[%s8950_s19 + $0x62] sm:$0x1] %v1899_v59  ;;  %1917 = vst [vmem:[%s8950_s19 + $0x72] sm:$0x1] %v1901_v31  ;;  %v2698_v41 = vrot.slane %v2684_v15, %v8928_v44  ;;  %v2699_v29 = vcombine.high %v2691_v46, %v2691_v46  ;;  %v2178_v49 = vcombine.high %v2174_v26, %v2174_v26 }
 0x2c3   : > { %5625 = vst.sshfl [vmem:[%s8950_s19 + $0x53] sm:$0x1 pattern:$0x73625140] %v2146_v40  ;;  %2189 = vst [vmem:[%s8950_s19 + $0x23] sm:$0x1] %v2175_v62  ;;  %v2423_v52 = vcombine.high %v2421_v53, %v2421_v53  ;;  %v2437_v24 = vrot.slane %v2421_v53, %v8928_v44  ;;  %v2707_v56 = vrot.slane %v2691_v46, %v8928_v44 }
 0x2c4   : > { %5628 = vst.sshfl [vmem:[%s8950_s19 + $0x4] sm:$0x1 pattern:$0x73625140] %v2414_v43  ;;  %2190 = vst [vmem:[%s8950_s19 + $0x33] sm:$0x1] %v2177_v27  ;;  %v2444_v2 = vrot.slane %v2422_v1, %v8928_v44  ;;  %v2452_v51 = vcombine.high %v2430_v20, %v2430_v20  ;;  %v2700_v47 = vcombine.high %v2698_v41, %v2698_v41 }
 0x2c5   : > { %5634 = vst.sshfl [vmem:[%s8950_s19 + $0x5] sm:$0x1 pattern:$0x73625140] %v2691_v46  ;;  %2193 = vst [vmem:[%s8950_s19 + $0x63] sm:$0x1] %v2176_v37  ;;  %v2714_v45 = vrot.slane %v2698_v41, %v8928_v44  ;;  %v2451_v12 = vrot.slane %v2423_v52, %v8928_v44  ;;  %v2453_v22 = vcombine.high %v2437_v24, %v2437_v24 }
 0x2c6   : > { %5630 = vst.sshfl [vmem:[%s8950_s19 + $0x44] sm:$0x1 pattern:$0x73625140] %v2421_v53  ;;  %2194 = vst [vmem:[%s8950_s19 + $0x73] sm:$0x1] %v2178_v49  ;;  %v2721_v25 = vrot.slane %v2699_v29, %v8928_v44  ;;  %v2729_v54 = vcombine.high %v2707_v56, %v2707_v56  ;;  %v2454_v28 = vcombine.high %v2444_v2, %v2444_v2 }
 0x2c7   : > { %5629 = vst.sshfl [vmem:[%s8950_s19 + $0x14] sm:$0x1 pattern:$0x73625140] %v2422_v1  ;;  %2466 = vst [vmem:[%s8950_s19 + $0x24] sm:$0x1] %v2452_v51  ;;  %v2728_v5 = vrot.slane %v2700_v47, %v8928_v44  ;;  %v2730_v36 = vcombine.high %v2714_v45, %v2714_v45  ;;  %v2455_v3 = vcombine.high %v2451_v12, %v2451_v12 }
 0x2c8   : > { %5635 = vst.sshfl [vmem:[%s8950_s19 + $0x15] sm:$0x1 pattern:$0x73625140] %v2699_v29  ;;  %2470 = vst [vmem:[%s8950_s19 + $0x64] sm:$0x1] %v2453_v22  ;;  %v2731_v13 = vcombine.high %v2721_v25, %v2721_v25 }
 0x2c9   : > { %5636 = vst.sshfl [vmem:[%s8950_s19 + $0x45] sm:$0x1 pattern:$0x73625140] %v2698_v41  ;;  %2743 = vst [vmem:[%s8950_s19 + $0x25] sm:$0x1] %v2729_v54  ;;  %v2732_v63 = vcombine.high %v2728_v5, %v2728_v5 }
 0x2ca   : > { %5631 = vst.sshfl [vmem:[%s8950_s19 + $0x54] sm:$0x1 pattern:$0x73625140] %v2423_v52  ;;  %2467 = vst [vmem:[%s8950_s19 + $0x34] sm:$0x1] %v2454_v28 }
 0x2cb   : > { %5637 = vst.sshfl [vmem:[%s8950_s19 + $0x55] sm:$0x1 pattern:$0x73625140] %v2700_v47  ;;  %2747 = vst [vmem:[%s8950_s19 + $0x65] sm:$0x1] %v2730_v36 }
 0x2cc   : > { %2471 = vst [vmem:[%s8950_s19 + $0x74] sm:$0x1] %v2455_v3  ;;  %2744 = vst [vmem:[%s8950_s19 + $0x35] sm:$0x1] %v2731_v13 }
 0x2cd   : > { %2748 = vst [vmem:[%s8950_s19 + $0x75] sm:$0x1] %v2732_v63 }
 0x2de   : > { %v2955_v60 = vpop.f32.mrb[6].mxu0  ;;  %v3232_v8 = vpop.f32.mrb[6].mxu1 }
 0x2df   : > { %v2956_v55 = vadd.f32 %v2955_v60, %v8930_v58  ;;  %v3233_v57 = vadd.f32 %v3232_v8, %v8930_v58  ;;  %v5891_v9 = vpop.f32.mrb[7].mxu0  ;;  %v5904_v21 = vpop.f32.mrb[7].mxu1 }
 0x2e1   : > { %v2959_v0 = vmax.f32 %v2956_v55, 0.0  ;;  %v3236_v38 = vmax.f32 %v3233_v57, 0.0 }
 0x2e3   : > { %v2961_v10 = vcombine.high %v2959_v0, %v2959_v0  ;;  %v2968_v33 = vrot.slane %v2959_v0, %v8928_v44  ;;  %v3238_v50 = vcombine.high %v3236_v38, %v3236_v38  ;;  %v3245_v6 = vrot.slane %v3236_v38, %v8928_v44 }
 0x2e5   : > { %v2975_v30 = vrot.slane %v2961_v10, %v8928_v44  ;;  %v2976_v11 = vcombine.high %v2968_v33, %v2968_v33  ;;  %v2984_v16 = vrot.slane %v2968_v33, %v8928_v44  ;;  %5640 = vst.sshfl [vmem:[%s8950_s19 + $0x6] sm:$0x1 pattern:$0x73625140] %v2968_v33  ;;  %v3252_v7 = vrot.slane %v3238_v50, %v8928_v44 }
 0x2e6   : > { %5646 = vst.sshfl [vmem:[%s8950_s19 + $0x7] sm:$0x1 pattern:$0x73625140] %v3245_v6  ;;  %v3253_v48 = vcombine.high %v3245_v6, %v3245_v6  ;;  %v3261_v19 = vrot.slane %v3245_v6, %v8928_v44 }
 0x2e7   : > { %v2977_v39 = vcombine.high %v2975_v30, %v2975_v30  ;;  %v2991_v18 = vrot.slane %v2975_v30, %v8928_v44  ;;  %v2998_v34 = vrot.slane %v2976_v11, %v8928_v44  ;;  %v3006_v32 = vcombine.high %v2984_v16, %v2984_v16  ;;  %5641 = vst.sshfl [vmem:[%s8950_s19 + $0x16] sm:$0x1 pattern:$0x73625140] %v2976_v11 }
 0x2e8   : > { %5642 = vst.sshfl [vmem:[%s8950_s19 + $0x46] sm:$0x1 pattern:$0x73625140] %v2975_v30  ;;  %v3254_v14 = vcombine.high %v3252_v7, %v3252_v7  ;;  %v3268_v23 = vrot.slane %v3252_v7, %v8928_v44  ;;  %v3275_v59 = vrot.slane %v3253_v48, %v8928_v44  ;;  %v3283_v35 = vcombine.high %v3261_v19, %v3261_v19 }
 0x2e9   : > { %5648 = vst.sshfl [vmem:[%s8950_s19 + $0x47] sm:$0x1 pattern:$0x73625140] %v3252_v7  ;;  %v3005_v31 = vrot.slane %v2977_v39, %v8928_v44  ;;  %v3007_v17 = vcombine.high %v2991_v18, %v2991_v18  ;;  %v3008_v40 = vcombine.high %v2998_v34, %v2998_v34  ;;  %3020 = vst [vmem:[%s8950_s19 + $0x26] sm:$0x1] %v3006_v32 }
 0x2ea   : > { %5647 = vst.sshfl [vmem:[%s8950_s19 + $0x17] sm:$0x1 pattern:$0x73625140] %v3253_v48  ;;  %v3509_v42 = vpop.f32.mrb[8].mxu0  ;;  %v3786_v61 = vpop.f32.mrb[8].mxu1  ;;  %v3282_v4 = vrot.slane %v3254_v14, %v8928_v44  ;;  %v3284_v62 = vcombine.high %v3268_v23, %v3268_v23  ;;  %v3285_v43 = vcombine.high %v3275_v59, %v3275_v59 }
 0x2eb   : > { %5643 = vst.sshfl [vmem:[%s8950_s19 + $0x56] sm:$0x1 pattern:$0x73625140] %v2977_v39  ;;  %3297 = vst [vmem:[%s8950_s19 + $0x27] sm:$0x1] %v3283_v35  ;;  %v3510_v15 = vadd.f32 %v3509_v42, %v8930_v58  ;;  %v3009_v37 = vcombine.high %v3005_v31, %v3005_v31  ;;  %v3787_v27 = vadd.f32 %v3786_v61, %v8930_v58 }
 0x2ec   : > { %5649 = vst.sshfl [vmem:[%s8950_s19 + $0x57] sm:$0x1 pattern:$0x73625140] %v3254_v14  ;;  %v5917_v46 = vpop.f32.mrb[9].mxu0  ;;  %v5930_v26 = vpop.f32.mrb[9].mxu1  ;;  %v3286_v53 = vcombine.high %v3282_v4, %v3282_v4 }
 0x2ed   : > { %3021 = vst [vmem:[%s8950_s19 + $0x36] sm:$0x1] %v3008_v40  ;;  %3024 = vst [vmem:[%s8950_s19 + $0x66] sm:$0x1] %v3007_v17  ;;  %v3513_v1 = vmax.f32 %v3510_v15, 0.0  ;;  %v3790_v20 = vmax.f32 %v3787_v27, 0.0 }
 0x2ee   : > { %3298 = vst [vmem:[%s8950_s19 + $0x37] sm:$0x1] %v3285_v43  ;;  %3301 = vst [vmem:[%s8950_s19 + $0x67] sm:$0x1] %v3284_v62 }
 0x2ef   : > { %3025 = vst [vmem:[%s8950_s19 + $0x76] sm:$0x1] %v3009_v37  ;;  %3302 = vst [vmem:[%s8950_s19 + $0x77] sm:$0x1] %v3286_v53  ;;  %v3515_v41 = vcombine.high %v3513_v1, %v3513_v1  ;;  %v3522_v29 = vrot.slane %v3513_v1, %v8928_v44  ;;  %v3792_v49 = vcombine.high %v3790_v20, %v3790_v20 }
 0x2f0   : > { %v3799_v52 = vrot.slane %v3790_v20, %v8928_v44 }
 0x2f1   : > { %v3529_v24 = vrot.slane %v3515_v41, %v8928_v44  ;;  %v3530_v56 = vcombine.high %v3522_v29, %v3522_v29  ;;  %v3538_v2 = vrot.slane %v3522_v29, %v8928_v44  ;;  %5652 = vst.sshfl [vmem:[%s8950_s19 + $0x8] sm:$0x1 pattern:$0x73625140] %v3522_v29  ;;  %v3806_v51 = vrot.slane %v3792_v49, %v8928_v44 }
 0x2f2   : > { %v3807_v47 = vcombine.high %v3799_v52, %v3799_v52  ;;  %v3815_v45 = vrot.slane %v3799_v52, %v8928_v44  ;;  %5658 = vst.sshfl [vmem:[%s8950_s19 + $0x9] sm:$0x1 pattern:$0x73625140] %v3799_v52 }
 0x2f3   : > { %v3531_v12 = vcombine.high %v3529_v24, %v3529_v24  ;;  %v3545_v22 = vrot.slane %v3529_v24, %v8928_v44  ;;  %v3552_v25 = vrot.slane %v3530_v56, %v8928_v44  ;;  %v3560_v54 = vcombine.high %v3538_v2, %v3538_v2  ;;  %5653 = vst.sshfl [vmem:[%s8950_s19 + $0x18] sm:$0x1 pattern:$0x73625140] %v3530_v56 }
 0x2f4   : > { %5654 = vst.sshfl [vmem:[%s8950_s19 + $0x48] sm:$0x1 pattern:$0x73625140] %v3529_v24  ;;  %v3808_v28 = vcombine.high %v3806_v51, %v3806_v51  ;;  %v3822_v5 = vrot.slane %v3806_v51, %v8928_v44  ;;  %v3829_v36 = vrot.slane %v3807_v47, %v8928_v44  ;;  %v3837_v3 = vcombine.high %v3815_v45, %v3815_v45  ;;  %v4063_v8 = vpop.f32.mrb[10].mxu0 }
 0x2f5   : > { %5659 = vst.sshfl [vmem:[%s8950_s19 + $0x19] sm:$0x1 pattern:$0x73625140] %v3807_v47  ;;  %v3559_v13 = vrot.slane %v3531_v12, %v8928_v44  ;;  %v3561_v63 = vcombine.high %v3545_v22, %v3545_v22  ;;  %v3562_v60 = vcombine.high %v3552_v25, %v3552_v25  ;;  %3574 = vst [vmem:[%s8950_s19 + $0x28] sm:$0x1] %v3560_v54 }
 0x2f6   : > { %5660 = vst.sshfl [vmem:[%s8950_s19 + $0x49] sm:$0x1 pattern:$0x73625140] %v3806_v51  ;;  %v4340_v55 = vpop.f32.mrb[10].mxu1  ;;  %v3836_v57 = vrot.slane %v3808_v28, %v8928_v44  ;;  %v3838_v9 = vcombine.high %v3822_v5, %v3822_v5  ;;  %v3839_v21 = vcombine.high %v3829_v36, %v3829_v36  ;;  %v4064_v0 = vadd.f32 %v4063_v8, %v8930_v58  ;;  %v5943_v38 = vpop.f32.mrb[11].mxu0 }
 0x2f7   : > { %5655 = vst.sshfl [vmem:[%s8950_s19 + $0x58] sm:$0x1 pattern:$0x73625140] %v3531_v12  ;;  %3851 = vst [vmem:[%s8950_s19 + $0x29] sm:$0x1] %v3837_v3  ;;  %v3563_v33 = vcombine.high %v3559_v13, %v3559_v13  ;;  %v4341_v50 = vadd.f32 %v4340_v55, %v8930_v58 }
 0x2f8   : > { %5661 = vst.sshfl [vmem:[%s8950_s19 + $0x59] sm:$0x1 pattern:$0x73625140] %v3808_v28  ;;  %v5956_v10 = vpop.f32.mrb[11].mxu1  ;;  %v3840_v6 = vcombine.high %v3836_v57, %v3836_v57  ;;  %v4067_v30 = vmax.f32 %v4064_v0, 0.0 }
 0x2f9   : > { %3575 = vst [vmem:[%s8950_s19 + $0x38] sm:$0x1] %v3562_v60  ;;  %3578 = vst [vmem:[%s8950_s19 + $0x68] sm:$0x1] %v3561_v63  ;;  %v4344_v11 = vmax.f32 %v4341_v50, 0.0 }
 0x2fa   : > { %3852 = vst [vmem:[%s8950_s19 + $0x39] sm:$0x1] %v3839_v21  ;;  %3855 = vst [vmem:[%s8950_s19 + $0x69] sm:$0x1] %v3838_v9  ;;  %v4069_v16 = vcombine.high %v4067_v30, %v4067_v30  ;;  %v4076_v7 = vrot.slane %v4067_v30, %v8928_v44 }
 0x2fb   : > { %3579 = vst [vmem:[%s8950_s19 + $0x78] sm:$0x1] %v3563_v33  ;;  %3856 = vst [vmem:[%s8950_s19 + $0x79] sm:$0x1] %v3840_v6  ;;  %v4346_v48 = vcombine.high %v4344_v11, %v4344_v11  ;;  %v4353_v19 = vrot.slane %v4344_v11, %v8928_v44 }
 0x2fc   : > { %v4083_v39 = vrot.slane %v4069_v16, %v8928_v44  ;;  %v4084_v18 = vcombine.high %v4076_v7, %v4076_v7  ;;  %v4092_v34 = vrot.slane %v4076_v7, %v8928_v44  ;;  %5664 = vst.sshfl [vmem:[%s8950_s19 + $0xa] sm:$0x1 pattern:$0x73625140] %v4076_v7 }
 0x2fd   : > { %v4360_v32 = vrot.slane %v4346_v48, %v8928_v44  ;;  %v4361_v14 = vcombine.high %v4353_v19, %v4353_v19  ;;  %v4369_v23 = vrot.slane %v4353_v19, %v8928_v44  ;;  %5670 = vst.sshfl [vmem:[%s8950_s19 + $0xb] sm:$0x1 pattern:$0x73625140] %v4353_v19 }
 0x2fe   : > { %v4085_v59 = vcombine.high %v4083_v39, %v4083_v39  ;;  %v4099_v35 = vrot.slane %v4083_v39, %v8928_v44  ;;  %v4106_v31 = vrot.slane %v4084_v18, %v8928_v44  ;;  %v4114_v17 = vcombine.high %v4092_v34, %v4092_v34  ;;  %5665 = vst.sshfl [vmem:[%s8950_s19 + $0x1a] sm:$0x1 pattern:$0x73625140] %v4084_v18 }
 0x2ff   : > { %5666 = vst.sshfl [vmem:[%s8950_s19 + $0x4a] sm:$0x1 pattern:$0x73625140] %v4083_v39  ;;  %v4362_v40 = vcombine.high %v4360_v32, %v4360_v32  ;;  %v4376_v42 = vrot.slane %v4360_v32, %v8928_v44  ;;  %v4383_v61 = vrot.slane %v4361_v14, %v8928_v44  ;;  %v4391_v4 = vcombine.high %v4369_v23, %v4369_v23 }
 0x300   : > { %5671 = vst.sshfl [vmem:[%s8950_s19 + $0x1b] sm:$0x1 pattern:$0x73625140] %v4361_v14  ;;  %v4113_v62 = vrot.slane %v4085_v59, %v8928_v44  ;;  %v4115_v43 = vcombine.high %v4099_v35, %v4099_v35  ;;  %v4116_v15 = vcombine.high %v4106_v31, %v4106_v31  ;;  %4128 = vst [vmem:[%s8950_s19 + $0x2a] sm:$0x1] %v4114_v17 }
 0x301   : > { %5672 = vst.sshfl [vmem:[%s8950_s19 + $0x4b] sm:$0x1 pattern:$0x73625140] %v4360_v32  ;;  %v4390_v37 = vrot.slane %v4362_v40, %v8928_v44  ;;  %v4392_v27 = vcombine.high %v4376_v42, %v4376_v42  ;;  %v4393_v53 = vcombine.high %v4383_v61, %v4383_v61  ;;  %4405 = vst [vmem:[%s8950_s19 + $0x2b] sm:$0x1] %v4391_v4 }
 0x302   : > { %5667 = vst.sshfl [vmem:[%s8950_s19 + $0x5a] sm:$0x1 pattern:$0x73625140] %v4085_v59  ;;  %v4617_v46 = vpop.f32.mrb[12].mxu0  ;;  %v4117_v29 = vcombine.high %v4113_v62, %v4113_v62 }
 0x303   : > { %v4894_v26 = vpop.f32.mrb[12].mxu1  ;;  %5673 = vst.sshfl [vmem:[%s8950_s19 + $0x5b] sm:$0x1 pattern:$0x73625140] %v4362_v40  ;;  %v4618_v1 = vadd.f32 %v4617_v46, %v8930_v58  ;;  %v5969_v20 = vpop.f32.mrb[13].mxu0  ;;  %v4394_v52 = vcombine.high %v4390_v37, %v4390_v37 }
 0x304   : > { %v5982_v41 = vpop.f32.mrb[13].mxu1  ;;  %4129 = vst [vmem:[%s8950_s19 + $0x3a] sm:$0x1] %v4116_v15  ;;  %4132 = vst [vmem:[%s8950_s19 + $0x6a] sm:$0x1] %v4115_v43  ;;  %v4895_v49 = vadd.f32 %v4894_v26, %v8930_v58 }
 0x305   : > { %4406 = vst [vmem:[%s8950_s19 + $0x3b] sm:$0x1] %v4393_v53  ;;  %4409 = vst [vmem:[%s8950_s19 + $0x6b] sm:$0x1] %v4392_v27  ;;  %v4621_v24 = vmax.f32 %v4618_v1, 0.0 }
 0x306   : > { %4133 = vst [vmem:[%s8950_s19 + $0x7a] sm:$0x1] %v4117_v29  ;;  %v4898_v56 = vmax.f32 %v4895_v49, 0.0  ;;  %4410 = vst [vmem:[%s8950_s19 + $0x7b] sm:$0x1] %v4394_v52 }
 0x307   : > { %v4623_v2 = vcombine.high %v4621_v24, %v4621_v24  ;;  %v4630_v51 = vrot.slane %v4621_v24, %v8928_v44 }
 0x308   : > { %v4900_v47 = vcombine.high %v4898_v56, %v4898_v56  ;;  %v4907_v45 = vrot.slane %v4898_v56, %v8928_v44 }
 0x309   : > { %v4637_v12 = vrot.slane %v4623_v2, %v8928_v44  ;;  %v4638_v22 = vcombine.high %v4630_v51, %v4630_v51  ;;  %v4646_v25 = vrot.slane %v4630_v51, %v8928_v44  ;;  %5676 = vst.sshfl [vmem:[%s8950_s19 + $0xc] sm:$0x1 pattern:$0x73625140] %v4630_v51 }
 0x30a   : > { %v4914_v54 = vrot.slane %v4900_v47, %v8928_v44  ;;  %v4915_v28 = vcombine.high %v4907_v45, %v4907_v45  ;;  %v4923_v5 = vrot.slane %v4907_v45, %v8928_v44  ;;  %5682 = vst.sshfl [vmem:[%s8950_s19 + $0xd] sm:$0x1 pattern:$0x73625140] %v4907_v45 }
 0x30b   : > { %v4639_v36 = vcombine.high %v4637_v12, %v4637_v12  ;;  %v4653_v3 = vrot.slane %v4637_v12, %v8928_v44  ;;  %v4660_v13 = vrot.slane %v4638_v22, %v8928_v44  ;;  %v4668_v63 = vcombine.high %v4646_v25, %v4646_v25  ;;  %5677 = vst.sshfl [vmem:[%s8950_s19 + $0x1c] sm:$0x1 pattern:$0x73625140] %v4638_v22 }
 0x30c   : > { %5678 = vst.sshfl [vmem:[%s8950_s19 + $0x4c] sm:$0x1 pattern:$0x73625140] %v4637_v12  ;;  %v4916_v60 = vcombine.high %v4914_v54, %v4914_v54  ;;  %v4930_v8 = vrot.slane %v4914_v54, %v8928_v44  ;;  %v4937_v55 = vrot.slane %v4915_v28, %v8928_v44  ;;  %v4945_v57 = vcombine.high %v4923_v5, %v4923_v5 }
 0x30d   : > { %5683 = vst.sshfl [vmem:[%s8950_s19 + $0x1d] sm:$0x1 pattern:$0x73625140] %v4915_v28  ;;  %v4667_v9 = vrot.slane %v4639_v36, %v8928_v44  ;;  %v4669_v21 = vcombine.high %v4653_v3, %v4653_v3  ;;  %v4670_v0 = vcombine.high %v4660_v13, %v4660_v13  ;;  %4682 = vst [vmem:[%s8950_s19 + $0x2c] sm:$0x1] %v4668_v63 }
 0x30e   : > { %5684 = vst.sshfl [vmem:[%s8950_s19 + $0x4d] sm:$0x1 pattern:$0x73625140] %v4914_v54  ;;  %v4944_v38 = vrot.slane %v4916_v60, %v8928_v44  ;;  %v4946_v10 = vcombine.high %v4930_v8, %v4930_v8  ;;  %v4947_v33 = vcombine.high %v4937_v55, %v4937_v55  ;;  %4959 = vst [vmem:[%s8950_s19 + $0x2d] sm:$0x1] %v4945_v57 }
 0x30f   : > { %5679 = vst.sshfl [vmem:[%s8950_s19 + $0x5c] sm:$0x1 pattern:$0x73625140] %v4639_v36  ;;  %v4671_v50 = vcombine.high %v4667_v9, %v4667_v9  ;;  %4683 = vst [vmem:[%s8950_s19 + $0x3c] sm:$0x1] %v4670_v0 }
 0x310   : > { %5685 = vst.sshfl [vmem:[%s8950_s19 + $0x5d] sm:$0x1 pattern:$0x73625140] %v4916_v60  ;;  %4686 = vst [vmem:[%s8950_s19 + $0x6c] sm:$0x1] %v4669_v21  ;;  %v4948_v6 = vcombine.high %v4944_v38, %v4944_v38 }
 0x311   : > { %4960 = vst [vmem:[%s8950_s19 + $0x3d] sm:$0x1] %v4947_v33  ;;  %4963 = vst [vmem:[%s8950_s19 + $0x6d] sm:$0x1] %v4946_v10 }
 0x312   : > { %4687 = vst [vmem:[%s8950_s19 + $0x7c] sm:$0x1] %v4671_v50  ;;  %4964 = vst [vmem:[%s8950_s19 + $0x7d] sm:$0x1] %v4948_v6 }
 0x31d   : > { %v5171_v30 = vpop.f32.mrb[14].mxu0  ;;  %v5448_v11 = vpop.f32.mrb[14].mxu1 }
 0x31e   : > { %v5172_v16 = vadd.f32 %v5171_v30, %v8930_v58  ;;  %v5449_v7 = vadd.f32 %v5448_v11, %v8930_v58  ;;  %v5995_v48 = vpop.f32.mrb[15].mxu0  ;;  %v6008_v19 = vpop.f32.mrb[15].mxu1 }
 0x320   : > { %v5175_v39 = vmax.f32 %v5172_v16, 0.0  ;;  %v5452_v18 = vmax.f32 %v5449_v7, 0.0 }
 0x322   : > { %v5177_v34 = vcombine.high %v5175_v39, %v5175_v39  ;;  %v5184_v32 = vrot.slane %v5175_v39, %v8928_v44  ;;  %v5454_v14 = vcombine.high %v5452_v18, %v5452_v18  ;;  %v5461_v23 = vrot.slane %v5452_v18, %v8928_v44 }
 0x324   : > { %v5191_v59 = vrot.slane %v5177_v34, %v8928_v44  ;;  %v5192_v35 = vcombine.high %v5184_v32, %v5184_v32  ;;  %v5200_v31 = vrot.slane %v5184_v32, %v8928_v44  ;;  %5688 = vst.sshfl [vmem:[%s8950_s19 + $0xe] sm:$0x1 pattern:$0x73625140] %v5184_v32  ;;  %v5468_v58 = vrot.slane %v5454_v14, %v8928_v44 }
 0x325   : > { %5694 = vst.sshfl [vmem:[%s8950_s19 + $0xf] sm:$0x1 pattern:$0x73625140] %v5461_v23  ;;  %v5469_v17 = vcombine.high %v5461_v23, %v5461_v23  ;;  %v5477_v40 = vrot.slane %v5461_v23, %v8928_v44 }
 0x326   : > { %v5193_v42 = vcombine.high %v5191_v59, %v5191_v59  ;;  %v5207_v61 = vrot.slane %v5191_v59, %v8928_v44  ;;  %v5214_v4 = vrot.slane %v5192_v35, %v8928_v44  ;;  %v5222_v62 = vcombine.high %v5200_v31, %v5200_v31  ;;  %5689 = vst.sshfl [vmem:[%s8950_s19 + $0x1e] sm:$0x1 pattern:$0x73625140] %v5192_v35 }
 0x327   : > { %5690 = vst.sshfl [vmem:[%s8950_s19 + $0x4e] sm:$0x1 pattern:$0x73625140] %v5191_v59  ;;  %v5470_v43 = vcombine.high %v5468_v58, %v5468_v58  ;;  %v5484_v15 = vrot.slane %v5468_v58, %v8928_v44  ;;  %v5491_v46 = vrot.slane %v5469_v17, %v8928_v44  ;;  %v5499_v26 = vcombine.high %v5477_v40, %v5477_v40 }
 0x328   : > { %5696 = vst.sshfl [vmem:[%s8950_s19 + $0x4f] sm:$0x1 pattern:$0x73625140] %v5468_v58  ;;  %v5221_v37 = vrot.slane %v5193_v42, %v8928_v44  ;;  %v5223_v27 = vcombine.high %v5207_v61, %v5207_v61  ;;  %v5224_v53 = vcombine.high %v5214_v4, %v5214_v4  ;;  %5236 = vst [vmem:[%s8950_s19 + $0x2e] sm:$0x1] %v5222_v62 }
 0x329   : > { %5695 = vst.sshfl [vmem:[%s8950_s19 + $0x1f] sm:$0x1 pattern:$0x73625140] %v5469_v17  ;;  %v5498_v1 = vrot.slane %v5470_v43, %v8928_v44  ;;  %v5500_v20 = vcombine.high %v5484_v15, %v5484_v15  ;;  %v5501_v41 = vcombine.high %v5491_v46, %v5491_v46  ;;  %5513 = vst [vmem:[%s8950_s19 + $0x2f] sm:$0x1] %v5499_v26 }
 0x32a   : > { %5691 = vst.sshfl [vmem:[%s8950_s19 + $0x5e] sm:$0x1 pattern:$0x73625140] %v5193_v42  ;;  %v5225_v29 = vcombine.high %v5221_v37, %v5221_v37  ;;  %5237 = vst [vmem:[%s8950_s19 + $0x3e] sm:$0x1] %v5224_v53 }
 0x32b   : > { %5697 = vst.sshfl [vmem:[%s8950_s19 + $0x5f] sm:$0x1 pattern:$0x73625140] %v5470_v43  ;;  %5240 = vst [vmem:[%s8950_s19 + $0x6e] sm:$0x1] %v5223_v27  ;;  %v5502_v49 = vcombine.high %v5498_v1, %v5498_v1 }
 0x32c   : > { %5514 = vst [vmem:[%s8950_s19 + $0x3f] sm:$0x1] %v5501_v41  ;;  %5517 = vst [vmem:[%s8950_s19 + $0x6f] sm:$0x1] %v5500_v20 }
 0x32d   : > { %5241 = vst [vmem:[%s8950_s19 + $0x7e] sm:$0x1] %v5225_v29  ;;  %5518 = vst [vmem:[%s8950_s19 + $0x7f] sm:$0x1] %v5502_v49 }
 0x32e   : > { %6177 = shalt.err (!%p6174_p3)
}
 0x32f   : > { %s6178_s5 = scalar_lea.hbm %s9187_s26, 2048  ;;  %s6182_s8 = scalar_lea.hbm %s9241_s3, 4096 }
 0x330   : > { %p6179_p4 = scmp.ne.s32.totalorder %s9187_s26, %s6178_s5  ;;  %p6183_p9 = scmp.lt.u32.totalorder %s9187_s26, %s9241_s3 }
 0x331   : > { %p6184_p10 = scmp.lt.u32.totalorder %s6182_s8, %s6178_s5  ;;  %p6186_p12 = scmp.lt.u32.totalorder %s6178_s5, %s9187_s26 }
 0x332   : > { %p6180_p7 = pnand %p6179_p4, %p6297_p5 }
 0x333   : > { %p6185_p11 = por %p6184_p10, %p6183_p9 }
 0x334   : > { %p6181_p8 = pneg %p6180_p7 }
 0x335   : > { %p6187_p13 = por %p6186_p12, %p6185_p11 }
 0x337   : > { %p6188_p0 = pnand %p6187_p13, %p6181_p8 }
 0x339   : > { %6191 = shalt.err (!%p6188_p0)
}
 0x33a   : > { %s6237_s11 = smov 128   ;;  %s6238_s17 = smov 8  }
 0x33b   : > { %6105 = dma.vmem_to_hbm [thread:$0]  (%p6297_p5), %s9189_s24, 2048, %s9187_s26, %s9197_s27, %s6237_s11, %s6237_s11, %s6238_s17  }
 0x33c PF: > { %p6111_p1 = scmp.ge.s32.totalorder %s6226_s15, 2  ;;  %s5548_s19 = sand.u32 1, %s6214_s12  }
 0x33d   : > { %s5549_s20 = scalar_lea.sflag [#allocation5], %s5548_s19 }
 0x33e   : > { %p6108_p2 = pnand %p6111_p1, %p6301_p6 }
 0x340   : > { %6209 = dma.done.wait (!%p6108_p2), %s5549_s20, 2048  }
 0x341   : > { %6211 = vsyncadd (!%p6108_p2), %s5549_s20, 4294965248  ;;  %p13_p3 = scmp.ge.s32.totalorder %s6284_s18, 4   ;;  %s9730_s12 = smov %s6218_s13 }
 0x342   : > { %s9731_s13 = smov %s6222_s14  ;;  %s9732_s14 = smov %s6295_s21 }
 0x343   : > { %s9733_s15 = smov %s6284_s18  ;;  %15 = sbr.rel (!%p13_p3) target bundleno = 3 (0x3), region = 75 }
 0x34a   :  { %5554 = vsyncpa [#allocation5], 1 }
 0x34b   :  { %5556 = vsyncpa [#allocation5 + $0x1], 1 }

</bundles_post_ra>
